<compile_context>
chip_gen: v7x
topology: tpu7x:2x2x1
jax: 0.10.0
libtpu: 0.0.40
codegen_flags: <defaults>
</compile_context>

<pallas_src>
import functools

import jax
import jax.numpy as jnp
from jax.experimental import pallas as pl
from jax.experimental.pallas import tpu as pltpu

BN_EPS = 1e-5
_MAX_ROW_TILE = 512   # ~85% of HBM roofline on v6e (128-row tiles were ~29%).


def _row_tile(m):
    # Single full-extent block for small M (always a legal block shape),
    # otherwise 512-row tiles on a pl.cdiv grid; a non-dividing tail block is
    # padded on read and masked on write by Pallas (no silently dropped rows).
    return m if m <= _MAX_ROW_TILE else _MAX_ROW_TILE


def _silu(y):
    # exp and the reciprocal go to the EUP slot instead of a VALU divide.
    return y * pl.reciprocal(1.0 + jnp.exp(-y), approx=False)


# ----------------------------- Pallas kernels ------------------------------

def _conv1x1_kernel(x_ref, w_ref, o_ref):
    # 1x1 conv == row-wise matmul over the channel axis (no bias).
    o_ref[...] = jnp.dot(
        x_ref[...], w_ref[...], preferred_element_type=jnp.float32
    ).astype(o_ref.dtype)


def _final_fused_kernel(y1_ref, x_ref, wa_ref, wf_ref, scale_ref, bias_ref, o_ref):
    # Final 1x1 conv over cat([y1, y2]) with the linear y2 branch folded in:
    #   cat([y1, y2]) @ Wf == y1 @ Wf[:h] + x @ (w2 @ Wf[h:])
    # followed by folded BatchNorm (scale/bias) + SiLU.
    acc = jnp.dot(y1_ref[...], wa_ref[...], preferred_element_type=jnp.float32)
    acc = acc + jnp.dot(x_ref[...], wf_ref[...], preferred_element_type=jnp.float32)
    y = acc * scale_ref[...] + bias_ref[...]
    o_ref[...] = _silu(y).astype(o_ref.dtype)


def _conv3x3_bn_silu_kernel(*refs, H, W, fuse_pre):
    # refs (fuse_pre=False): x_ref, w_ref, scale_ref, bias_ref, o_ref
    # refs (fuse_pre=True) : x_ref, wpre_ref, w_ref, scale_ref, bias_ref, o_ref
    #   x_ref  : (1, H*W, Cin)  one flattened (row-major) channels-last image
    #   wpre   : (Cin, C)       conv1 1x1 weight folded in (shift/matmul commute)
    #   w_ref  : (3, 3, C, C)   HWIO weights
    # 3x3 conv (pad=1, stride=1) as 9 shifted matmuls on the flattened image:
    # shifting by (dy, dx) pixels == rolling the row axis by dy*W + dx (XLU)
    # and zeroing rows that would wrap across an image / row boundary.
    if fuse_pre:
        x_ref, wpre_ref, w_ref, scale_ref, bias_ref, o_ref = refs
    else:
        x_ref, w_ref, scale_ref, bias_ref, o_ref = refs

    M = H * W
    C = o_ref.shape[-1]

    if fuse_pre:
        # conv1 (1x1) in VMEM; native-dtype MXU matmul, f32 accumulation.
        x2 = jnp.dot(x_ref[0], wpre_ref[...], preferred_element_type=jnp.float32)
    else:
        # Keep shift/elementwise math in f32 (v5e has no bf16 VPU path; also
        # avoids packed-dtype sublane rolls).
        x2 = x_ref[0].astype(jnp.float32)                    # (M, C)

    # Per-row validity indices as (M, 1): factor-of-C less VALU work than full
    # (M, C) masks; jnp.where broadcasts over the lane axis.
    r_idx = jax.lax.broadcasted_iota(jnp.int32, (M, 1), 0)
    c_idx = r_idx % W                                        # within-row index

    acc = jnp.zeros((M, C), jnp.float32)
    # TODO(synk): for large strips/C move `acc` into a VMEM f32 scratch ref.
    for dy in (-1, 0, 1):
        for dx in (-1, 0, 1):
            s = dy * W + dx
            tap = w_ref[dy + 1, dx + 1].astype(jnp.float32)  # (C, C)
            if s == 0:
                shifted = x2
            else:
                shifted = pltpu.roll(x2, shift=(-s) % M, axis=0)
                valid = ((r_idx + dy * W >= 0) & (r_idx + dy * W < M)
                         & (c_idx + dx >= 0) & (c_idx + dx < W))
                shifted = jnp.where(valid, shifted, 0.0)
            acc = acc + jnp.dot(shifted, tap, preferred_element_type=jnp.float32)

    y = acc * scale_ref[...] + bias_ref[...]                 # folded BN
    o_ref[0] = _silu(y).astype(o_ref.dtype)


# ------------------------------ wrappers ------------------------------------

def conv1x1(xm, w):
    """xm: (M, Cin) rows, w: (Cin, Cout) -> (M, Cout)."""
    M, Cin = xm.shape
    Cout = w.shape[1]
    tm = _row_tile(M)
    # TODO(synk): for large Cin/Cout add a K grid axis ('arbitrary', last) with
    # a VMEM f32 accumulator instead of loading the whole weight per step.
    return pl.pallas_call(
        _conv1x1_kernel,
        out_shape=jax.ShapeDtypeStruct((M, Cout), xm.dtype),
        grid=(pl.cdiv(M, tm),),
        in_specs=[
            pl.BlockSpec((tm, Cin), lambda i: (i, 0)),
            pl.BlockSpec((Cin, Cout), lambda i: (0, 0)),
        ],
        out_specs=pl.BlockSpec((tm, Cout), lambda i: (i, 0)),
        compiler_params=pltpu.CompilerParams(dimension_semantics=("parallel",)),
    )(xm, w)


def conv_final_fused(y1, xf, wa, wf, scale, bias, out_dtype):
    """SiLU(BN(y1 @ wa + xf @ wf)).  scale/bias: (Cout,) float32."""
    M, hidden = y1.shape
    Cin = xf.shape[1]
    Cout = wa.shape[1]
    tm = _row_tile(M)
    return pl.pallas_call(
        _final_fused_kernel,
        out_shape=jax.ShapeDtypeStruct((M, Cout), out_dtype),
        grid=(pl.cdiv(M, tm),),
        in_specs=[
            pl.BlockSpec((tm, hidden), lambda i: (i, 0)),
            pl.BlockSpec((tm, Cin), lambda i: (i, 0)),
            pl.BlockSpec((hidden, Cout), lambda i: (0, 0)),
            pl.BlockSpec((Cin, Cout), lambda i: (0, 0)),
            pl.BlockSpec((1, Cout), lambda i: (0, 0)),
            pl.BlockSpec((1, Cout), lambda i: (0, 0)),
        ],
        out_specs=pl.BlockSpec((tm, Cout), lambda i: (i, 0)),
        compiler_params=pltpu.CompilerParams(dimension_semantics=("parallel",)),
    )(y1, xf, wa, wf, scale.reshape(1, Cout), bias.reshape(1, Cout))


def conv3x3_bn_silu(x_flat, H, W, w, scale, bias, w_pre=None):
    """3x3 conv (pad=1, stride=1, no bias) + folded BN + SiLU.

    x_flat: (N, H*W, Cin) flattened channels-last images (no HBM padding pass).
    If w_pre is given, a 1x1 conv (Cin -> C) is applied in VMEM first."""
    N, M, Cin = x_flat.shape
    assert M == H * W
    C = w.shape[-1]
    fuse_pre = w_pre is not None
    kern = functools.partial(_conv3x3_bn_silu_kernel, H=H, W=W, fuse_pre=fuse_pre)

    in_specs = [pl.BlockSpec((1, M, Cin), lambda n: (n, 0, 0))]
    args = [x_flat]
    if fuse_pre:
        in_specs.append(pl.BlockSpec((Cin, C), lambda n: (0, 0)))
        args.append(w_pre)
    in_specs += [
        pl.BlockSpec((3, 3, C, C), lambda n: (0, 0, 0, 0)),
        pl.BlockSpec((1, C), lambda n: (0, 0)),
        pl.BlockSpec((1, C), lambda n: (0, 0)),
    ]
    args += [w, scale.reshape(1, C), bias.reshape(1, C)]

    return pl.pallas_call(
        kern,
        out_shape=jax.ShapeDtypeStruct((N, M, C), x_flat.dtype),
        grid=(N,),
        in_specs=in_specs,
        out_specs=pl.BlockSpec((1, M, C), lambda n: (n, 0, 0)),
        compiler_params=pltpu.CompilerParams(dimension_semantics=("parallel",)),
    )(*args)


def _fold_bn(gamma, beta, mean, var):
    scale = gamma * jax.lax.rsqrt(var + BN_EPS)
    bias = beta - mean * scale
    return scale, bias


def csp_block_forward(x_nchw, params, downsample=False, compute_dtype=None):
    """CSPBlock.forward.  Input/output layout: NCHW (matching PyTorch)."""
    x = jnp.transpose(x_nchw, (0, 2, 3, 1))                  # -> NHWC
    if downsample:
        # TODO(synk): fold the stride-2 subsampling into the first kernel's DMA
        # (strided index_map) instead of a separate XLA slice pass.
        x = x[:, ::2, ::2, :]
    N, H, W, Cin = x.shape
    hidden = params["w1"].shape[1]
    Cout = params["final"]["w"].shape[1]

    cd = compute_dtype or x.dtype
    xf = x.reshape(N * H * W, Cin).astype(cd)                # flatten: free
    x3 = xf.reshape(N, H * W, Cin)                           # free reshape

    bns = params["bottlenecks"]
    if bns:
        # conv1 folded into the first 3x3 bottleneck: shift(x @ w1) == shift(x) @ w1,
        # so y1 never round-trips through HBM between conv1 and bottleneck 0.
        bp = bns[0]
        scale, bias = _fold_bn(bp["gamma"], bp["beta"], bp["mean"], bp["var"])
        y1 = conv3x3_bn_silu(x3, H, W, bp["w"].astype(cd), scale, bias,
                             w_pre=params["w1"].astype(cd))
        for bp in bns[1:]:
            scale, bias = _fold_bn(bp["gamma"], bp["beta"], bp["mean"], bp["var"])
            y1 = conv3x3_bn_silu(y1, H, W, bp["w"].astype(cd), scale, bias)
        y1 = y1.reshape(N * H * W, hidden)                   # free reshape
    else:
        y1 = conv1x1(xf, params["w1"].astype(cd))            # (M, hidden)

    # conv2 + concat + final conv fused: since conv2 is purely linear (no bias,
    # BN or activation), cat([y1, y2]) @ Wf == y1 @ Wf[:h] + x @ (w2 @ Wf[h:]).
    fp = params["final"]
    wa = fp["w"][:hidden]                                    # (hidden, Cout)
    wf = params["w2"] @ fp["w"][hidden:]                     # (Cin, Cout), tiny
    scale, bias = _fold_bn(fp["gamma"], fp["beta"], fp["mean"], fp["var"])
    out = conv_final_fused(y1, xf, wa.astype(cd), wf.astype(cd), scale, bias,
                           out_dtype=cd)

    out = out.reshape(N, H, W, Cout)
    return jnp.transpose(out, (0, 3, 1, 2))                  # -> NCHW


# ------------------------- deterministic parameters -------------------------

def init_params(key, in_channels, out_channels, num_layers=1, expansion=0.5):
    hidden = int(out_channels * expansion)
    keys = iter(jax.random.split(key, 4 + 5 * num_layers + 5))

    def nrm(shape, scale=0.1):
        return scale * jax.random.normal(next(keys), shape, jnp.float32)

    def bn(c):
        return dict(
            gamma=1.0 + nrm((c,)),
            beta=nrm((c,)),
            mean=nrm((c,)),
            var=jax.random.uniform(next(keys), (c,), jnp.float32, 0.5, 1.5),
        )

    params = dict(
        w1=nrm((in_channels, hidden)),               # conv1 weight, layout (Cin,Cout)
        w2=nrm((in_channels, hidden)),               # conv2 weight
        bottlenecks=[dict(w=nrm((3, 3, hidden, hidden)), **bn(hidden))
                     for _ in range(num_layers)],    # 3x3 weights, layout HWIO
        final=dict(w=nrm((hidden * 2, out_channels)), **bn(out_channels)),
    )
    return params


# ------------------------------ reference -----------------------------------

def _ref_forward(x_nchw, params):
    x = jnp.transpose(x_nchw, (0, 2, 3, 1))

    def c1x1(x, w):
        return jnp.einsum("nhwc,cd->nhwd", x, w, precision="highest")

    def bn_silu(y, gamma, beta, mean, var):
        yn = (y - mean) * jax.lax.rsqrt(var + BN_EPS) * gamma + beta
        return yn * (1.0 / (1.0 + jnp.exp(-yn)))

    y1, y2 = c1x1(x, params["w1"]), c1x1(x, params["w2"])
    H, W = y1.shape[1], y1.shape[2]
    for bp in params["bottlenecks"]:
        xp = jnp.pad(y1, ((0, 0), (1, 1), (1, 1), (0, 0)))
        out = jnp.zeros_like(y1)
        for ky in range(3):
            for kx in range(3):
                out = out + jnp.einsum(
                    "nhwc,cd->nhwd", xp[:, ky:ky + H, kx:kx + W, :],
                    bp["w"][ky, kx], precision="highest")
        y1 = bn_silu(out, bp["gamma"], bp["beta"], bp["mean"], bp["var"])
    y = jnp.concatenate([y1, y2], -1)
    fp = params["final"]
    out = bn_silu(c1x1(y, fp["w"]), fp["gamma"], fp["beta"], fp["mean"], fp["var"])
    return jnp.transpose(out, (0, 3, 1, 2))


# --------------------------------- main --------------------------------------

if __name__ == "__main__":
    key = jax.random.PRNGKey(0)
    k_x, k_p, k_p2 = jax.random.split(key, 3)

    N, Cin, Hs, Ws = 2, 4, 16, 16
    Cout, num_layers = 8, 1

    x = jax.random.normal(k_x, (N, Cin, Hs, Ws), jnp.float32)   # NCHW like PyTorch
    params = init_params(k_p, Cin, Cout, num_layers=num_layers, expansion=0.5)

    ref = _ref_forward(x, params)

    # float32 path (strict check)
    fwd = jax.jit(functools.partial(csp_block_forward, downsample=False))
    out = jax.block_until_ready(fwd(x, params))
    assert out.shape == (N, Cout, Hs, Ws), out.shape
    assert jnp.allclose(out, ref, atol=2e-3, rtol=2e-3), \
        float(jnp.abs(out - ref).max())

    # bfloat16 path (halves HBM traffic; BN/SiLU stay f32) — loose check
    fwd_bf16 = jax.jit(functools.partial(
        csp_block_forward, downsample=False, compute_dtype=jnp.bfloat16))
    out_bf16 = jax.block_until_ready(fwd_bf16(x, params)).astype(jnp.float32)
    assert out_bf16.shape == (N, Cout, Hs, Ws), out_bf16.shape
    assert jnp.allclose(out_bf16, ref, atol=5e-2, rtol=5e-2), \
        float(jnp.abs(out_bf16 - ref).max())

    # num_layers=2 exercises both 3x3 paths (conv1-fused first layer + plain)
    params2 = init_params(k_p2, Cin, Cout, num_layers=2, expansion=0.5)
    ref2 = _ref_forward(x, params2)
    out2 = jax.block_until_ready(fwd(x, params2))
    assert out2.shape == (N, Cout, Hs, Ws), out2.shape
    assert jnp.allclose(out2, ref2, atol=2e-3, rtol=2e-3), \
        float(jnp.abs(out2 - ref2).max())

    print("KERNEL_OK")
</pallas_src>

<mosaic_0001>
module attributes {stable_mosaic.version = 11 : i64} {
  func.func @_final_fused_kernel(%arg0: i32, %arg1: memref<512x4xf32, #tpu.memory_space<vmem>>, %arg2: memref<512x4xf32, #tpu.memory_space<vmem>>, %arg3: memref<4x8xf32, #tpu.memory_space<vmem>>, %arg4: memref<4x8xf32, #tpu.memory_space<vmem>>, %arg5: memref<1x8xf32, #tpu.memory_space<vmem>>, %arg6: memref<1x8xf32, #tpu.memory_space<vmem>>, %arg7: memref<512x8xf32, #tpu.memory_space<vmem>>) attributes {dimension_semantics = [#tpu.dimension_semantics<parallel>], iteration_bounds = array<i64: 1>, scalar_prefetch = 0 : i64, scratch_operands = 0 : i64, tpu.core_type = #tpu.core_type<tc>, window_params = [{transform_indices = @transform_0, window_bounds = array<i64: 512, 4>}, {transform_indices = @transform_1, window_bounds = array<i64: 512, 4>}, {pipeline_mode = #tpu.pipeline_mode<synchronous>, transform_indices = @transform_2, window_bounds = array<i64: 4, 8>}, {pipeline_mode = #tpu.pipeline_mode<synchronous>, transform_indices = @transform_3, window_bounds = array<i64: 4, 8>}, {pipeline_mode = #tpu.pipeline_mode<synchronous>, transform_indices = @transform_4, window_bounds = array<i64: 1, 8>}, {pipeline_mode = #tpu.pipeline_mode<synchronous>, transform_indices = @transform_5, window_bounds = array<i64: 1, 8>}, {transform_indices = @transform_6, window_bounds = array<i64: 512, 8>}]} {
    %c0 = arith.constant 0 : index
    %c0_0 = arith.constant 0 : index
    %0 = vector.load %arg1[%c0, %c0_0] : memref<512x4xf32, #tpu.memory_space<vmem>>, vector<512x4xf32>
    %c0_1 = arith.constant 0 : index
    %c0_2 = arith.constant 0 : index
    %1 = vector.load %arg3[%c0_1, %c0_2] : memref<4x8xf32, #tpu.memory_space<vmem>>, vector<4x8xf32>
    %cst = arith.constant dense<0.000000e+00> : vector<512x8xf32>
    %2 = tpu.matmul %0, %1, %cst {dimension_numbers = #tpu.dot_dimension_numbers<[1], [0], [0], [1], [0, 0, 1, 1], [], []>} : vector<512x4xf32>, vector<4x8xf32>, vector<512x8xf32> -> vector<512x8xf32>
    %c0_3 = arith.constant 0 : index
    %c0_4 = arith.constant 0 : index
    %3 = vector.load %arg2[%c0_3, %c0_4] : memref<512x4xf32, #tpu.memory_space<vmem>>, vector<512x4xf32>
    %c0_5 = arith.constant 0 : index
    %c0_6 = arith.constant 0 : index
    %4 = vector.load %arg4[%c0_5, %c0_6] : memref<4x8xf32, #tpu.memory_space<vmem>>, vector<4x8xf32>
    %cst_7 = arith.constant dense<0.000000e+00> : vector<512x8xf32>
    %5 = tpu.matmul %3, %4, %cst_7 {dimension_numbers = #tpu.dot_dimension_numbers<[1], [0], [0], [1], [0, 0, 1, 1], [], []>} : vector<512x4xf32>, vector<4x8xf32>, vector<512x8xf32> -> vector<512x8xf32>
    %6 = arith.addf %2, %5 : vector<512x8xf32>
    %c0_8 = arith.constant 0 : index
    %c0_9 = arith.constant 0 : index
    %7 = vector.load %arg5[%c0_8, %c0_9] : memref<1x8xf32, #tpu.memory_space<vmem>>, vector<1x8xf32>
    %8 = vector.broadcast %7 : vector<1x8xf32> to vector<512x8xf32>
    %9 = arith.mulf %6, %8 : vector<512x8xf32>
    %c0_10 = arith.constant 0 : index
    %c0_11 = arith.constant 0 : index
    %10 = vector.load %arg6[%c0_10, %c0_11] : memref<1x8xf32, #tpu.memory_space<vmem>>, vector<1x8xf32>
    %11 = vector.broadcast %10 : vector<1x8xf32> to vector<512x8xf32>
    %12 = arith.addf %9, %11 : vector<512x8xf32>
    %cst_12 = arith.constant 0.000000e+00 : f32
    %13 = vector.broadcast %cst_12 : f32 to vector<512x8xf32>
    %14 = arith.subf %13, %12 : vector<512x8xf32>
    %15 = math.exp %14 : vector<512x8xf32>
    %cst_13 = arith.constant 1.000000e+00 : f32
    %16 = vector.broadcast %cst_13 : f32 to vector<512x8xf32>
    %17 = arith.addf %16, %15 : vector<512x8xf32>
    %18 = tpu.reciprocal %17 : vector<512x8xf32> -> vector<512x8xf32>
    %19 = arith.mulf %12, %18 : vector<512x8xf32>
    %c0_14 = arith.constant 0 : index
    %c0_15 = arith.constant 0 : index
    %20 = vector.load %arg7[%c0_14, %c0_15] : memref<512x8xf32, #tpu.memory_space<vmem>>, vector<512x8xf32>
    tpu.vector_store %arg7[%c0_14, %c0_15], %19 {strides = array<i32>} : memref<512x8xf32, #tpu.memory_space<vmem>>, vector<512x8xf32>,
    return
  }
  func.func @transform_0(%arg0: i32) -> (i32, i32) {
    %c0_i32 = arith.constant 0 : i32
    %c0_i32_0 = arith.constant 0 : i32
    return %arg0, %c0_i32 : i32, i32
  }
  func.func @transform_1(%arg0: i32) -> (i32, i32) {
    %c0_i32 = arith.constant 0 : i32
    %c0_i32_0 = arith.constant 0 : i32
    return %arg0, %c0_i32 : i32, i32
  }
  func.func @transform_2(%arg0: i32) -> (i32, i32) {
    %c0_i32 = arith.constant 0 : i32
    %c0_i32_0 = arith.constant 0 : i32
    %c0_i32_1 = arith.constant 0 : i32
    return %c0_i32, %c0_i32_0 : i32, i32
  }
  func.func @transform_3(%arg0: i32) -> (i32, i32) {
    %c0_i32 = arith.constant 0 : i32
    %c0_i32_0 = arith.constant 0 : i32
    %c0_i32_1 = arith.constant 0 : i32
    return %c0_i32, %c0_i32_0 : i32, i32
  }
  func.func @transform_4(%arg0: i32) -> (i32, i32) {
    %c0_i32 = arith.constant 0 : i32
    %c0_i32_0 = arith.constant 0 : i32
    %c0_i32_1 = arith.constant 0 : i32
    return %c0_i32, %c0_i32_0 : i32, i32
  }
  func.func @transform_5(%arg0: i32) -> (i32, i32) {
    %c0_i32 = arith.constant 0 : i32
    %c0_i32_0 = arith.constant 0 : i32
    %c0_i32_1 = arith.constant 0 : i32
    return %c0_i32, %c0_i32_0 : i32, i32
  }
  func.func @transform_6(%arg0: i32) -> (i32, i32) {
    %c0_i32 = arith.constant 0 : i32
    %c0_i32_0 = arith.constant 0 : i32
    return %arg0, %c0_i32 : i32, i32
  }
}

module attributes {stable_mosaic.version = 11 : i64} {
  func.func @_conv3x3_bn_silu_kernel(%arg0: i32, %arg1: memref<1x256x4xf32, #tpu.memory_space<vmem>>, %arg2: memref<4x4xf32, #tpu.memory_space<vmem>>, %arg3: memref<3x3x4x4xf32, #tpu.memory_space<vmem>>, %arg4: memref<1x4xf32, #tpu.memory_space<vmem>>, %arg5: memref<1x4xf32, #tpu.memory_space<vmem>>, %arg6: memref<1x256x4xf32, #tpu.memory_space<vmem>>) attributes {dimension_semantics = [#tpu.dimension_semantics<parallel>], iteration_bounds = array<i64: 2>, scalar_prefetch = 0 : i64, scratch_operands = 0 : i64, tpu.core_type = #tpu.core_type<tc>, window_params = [{transform_indices = @transform_0, window_bounds = array<i64: 1, 256, 4>}, {pipeline_mode = #tpu.pipeline_mode<synchronous>, transform_indices = @transform_1, window_bounds = array<i64: 4, 4>}, {pipeline_mode = #tpu.pipeline_mode<synchronous>, transform_indices = @transform_2, window_bounds = array<i64: 3, 3, 4, 4>}, {pipeline_mode = #tpu.pipeline_mode<synchronous>, transform_indices = @transform_3, window_bounds = array<i64: 1, 4>}, {pipeline_mode = #tpu.pipeline_mode<synchronous>, transform_indices = @transform_4, window_bounds = array<i64: 1, 4>}, {transform_indices = @transform_5, window_bounds = array<i64: 1, 256, 4>}]} {
    %c0 = arith.constant 0 : index
    %c0_0 = arith.constant 0 : index
    %c0_1 = arith.constant 0 : index
    %0 = vector.load %arg1[%c0, %c0_0, %c0_1] : memref<1x256x4xf32, #tpu.memory_space<vmem>>, vector<1x256x4xf32>
    %1 = vector.shape_cast %0 : vector<1x256x4xf32> to vector<256x4xf32>
    %c0_2 = arith.constant 0 : index
    %c0_3 = arith.constant 0 : index
    %2 = vector.load %arg2[%c0_2, %c0_3] : memref<4x4xf32, #tpu.memory_space<vmem>>, vector<4x4xf32>
    %cst = arith.constant dense<0.000000e+00> : vector<256x4xf32>
    %3 = tpu.matmul %1, %2, %cst {dimension_numbers = #tpu.dot_dimension_numbers<[1], [0], [0], [1], [0, 0, 1, 1], [], []>} : vector<256x4xf32>, vector<4x4xf32>, vector<256x4xf32> -> vector<256x4xf32>
    %4 = tpu.iota {dimensions = array<i32: 0>} : vector<256x1xi32>
    %c16_i32 = arith.constant 16 : i32
    %c0_i32 = arith.constant 0 : i32
    %5 = arith.cmpi eq, %c16_i32, %c0_i32 : i32
    %c1_i32 = arith.constant 1 : i32
    %6 = arith.select %5, %c1_i32, %c16_i32 : i32
    %7 = vector.broadcast %6 : i32 to vector<256x1xi32>
    %8 = arith.remsi %4, %7 : vector<256x1xi32>
    %c0_i32_4 = arith.constant 0 : i32
    %9 = vector.broadcast %c0_i32_4 : i32 to vector<256x1xi32>
    %10 = arith.cmpi ne, %8, %9 : vector<256x1xi32>
    %c0_i32_5 = arith.constant 0 : i32
    %11 = vector.broadcast %c0_i32_5 : i32 to vector<256x1xi32>
    %12 = arith.cmpi slt, %8, %11 : vector<256x1xi32>
    %c0_i32_6 = arith.constant 0 : i32
    %13 = arith.cmpi slt, %6, %c0_i32_6 : i32
    %14 = vector.broadcast %13 : i1 to vector<256x1xi1>
    %15 = vector.broadcast %14 : vector<256x1xi1> to vector<256x1xi1>
    %16 = arith.xori %12, %15 : vector<256x1xi1>
    %17 = arith.andi %16, %10 : vector<256x1xi1>
    %18 = vector.broadcast %6 : i32 to vector<256x1xi32>
    %19 = arith.addi %8, %18 : vector<256x1xi32>
    %20 = arith.select %17, %19, %8 : vector<256x1xi1>, vector<256x1xi32>
    %cst_7 = arith.constant 0.000000e+00 : f32
    %21 = vector.broadcast %cst_7 : f32 to vector<256x4xf32>
    %c0_8 = arith.constant 0 : index
    %c0_9 = arith.constant 0 : index
    %c0_10 = arith.constant 0 : index
    %c0_11 = arith.constant 0 : index
    %22 = vector.load %arg3[%c0_8, %c0_9, %c0_10, %c0_11] : memref<3x3x4x4xf32, #tpu.memory_space<vmem>>, vector<1x1x4x4xf32>
    %23 = vector.shape_cast %22 : vector<1x1x4x4xf32> to vector<4x4xf32>
    %c17_i32 = arith.constant 17 : i32
    %24 = tpu.dynamic_rotate %3 by %c17_i32 dim 0 : vector<256x4xf32>, i32 -> vector<256x4xf32>
    %c-16_i32 = arith.constant -16 : i32
    %25 = vector.broadcast %c-16_i32 : i32 to vector<256x1xi32>
    %26 = arith.addi %4, %25 : vector<256x1xi32>
    %c0_i32_12 = arith.constant 0 : i32
    %27 = vector.broadcast %c0_i32_12 : i32 to vector<256x1xi32>
    %28 = arith.cmpi sge, %26, %27 : vector<256x1xi32>
    %c-16_i32_13 = arith.constant -16 : i32
    %29 = vector.broadcast %c-16_i32_13 : i32 to vector<256x1xi32>
    %30 = arith.addi %4, %29 : vector<256x1xi32>
    %c256_i32 = arith.constant 256 : i32
    %31 = vector.broadcast %c256_i32 : i32 to vector<256x1xi32>
    %32 = arith.cmpi slt, %30, %31 : vector<256x1xi32>
    %33 = arith.andi %28, %32 : vector<256x1xi1>
    %c-1_i32 = arith.constant -1 : i32
    %34 = vector.broadcast %c-1_i32 : i32 to vector<256x1xi32>
    %35 = arith.addi %20, %34 : vector<256x1xi32>
    %c0_i32_14 = arith.constant 0 : i32
    %36 = vector.broadcast %c0_i32_14 : i32 to vector<256x1xi32>
    %37 = arith.cmpi sge, %35, %36 : vector<256x1xi32>
    %38 = arith.andi %33, %37 : vector<256x1xi1>
    %c-1_i32_15 = arith.constant -1 : i32
    %39 = vector.broadcast %c-1_i32_15 : i32 to vector<256x1xi32>
    %40 = arith.addi %20, %39 : vector<256x1xi32>
    %c16_i32_16 = arith.constant 16 : i32
    %41 = vector.broadcast %c16_i32_16 : i32 to vector<256x1xi32>
    %42 = arith.cmpi slt, %40, %41 : vector<256x1xi32>
    %43 = arith.andi %38, %42 : vector<256x1xi1>
    %cst_17 = arith.constant 0.000000e+00 : f32
    %44 = vector.shape_cast %43 : vector<256x1xi1> to vector<256x1xi1>
    %45 = vector.broadcast %44 : vector<256x1xi1> to vector<256x4xi1>
    %46 = vector.broadcast %cst_17 : f32 to vector<256x4xf32>
    %47 = arith.select %45, %24, %46 : vector<256x4xi1>, vector<256x4xf32>
    %cst_18 = arith.constant dense<0.000000e+00> : vector<256x4xf32>
    %48 = tpu.matmul %47, %23, %cst_18 {dimension_numbers = #tpu.dot_dimension_numbers<[1], [0], [0], [1], [0, 0, 1, 1], [], []>} : vector<256x4xf32>, vector<4x4xf32>, vector<256x4xf32> -> vector<256x4xf32>
    %49 = arith.addf %21, %48 : vector<256x4xf32>
    %c0_19 = arith.constant 0 : index
    %c1 = arith.constant 1 : index
    %c0_20 = arith.constant 0 : index
    %c0_21 = arith.constant 0 : index
    %50 = vector.load %arg3[%c0_19, %c1, %c0_20, %c0_21] : memref<3x3x4x4xf32, #tpu.memory_space<vmem>>, vector<1x1x4x4xf32>
    %51 = vector.shape_cast %50 : vector<1x1x4x4xf32> to vector<4x4xf32>
    %c16_i32_22 = arith.constant 16 : i32
    %52 = tpu.dynamic_rotate %3 by %c16_i32_22 dim 0 : vector<256x4xf32>, i32 -> vector<256x4xf32>
    %c-16_i32_23 = arith.constant -16 : i32
    %53 = vector.broadcast %c-16_i32_23 : i32 to vector<256x1xi32>
    %54 = arith.addi %4, %53 : vector<256x1xi32>
    %c0_i32_24 = arith.constant 0 : i32
    %55 = vector.broadcast %c0_i32_24 : i32 to vector<256x1xi32>
    %56 = arith.cmpi sge, %54, %55 : vector<256x1xi32>
    %c-16_i32_25 = arith.constant -16 : i32
    %57 = vector.broadcast %c-16_i32_25 : i32 to vector<256x1xi32>
    %58 = arith.addi %4, %57 : vector<256x1xi32>
    %c256_i32_26 = arith.constant 256 : i32
    %59 = vector.broadcast %c256_i32_26 : i32 to vector<256x1xi32>
    %60 = arith.cmpi slt, %58, %59 : vector<256x1xi32>
    %61 = arith.andi %56, %60 : vector<256x1xi1>
    %c0_i32_27 = arith.constant 0 : i32
    %62 = vector.broadcast %c0_i32_27 : i32 to vector<256x1xi32>
    %63 = arith.addi %20, %62 : vector<256x1xi32>
    %c0_i32_28 = arith.constant 0 : i32
    %64 = vector.broadcast %c0_i32_28 : i32 to vector<256x1xi32>
    %65 = arith.cmpi sge, %63, %64 : vector<256x1xi32>
    %66 = arith.andi %61, %65 : vector<256x1xi1>
    %c0_i32_29 = arith.constant 0 : i32
    %67 = vector.broadcast %c0_i32_29 : i32 to vector<256x1xi32>
    %68 = arith.addi %20, %67 : vector<256x1xi32>
    %c16_i32_30 = arith.constant 16 : i32
    %69 = vector.broadcast %c16_i32_30 : i32 to vector<256x1xi32>
    %70 = arith.cmpi slt, %68, %69 : vector<256x1xi32>
    %71 = arith.andi %66, %70 : vector<256x1xi1>
    %cst_31 = arith.constant 0.000000e+00 : f32
    %72 = vector.shape_cast %71 : vector<256x1xi1> to vector<256x1xi1>
    %73 = vector.broadcast %72 : vector<256x1xi1> to vector<256x4xi1>
    %74 = vector.broadcast %cst_31 : f32 to vector<256x4xf32>
    %75 = arith.select %73, %52, %74 : vector<256x4xi1>, vector<256x4xf32>
    %cst_32 = arith.constant dense<0.000000e+00> : vector<256x4xf32>
    %76 = tpu.matmul %75, %51, %cst_32 {dimension_numbers = #tpu.dot_dimension_numbers<[1], [0], [0], [1], [0, 0, 1, 1], [], []>} : vector<256x4xf32>, vector<4x4xf32>, vector<256x4xf32> -> vector<256x4xf32>
    %77 = arith.addf %49, %76 : vector<256x4xf32>
    %c0_33 = arith.constant 0 : index
    %c2 = arith.constant 2 : index
    %c0_34 = arith.constant 0 : index
    %c0_35 = arith.constant 0 : index
    %78 = vector.load %arg3[%c0_33, %c2, %c0_34, %c0_35] : memref<3x3x4x4xf32, #tpu.memory_space<vmem>>, vector<1x1x4x4xf32>
    %79 = vector.shape_cast %78 : vector<1x1x4x4xf32> to vector<4x4xf32>
    %c15_i32 = arith.constant 15 : i32
    %80 = tpu.dynamic_rotate %3 by %c15_i32 dim 0 : vector<256x4xf32>, i32 -> vector<256x4xf32>
    %c-16_i32_36 = arith.constant -16 : i32
    %81 = vector.broadcast %c-16_i32_36 : i32 to vector<256x1xi32>
    %82 = arith.addi %4, %81 : vector<256x1xi32>
    %c0_i32_37 = arith.constant 0 : i32
    %83 = vector.broadcast %c0_i32_37 : i32 to vector<256x1xi32>
    %84 = arith.cmpi sge, %82, %83 : vector<256x1xi32>
    %c-16_i32_38 = arith.constant -16 : i32
    %85 = vector.broadcast %c-16_i32_38 : i32 to vector<256x1xi32>
    %86 = arith.addi %4, %85 : vector<256x1xi32>
    %c256_i32_39 = arith.constant 256 : i32
    %87 = vector.broadcast %c256_i32_39 : i32 to vector<256x1xi32>
    %88 = arith.cmpi slt, %86, %87 : vector<256x1xi32>
    %89 = arith.andi %84, %88 : vector<256x1xi1>
    %c1_i32_40 = arith.constant 1 : i32
    %90 = vector.broadcast %c1_i32_40 : i32 to vector<256x1xi32>
    %91 = arith.addi %20, %90 : vector<256x1xi32>
    %c0_i32_41 = arith.constant 0 : i32
    %92 = vector.broadcast %c0_i32_41 : i32 to vector<256x1xi32>
    %93 = arith.cmpi sge, %91, %92 : vector<256x1xi32>
    %94 = arith.andi %89, %93 : vector<256x1xi1>
    %c1_i32_42 = arith.constant 1 : i32
    %95 = vector.broadcast %c1_i32_42 : i32 to vector<256x1xi32>
    %96 = arith.addi %20, %95 : vector<256x1xi32>
    %c16_i32_43 = arith.constant 16 : i32
    %97 = vector.broadcast %c16_i32_43 : i32 to vector<256x1xi32>
    %98 = arith.cmpi slt, %96, %97 : vector<256x1xi32>
    %99 = arith.andi %94, %98 : vector<256x1xi1>
    %cst_44 = arith.constant 0.000000e+00 : f32
    %100 = vector.shape_cast %99 : vector<256x1xi1> to vector<256x1xi1>
    %101 = vector.broadcast %100 : vector<256x1xi1> to vector<256x4xi1>
    %102 = vector.broadcast %cst_44 : f32 to vector<256x4xf32>
    %103 = arith.select %101, %80, %102 : vector<256x4xi1>, vector<256x4xf32>
    %cst_45 = arith.constant dense<0.000000e+00> : vector<256x4xf32>
    %104 = tpu.matmul %103, %79, %cst_45 {dimension_numbers = #tpu.dot_dimension_numbers<[1], [0], [0], [1], [0, 0, 1, 1], [], []>} : vector<256x4xf32>, vector<4x4xf32>, vector<256x4xf32> -> vector<256x4xf32>
    %105 = arith.addf %77, %104 : vector<256x4xf32>
    %c1_46 = arith.constant 1 : index
    %c0_47 = arith.constant 0 : index
    %c0_48 = arith.constant 0 : index
    %c0_49 = arith.constant 0 : index
    %106 = vector.load %arg3[%c1_46, %c0_47, %c0_48, %c0_49] : memref<3x3x4x4xf32, #tpu.memory_space<vmem>>, vector<1x1x4x4xf32>
    %107 = vector.shape_cast %106 : vector<1x1x4x4xf32> to vector<4x4xf32>
    %c1_i32_50 = arith.constant 1 : i32
    %108 = tpu.dynamic_rotate %3 by %c1_i32_50 dim 0 : vector<256x4xf32>, i32 -> vector<256x4xf32>
    %c0_i32_51 = arith.constant 0 : i32
    %109 = vector.broadcast %c0_i32_51 : i32 to vector<256x1xi32>
    %110 = arith.addi %4, %109 : vector<256x1xi32>
    %c0_i32_52 = arith.constant 0 : i32
    %111 = vector.broadcast %c0_i32_52 : i32 to vector<256x1xi32>
    %112 = arith.cmpi sge, %110, %111 : vector<256x1xi32>
    %c0_i32_53 = arith.constant 0 : i32
    %113 = vector.broadcast %c0_i32_53 : i32 to vector<256x1xi32>
    %114 = arith.addi %4, %113 : vector<256x1xi32>
    %c256_i32_54 = arith.constant 256 : i32
    %115 = vector.broadcast %c256_i32_54 : i32 to vector<256x1xi32>
    %116 = arith.cmpi slt, %114, %115 : vector<256x1xi32>
    %117 = arith.andi %112, %116 : vector<256x1xi1>
    %c-1_i32_55 = arith.constant -1 : i32
    %118 = vector.broadcast %c-1_i32_55 : i32 to vector<256x1xi32>
    %119 = arith.addi %20, %118 : vector<256x1xi32>
    %c0_i32_56 = arith.constant 0 : i32
    %120 = vector.broadcast %c0_i32_56 : i32 to vector<256x1xi32>
    %121 = arith.cmpi sge, %119, %120 : vector<256x1xi32>
    %122 = arith.andi %117, %121 : vector<256x1xi1>
    %c-1_i32_57 = arith.constant -1 : i32
    %123 = vector.broadcast %c-1_i32_57 : i32 to vector<256x1xi32>
    %124 = arith.addi %20, %123 : vector<256x1xi32>
    %c16_i32_58 = arith.constant 16 : i32
    %125 = vector.broadcast %c16_i32_58 : i32 to vector<256x1xi32>
    %126 = arith.cmpi slt, %124, %125 : vector<256x1xi32>
    %127 = arith.andi %122, %126 : vector<256x1xi1>
    %cst_59 = arith.constant 0.000000e+00 : f32
    %128 = vector.shape_cast %127 : vector<256x1xi1> to vector<256x1xi1>
    %129 = vector.broadcast %128 : vector<256x1xi1> to vector<256x4xi1>
    %130 = vector.broadcast %cst_59 : f32 to vector<256x4xf32>
    %131 = arith.select %129, %108, %130 : vector<256x4xi1>, vector<256x4xf32>
    %cst_60 = arith.constant dense<0.000000e+00> : vector<256x4xf32>
    %132 = tpu.matmul %131, %107, %cst_60 {dimension_numbers = #tpu.dot_dimension_numbers<[1], [0], [0], [1], [0, 0, 1, 1], [], []>} : vector<256x4xf32>, vector<4x4xf32>, vector<256x4xf32> -> vector<256x4xf32>
    %133 = arith.addf %105, %132 : vector<256x4xf32>
    %c1_61 = arith.constant 1 : index
    %c1_62 = arith.constant 1 : index
    %c0_63 = arith.constant 0 : index
    %c0_64 = arith.constant 0 : index
    %134 = vector.load %arg3[%c1_61, %c1_62, %c0_63, %c0_64] : memref<3x3x4x4xf32, #tpu.memory_space<vmem>>, vector<1x1x4x4xf32>
    %135 = vector.shape_cast %134 : vector<1x1x4x4xf32> to vector<4x4xf32>
    %cst_65 = arith.constant dense<0.000000e+00> : vector<256x4xf32>
    %136 = tpu.matmul %3, %135, %cst_65 {dimension_numbers = #tpu.dot_dimension_numbers<[1], [0], [0], [1], [0, 0, 1, 1], [], []>} : vector<256x4xf32>, vector<4x4xf32>, vector<256x4xf32> -> vector<256x4xf32>
    %137 = arith.addf %133, %136 : vector<256x4xf32>
    %c1_66 = arith.constant 1 : index
    %c2_67 = arith.constant 2 : index
    %c0_68 = arith.constant 0 : index
    %c0_69 = arith.constant 0 : index
    %138 = vector.load %arg3[%c1_66, %c2_67, %c0_68, %c0_69] : memref<3x3x4x4xf32, #tpu.memory_space<vmem>>, vector<1x1x4x4xf32>
    %139 = vector.shape_cast %138 : vector<1x1x4x4xf32> to vector<4x4xf32>
    %c255_i32 = arith.constant 255 : i32
    %140 = tpu.dynamic_rotate %3 by %c255_i32 dim 0 : vector<256x4xf32>, i32 -> vector<256x4xf32>
    %c0_i32_70 = arith.constant 0 : i32
    %141 = vector.broadcast %c0_i32_70 : i32 to vector<256x1xi32>
    %142 = arith.addi %4, %141 : vector<256x1xi32>
    %c0_i32_71 = arith.constant 0 : i32
    %143 = vector.broadcast %c0_i32_71 : i32 to vector<256x1xi32>
    %144 = arith.cmpi sge, %142, %143 : vector<256x1xi32>
    %c0_i32_72 = arith.constant 0 : i32
    %145 = vector.broadcast %c0_i32_72 : i32 to vector<256x1xi32>
    %146 = arith.addi %4, %145 : vector<256x1xi32>
    %c256_i32_73 = arith.constant 256 : i32
    %147 = vector.broadcast %c256_i32_73 : i32 to vector<256x1xi32>
    %148 = arith.cmpi slt, %146, %147 : vector<256x1xi32>
    %149 = arith.andi %144, %148 : vector<256x1xi1>
    %c1_i32_74 = arith.constant 1 : i32
    %150 = vector.broadcast %c1_i32_74 : i32 to vector<256x1xi32>
    %151 = arith.addi %20, %150 : vector<256x1xi32>
    %c0_i32_75 = arith.constant 0 : i32
    %152 = vector.broadcast %c0_i32_75 : i32 to vector<256x1xi32>
    %153 = arith.cmpi sge, %151, %152 : vector<256x1xi32>
    %154 = arith.andi %149, %153 : vector<256x1xi1>
    %c1_i32_76 = arith.constant 1 : i32
    %155 = vector.broadcast %c1_i32_76 : i32 to vector<256x1xi32>
    %156 = arith.addi %20, %155 : vector<256x1xi32>
    %c16_i32_77 = arith.constant 16 : i32
    %157 = vector.broadcast %c16_i32_77 : i32 to vector<256x1xi32>
    %158 = arith.cmpi slt, %156, %157 : vector<256x1xi32>
    %159 = arith.andi %154, %158 : vector<256x1xi1>
    %cst_78 = arith.constant 0.000000e+00 : f32
    %160 = vector.shape_cast %159 : vector<256x1xi1> to vector<256x1xi1>
    %161 = vector.broadcast %160 : vector<256x1xi1> to vector<256x4xi1>
    %162 = vector.broadcast %cst_78 : f32 to vector<256x4xf32>
    %163 = arith.select %161, %140, %162 : vector<256x4xi1>, vector<256x4xf32>
    %cst_79 = arith.constant dense<0.000000e+00> : vector<256x4xf32>
    %164 = tpu.matmul %163, %139, %cst_79 {dimension_numbers = #tpu.dot_dimension_numbers<[1], [0], [0], [1], [0, 0, 1, 1], [], []>} : vector<256x4xf32>, vector<4x4xf32>, vector<256x4xf32> -> vector<256x4xf32>
    %165 = arith.addf %137, %164 : vector<256x4xf32>
    %c2_80 = arith.constant 2 : index
    %c0_81 = arith.constant 0 : index
    %c0_82 = arith.constant 0 : index
    %c0_83 = arith.constant 0 : index
    %166 = vector.load %arg3[%c2_80, %c0_81, %c0_82, %c0_83] : memref<3x3x4x4xf32, #tpu.memory_space<vmem>>, vector<1x1x4x4xf32>
    %167 = vector.shape_cast %166 : vector<1x1x4x4xf32> to vector<4x4xf32>
    %c241_i32 = arith.constant 241 : i32
    %168 = tpu.dynamic_rotate %3 by %c241_i32 dim 0 : vector<256x4xf32>, i32 -> vector<256x4xf32>
    %c16_i32_84 = arith.constant 16 : i32
    %169 = vector.broadcast %c16_i32_84 : i32 to vector<256x1xi32>
    %170 = arith.addi %4, %169 : vector<256x1xi32>
    %c0_i32_85 = arith.constant 0 : i32
    %171 = vector.broadcast %c0_i32_85 : i32 to vector<256x1xi32>
    %172 = arith.cmpi sge, %170, %171 : vector<256x1xi32>
    %c16_i32_86 = arith.constant 16 : i32
    %173 = vector.broadcast %c16_i32_86 : i32 to vector<256x1xi32>
    %174 = arith.addi %4, %173 : vector<256x1xi32>
    %c256_i32_87 = arith.constant 256 : i32
    %175 = vector.broadcast %c256_i32_87 : i32 to vector<256x1xi32>
    %176 = arith.cmpi slt, %174, %175 : vector<256x1xi32>
    %177 = arith.andi %172, %176 : vector<256x1xi1>
    %c-1_i32_88 = arith.constant -1 : i32
    %178 = vector.broadcast %c-1_i32_88 : i32 to vector<256x1xi32>
    %179 = arith.addi %20, %178 : vector<256x1xi32>
    %c0_i32_89 = arith.constant 0 : i32
    %180 = vector.broadcast %c0_i32_89 : i32 to vector<256x1xi32>
    %181 = arith.cmpi sge, %179, %180 : vector<256x1xi32>
    %182 = arith.andi %177, %181 : vector<256x1xi1>
    %c-1_i32_90 = arith.constant -1 : i32
    %183 = vector.broadcast %c-1_i32_90 : i32 to vector<256x1xi32>
    %184 = arith.addi %20, %183 : vector<256x1xi32>
    %c16_i32_91 = arith.constant 16 : i32
    %185 = vector.broadcast %c16_i32_91 : i32 to vector<256x1xi32>
    %186 = arith.cmpi slt, %184, %185 : vector<256x1xi32>
    %187 = arith.andi %182, %186 : vector<256x1xi1>
    %cst_92 = arith.constant 0.000000e+00 : f32
    %188 = vector.shape_cast %187 : vector<256x1xi1> to vector<256x1xi1>
    %189 = vector.broadcast %188 : vector<256x1xi1> to vector<256x4xi1>
    %190 = vector.broadcast %cst_92 : f32 to vector<256x4xf32>
    %191 = arith.select %189, %168, %190 : vector<256x4xi1>, vector<256x4xf32>
    %cst_93 = arith.constant dense<0.000000e+00> : vector<256x4xf32>
    %192 = tpu.matmul %191, %167, %cst_93 {dimension_numbers = #tpu.dot_dimension_numbers<[1], [0], [0], [1], [0, 0, 1, 1], [], []>} : vector<256x4xf32>, vector<4x4xf32>, vector<256x4xf32> -> vector<256x4xf32>
    %193 = arith.addf %165, %192 : vector<256x4xf32>
    %c2_94 = arith.constant 2 : index
    %c1_95 = arith.constant 1 : index
    %c0_96 = arith.constant 0 : index
    %c0_97 = arith.constant 0 : index
    %194 = vector.load %arg3[%c2_94, %c1_95, %c0_96, %c0_97] : memref<3x3x4x4xf32, #tpu.memory_space<vmem>>, vector<1x1x4x4xf32>
    %195 = vector.shape_cast %194 : vector<1x1x4x4xf32> to vector<4x4xf32>
    %c240_i32 = arith.constant 240 : i32
    %196 = tpu.dynamic_rotate %3 by %c240_i32 dim 0 : vector<256x4xf32>, i32 -> vector<256x4xf32>
    %c16_i32_98 = arith.constant 16 : i32
    %197 = vector.broadcast %c16_i32_98 : i32 to vector<256x1xi32>
    %198 = arith.addi %4, %197 : vector<256x1xi32>
    %c0_i32_99 = arith.constant 0 : i32
    %199 = vector.broadcast %c0_i32_99 : i32 to vector<256x1xi32>
    %200 = arith.cmpi sge, %198, %199 : vector<256x1xi32>
    %c16_i32_100 = arith.constant 16 : i32
    %201 = vector.broadcast %c16_i32_100 : i32 to vector<256x1xi32>
    %202 = arith.addi %4, %201 : vector<256x1xi32>
    %c256_i32_101 = arith.constant 256 : i32
    %203 = vector.broadcast %c256_i32_101 : i32 to vector<256x1xi32>
    %204 = arith.cmpi slt, %202, %203 : vector<256x1xi32>
    %205 = arith.andi %200, %204 : vector<256x1xi1>
    %c0_i32_102 = arith.constant 0 : i32
    %206 = vector.broadcast %c0_i32_102 : i32 to vector<256x1xi32>
    %207 = arith.addi %20, %206 : vector<256x1xi32>
    %c0_i32_103 = arith.constant 0 : i32
    %208 = vector.broadcast %c0_i32_103 : i32 to vector<256x1xi32>
    %209 = arith.cmpi sge, %207, %208 : vector<256x1xi32>
    %210 = arith.andi %205, %209 : vector<256x1xi1>
    %c0_i32_104 = arith.constant 0 : i32
    %211 = vector.broadcast %c0_i32_104 : i32 to vector<256x1xi32>
    %212 = arith.addi %20, %211 : vector<256x1xi32>
    %c16_i32_105 = arith.constant 16 : i32
    %213 = vector.broadcast %c16_i32_105 : i32 to vector<256x1xi32>
    %214 = arith.cmpi slt, %212, %213 : vector<256x1xi32>
    %215 = arith.andi %210, %214 : vector<256x1xi1>
    %cst_106 = arith.constant 0.000000e+00 : f32
    %216 = vector.shape_cast %215 : vector<256x1xi1> to vector<256x1xi1>
    %217 = vector.broadcast %216 : vector<256x1xi1> to vector<256x4xi1>
    %218 = vector.broadcast %cst_106 : f32 to vector<256x4xf32>
    %219 = arith.select %217, %196, %218 : vector<256x4xi1>, vector<256x4xf32>
    %cst_107 = arith.constant dense<0.000000e+00> : vector<256x4xf32>
    %220 = tpu.matmul %219, %195, %cst_107 {dimension_numbers = #tpu.dot_dimension_numbers<[1], [0], [0], [1], [0, 0, 1, 1], [], []>} : vector<256x4xf32>, vector<4x4xf32>, vector<256x4xf32> -> vector<256x4xf32>
    %221 = arith.addf %193, %220 : vector<256x4xf32>
    %c2_108 = arith.constant 2 : index
    %c2_109 = arith.constant 2 : index
    %c0_110 = arith.constant 0 : index
    %c0_111 = arith.constant 0 : index
    %222 = vector.load %arg3[%c2_108, %c2_109, %c0_110, %c0_111] : memref<3x3x4x4xf32, #tpu.memory_space<vmem>>, vector<1x1x4x4xf32>
    %223 = vector.shape_cast %222 : vector<1x1x4x4xf32> to vector<4x4xf32>
    %c239_i32 = arith.constant 239 : i32
    %224 = tpu.dynamic_rotate %3 by %c239_i32 dim 0 : vector<256x4xf32>, i32 -> vector<256x4xf32>
    %c16_i32_112 = arith.constant 16 : i32
    %225 = vector.broadcast %c16_i32_112 : i32 to vector<256x1xi32>
    %226 = arith.addi %4, %225 : vector<256x1xi32>
    %c0_i32_113 = arith.constant 0 : i32
    %227 = vector.broadcast %c0_i32_113 : i32 to vector<256x1xi32>
    %228 = arith.cmpi sge, %226, %227 : vector<256x1xi32>
    %c16_i32_114 = arith.constant 16 : i32
    %229 = vector.broadcast %c16_i32_114 : i32 to vector<256x1xi32>
    %230 = arith.addi %4, %229 : vector<256x1xi32>
    %c256_i32_115 = arith.constant 256 : i32
    %231 = vector.broadcast %c256_i32_115 : i32 to vector<256x1xi32>
    %232 = arith.cmpi slt, %230, %231 : vector<256x1xi32>
    %233 = arith.andi %228, %232 : vector<256x1xi1>
    %c1_i32_116 = arith.constant 1 : i32
    %234 = vector.broadcast %c1_i32_116 : i32 to vector<256x1xi32>
    %235 = arith.addi %20, %234 : vector<256x1xi32>
    %c0_i32_117 = arith.constant 0 : i32
    %236 = vector.broadcast %c0_i32_117 : i32 to vector<256x1xi32>
    %237 = arith.cmpi sge, %235, %236 : vector<256x1xi32>
    %238 = arith.andi %233, %237 : vector<256x1xi1>
    %c1_i32_118 = arith.constant 1 : i32
    %239 = vector.broadcast %c1_i32_118 : i32 to vector<256x1xi32>
    %240 = arith.addi %20, %239 : vector<256x1xi32>
    %c16_i32_119 = arith.constant 16 : i32
    %241 = vector.broadcast %c16_i32_119 : i32 to vector<256x1xi32>
    %242 = arith.cmpi slt, %240, %241 : vector<256x1xi32>
    %243 = arith.andi %238, %242 : vector<256x1xi1>
    %cst_120 = arith.constant 0.000000e+00 : f32
    %244 = vector.shape_cast %243 : vector<256x1xi1> to vector<256x1xi1>
    %245 = vector.broadcast %244 : vector<256x1xi1> to vector<256x4xi1>
    %246 = vector.broadcast %cst_120 : f32 to vector<256x4xf32>
    %247 = arith.select %245, %224, %246 : vector<256x4xi1>, vector<256x4xf32>
    %cst_121 = arith.constant dense<0.000000e+00> : vector<256x4xf32>
    %248 = tpu.matmul %247, %223, %cst_121 {dimension_numbers = #tpu.dot_dimension_numbers<[1], [0], [0], [1], [0, 0, 1, 1], [], []>} : vector<256x4xf32>, vector<4x4xf32>, vector<256x4xf32> -> vector<256x4xf32>
    %249 = arith.addf %221, %248 : vector<256x4xf32>
    %c0_122 = arith.constant 0 : index
    %c0_123 = arith.constant 0 : index
    %250 = vector.load %arg4[%c0_122, %c0_123] : memref<1x4xf32, #tpu.memory_space<vmem>>, vector<1x4xf32>
    %251 = vector.broadcast %250 : vector<1x4xf32> to vector<256x4xf32>
    %252 = arith.mulf %249, %251 : vector<256x4xf32>
    %c0_124 = arith.constant 0 : index
    %c0_125 = arith.constant 0 : index
    %253 = vector.load %arg5[%c0_124, %c0_125] : memref<1x4xf32, #tpu.memory_space<vmem>>, vector<1x4xf32>
    %254 = vector.broadcast %253 : vector<1x4xf32> to vector<256x4xf32>
    %255 = arith.addf %252, %254 : vector<256x4xf32>
    %cst_126 = arith.constant 0.000000e+00 : f32
    %256 = vector.broadcast %cst_126 : f32 to vector<256x4xf32>
    %257 = arith.subf %256, %255 : vector<256x4xf32>
    %258 = math.exp %257 : vector<256x4xf32>
    %cst_127 = arith.constant 1.000000e+00 : f32
    %259 = vector.broadcast %cst_127 : f32 to vector<256x4xf32>
    %260 = arith.addf %259, %258 : vector<256x4xf32>
    %261 = tpu.reciprocal %260 : vector<256x4xf32> -> vector<256x4xf32>
    %262 = arith.mulf %255, %261 : vector<256x4xf32>
    %c0_128 = arith.constant 0 : index
    %c0_129 = arith.constant 0 : index
    %c0_130 = arith.constant 0 : index
    %263 = vector.load %arg6[%c0_128, %c0_129, %c0_130] : memref<1x256x4xf32, #tpu.memory_space<vmem>>, vector<1x256x4xf32>
    %264 = vector.shape_cast %263 : vector<1x256x4xf32> to vector<256x4xf32>
    %265 = vector.shape_cast %262 : vector<256x4xf32> to vector<1x256x4xf32>
    tpu.vector_store %arg6[%c0_128, %c0_129, %c0_130], %265 {strides = array<i32>} : memref<1x256x4xf32, #tpu.memory_space<vmem>>, vector<1x256x4xf32>,
    return
  }
  func.func @transform_0(%arg0: i32) -> (i32, i32, i32) {
    %c0_i32 = arith.constant 0 : i32
    %c0_i32_0 = arith.constant 0 : i32
    %c0_i32_1 = arith.constant 0 : i32
    return %arg0, %c0_i32, %c0_i32_0 : i32, i32, i32
  }
  func.func @transform_1(%arg0: i32) -> (i32, i32) {
    %c0_i32 = arith.constant 0 : i32
    %c0_i32_0 = arith.constant 0 : i32
    %c0_i32_1 = arith.constant 0 : i32
    return %c0_i32, %c0_i32_0 : i32, i32
  }
  func.func @transform_2(%arg0: i32) -> (i32, i32, i32, i32) {
    %c0_i32 = arith.constant 0 : i32
    %c0_i32_0 = arith.constant 0 : i32
    %c0_i32_1 = arith.constant 0 : i32
    %c0_i32_2 = arith.constant 0 : i32
    %c0_i32_3 = arith.constant 0 : i32
    return %c0_i32, %c0_i32_0, %c0_i32_1, %c0_i32_2 : i32, i32, i32, i32
  }
  func.func @transform_3(%arg0: i32) -> (i32, i32) {
    %c0_i32 = arith.constant 0 : i32
    %c0_i32_0 = arith.constant 0 : i32
    %c0_i32_1 = arith.constant 0 : i32
    return %c0_i32, %c0_i32_0 : i32, i32
  }
  func.func @transform_4(%arg0: i32) -> (i32, i32) {
    %c0_i32 = arith.constant 0 : i32
    %c0_i32_0 = arith.constant 0 : i32
    %c0_i32_1 = arith.constant 0 : i32
    return %c0_i32, %c0_i32_0 : i32, i32
  }
  func.func @transform_5(%arg0: i32) -> (i32, i32, i32) {
    %c0_i32 = arith.constant 0 : i32
    %c0_i32_0 = arith.constant 0 : i32
    %c0_i32_1 = arith.constant 0 : i32
    return %arg0, %c0_i32, %c0_i32_0 : i32, i32, i32
  }
}

</mosaic_0001>

<bundles_post_ra>
// kernel: csp_block_forward.3
= control target key start
LH: loop header
LB: loop body
LE: loop exit
PB: predicated region body
PF: predicated region fallthrough
CT: control target
= control target key end

     0   :  { %vm346_vm0 = vcmask 1043456   ;;  %vm153_vm1 = vcmask 31744   ;;  %vm1841_vm2 = vcmask 64512   ;;  %s3988_s3 = inlined_call_operand.vmem [shape: f32[4,8], index: 3, kind: input, shape index: {}]   ;;  %s3989_s2 = inlined_call_operand.vmem [shape: f32[4,8], index: 2, kind: input, shape index: {}]   ;;  %s3990_s1 = inlined_call_operand.vmem [shape: f32[512,4], index: 1, kind: input, shape index: {}]   ;;  %s3991_s0 = inlined_call_operand.vmem [shape: f32[512,4], index: 0, kind: input, shape index: {}]   ;;  %s3992_s4 = inlined_call_operand.vmem [shape: f32[1,8], index: 4, kind: input, shape index: {}]   ;;  %s3993_s5 = inlined_call_operand.vmem [shape: f32[1,8], index: 5, kind: input, shape index: {}]   ;;  %s3994_s6 = inlined_call_operand.vmem [shape: f32[512,8], index: 6, kind: output, shape index: {}]  }
   0x1   :  { %v152_v0 = vld [vmem:[%s3988_s3] sm:$0xf]  ;;  %v89_v4 = vld [vmem:[%s3990_s1 + $0x8] sm:$0xff]  ;;  %v90_v6 = vld [vmem:[%s3990_s1 + $0x10] sm:$0xff] }
   0x2   :  { %v87_v1 = vld [vmem:[%s3989_s2] sm:$0xf]  ;;  %2172 = vmatprep.subr.msk.mxu1 %vm346_vm0, %v152_v0  ;;  %v24_v5 = vld [vmem:[%s3991_s0 + $0x8] sm:$0xff]  ;;  %v25_v7 = vld [vmem:[%s3991_s0 + $0x10] sm:$0xff] }
   0x3   :  { %v88_v2 = vld [vmem:[%s3990_s1] sm:$0xff]  ;;  %2270 = vmatprep.subr.msk.mxu0 %vm346_vm0, %v87_v1  ;;  %2173 = vmatpush3.msk.msra.mxu1 %vm346_vm0, %v152_v0  ;;  %v91_v8 = vld [vmem:[%s3990_s1 + $0x18] sm:$0xff]  ;;  %v93_v12 = vld [vmem:[%s3990_s1 + $0x28] sm:$0xff] }
   0x4   :  { %v23_v3 = vld [vmem:[%s3991_s0] sm:$0xff]  ;;  %2174 = vmatprep.mubr.msk.f32.mxu1 %vm153_vm1, %v88_v2  ;;  %2271 = vmatpush3.msk.msra.mxu0 %vm346_vm0, %v87_v1  ;;  %v26_v9 = vld [vmem:[%s3991_s0 + $0x18] sm:$0xff]  ;;  %v28_v13 = vld [vmem:[%s3991_s0 + $0x28] sm:$0xff] }
   0x5   :  { %2272 = vmatprep.mubr.msk.f32.mxu0 %vm153_vm1, %v23_v3  ;;  %2175 = vmatmul.mubr.msk.f32.vlgmr.msra.gmra.mrb[0].mxu1 %vm153_vm1, %v89_v4  ;;  %v92_v10 = vld [vmem:[%s3990_s1 + $0x20] sm:$0xff]  ;;  %v94_v14 = vld [vmem:[%s3990_s1 + $0x30] sm:$0xff]  ;;  %v95_v16 = vld [vmem:[%s3990_s1 + $0x38] sm:$0xff] }
   0x6   :  { %2273 = vmatmul.mubr.msk.f32.vlgmr.msra.gmra.mrb[0].mxu0 %vm153_vm1, %v24_v5  ;;  %2177 = vmatprep.mubr.msk.f32.mxu1 %vm153_vm1, %v90_v6  ;;  %v27_v11 = vld [vmem:[%s3991_s0 + $0x20] sm:$0xff]  ;;  %v29_v15 = vld [vmem:[%s3991_s0 + $0x30] sm:$0xff]  ;;  %v30_v17 = vld [vmem:[%s3991_s0 + $0x38] sm:$0xff] }
   0x7   :  { %2275 = vmatprep.mubr.msk.f32.mxu0 %vm153_vm1, %v25_v7  ;;  %v96_v18 = vld [vmem:[%s3990_s1 + $0x40] sm:$0xff]  ;;  %v97_v20 = vld [vmem:[%s3990_s1 + $0x48] sm:$0xff]  ;;  %v98_v22 = vld [vmem:[%s3990_s1 + $0x50] sm:$0xff] }
   0x8   :  { %v31_v19 = vld [vmem:[%s3991_s0 + $0x40] sm:$0xff]  ;;  %v32_v21 = vld [vmem:[%s3991_s0 + $0x48] sm:$0xff]  ;;  %v33_v23 = vld [vmem:[%s3991_s0 + $0x50] sm:$0xff] }
   0x9   :  { %2178 = vmatmul.mubr.msk.f32.gmra.mrb[2].mxu1 %vm153_vm1, %v91_v8  ;;  %v99_v24 = vld [vmem:[%s3990_s1 + $0x58] sm:$0xff]  ;;  %v100_v26 = vld [vmem:[%s3990_s1 + $0x60] sm:$0xff]  ;;  %v101_v28 = vld [vmem:[%s3990_s1 + $0x68] sm:$0xff] }
   0xa   :  { %2276 = vmatmul.mubr.msk.f32.gmra.mrb[2].mxu0 %vm153_vm1, %v26_v9  ;;  %2180 = vmatprep.mubr.msk.f32.mxu1 %vm153_vm1, %v92_v10  ;;  %v34_v25 = vld [vmem:[%s3991_s0 + $0x58] sm:$0xff]  ;;  %v35_v27 = vld [vmem:[%s3991_s0 + $0x60] sm:$0xff]  ;;  %v36_v29 = vld [vmem:[%s3991_s0 + $0x68] sm:$0xff] }
   0xb   :  { %2278 = vmatprep.mubr.msk.f32.mxu0 %vm153_vm1, %v27_v11  ;;  %v102_v30 = vld [vmem:[%s3990_s1 + $0x70] sm:$0xff]  ;;  %v103_v32 = vld [vmem:[%s3990_s1 + $0x78] sm:$0xff]  ;;  %v104_v34 = vld [vmem:[%s3990_s1 + $0x80] sm:$0xff] }
   0xc   :  { %v37_v31 = vld [vmem:[%s3991_s0 + $0x70] sm:$0xff]  ;;  %v38_v33 = vld [vmem:[%s3991_s0 + $0x78] sm:$0xff]  ;;  %v39_v35 = vld [vmem:[%s3991_s0 + $0x80] sm:$0xff] }
   0xd   :  { %2181 = vmatmul.mubr.msk.f32.gmra.mrb[4].mxu1 %vm153_vm1, %v93_v12  ;;  %v105_v36 = vld [vmem:[%s3990_s1 + $0x88] sm:$0xff]  ;;  %v106_v38 = vld [vmem:[%s3990_s1 + $0x90] sm:$0xff]  ;;  %v107_v40 = vld [vmem:[%s3990_s1 + $0x98] sm:$0xff] }
   0xe   :  { %2279 = vmatmul.mubr.msk.f32.gmra.mrb[4].mxu0 %vm153_vm1, %v28_v13  ;;  %2183 = vmatprep.mubr.msk.f32.mxu1 %vm153_vm1, %v94_v14  ;;  %v40_v37 = vld [vmem:[%s3991_s0 + $0x88] sm:$0xff]  ;;  %v41_v39 = vld [vmem:[%s3991_s0 + $0x90] sm:$0xff]  ;;  %v42_v41 = vld [vmem:[%s3991_s0 + $0x98] sm:$0xff] }
   0xf   :  { %2281 = vmatprep.mubr.msk.f32.mxu0 %vm153_vm1, %v29_v15  ;;  %v108_v42 = vld [vmem:[%s3990_s1 + $0xa0] sm:$0xff]  ;;  %v109_v44 = vld [vmem:[%s3990_s1 + $0xa8] sm:$0xff]  ;;  %v110_v46 = vld [vmem:[%s3990_s1 + $0xb0] sm:$0xff] }
  0x10   :  { %v43_v43 = vld [vmem:[%s3991_s0 + $0xa0] sm:$0xff]  ;;  %v44_v45 = vld [vmem:[%s3991_s0 + $0xa8] sm:$0xff]  ;;  %v45_v47 = vld [vmem:[%s3991_s0 + $0xb0] sm:$0xff] }
  0x11   :  { %2184 = vmatmul.mubr.msk.f32.gmra.mrb[6].mxu1 %vm153_vm1, %v95_v16  ;;  %v111_v48 = vld [vmem:[%s3990_s1 + $0xb8] sm:$0xff]  ;;  %v112_v50 = vld [vmem:[%s3990_s1 + $0xc0] sm:$0xff]  ;;  %v113_v52 = vld [vmem:[%s3990_s1 + $0xc8] sm:$0xff] }
  0x12   :  { %2282 = vmatmul.mubr.msk.f32.gmra.mrb[6].mxu0 %vm153_vm1, %v30_v17  ;;  %2186 = vmatprep.mubr.msk.f32.mxu1 %vm153_vm1, %v96_v18  ;;  %v46_v49 = vld [vmem:[%s3991_s0 + $0xb8] sm:$0xff]  ;;  %v47_v51 = vld [vmem:[%s3991_s0 + $0xc0] sm:$0xff]  ;;  %v48_v53 = vld [vmem:[%s3991_s0 + $0xc8] sm:$0xff] }
  0x13   :  { %2284 = vmatprep.mubr.msk.f32.mxu0 %vm153_vm1, %v31_v19  ;;  %v114_v54 = vld [vmem:[%s3990_s1 + $0xd0] sm:$0xff]  ;;  %v115_v56 = vld [vmem:[%s3990_s1 + $0xd8] sm:$0xff]  ;;  %v116_v58 = vld [vmem:[%s3990_s1 + $0xe0] sm:$0xff] }
  0x14   :  { %v49_v55 = vld [vmem:[%s3991_s0 + $0xd0] sm:$0xff]  ;;  %v50_v57 = vld [vmem:[%s3991_s0 + $0xd8] sm:$0xff]  ;;  %v51_v59 = vld [vmem:[%s3991_s0 + $0xe0] sm:$0xff] }
  0x15   :  { %2187 = vmatmul.mubr.msk.f32.gmra.mrb[8].mxu1 %vm153_vm1, %v97_v20  ;;  %v117_v60 = vld [vmem:[%s3990_s1 + $0xe8] sm:$0xff]  ;;  %v118_v62 = vld [vmem:[%s3990_s1 + $0xf0] sm:$0xff]  ;;  %v119_v0 = vld [vmem:[%s3990_s1 + $0xf8] sm:$0xff] }
  0x16   :  { %2285 = vmatmul.mubr.msk.f32.gmra.mrb[8].mxu0 %vm153_vm1, %v32_v21  ;;  %2189 = vmatprep.mubr.msk.f32.mxu1 %vm153_vm1, %v98_v22  ;;  %v52_v61 = vld [vmem:[%s3991_s0 + $0xe8] sm:$0xff]  ;;  %v53_v63 = vld [vmem:[%s3991_s0 + $0xf0] sm:$0xff]  ;;  %v54_v1 = vld [vmem:[%s3991_s0 + $0xf8] sm:$0xff] }
  0x17   :  { %2287 = vmatprep.mubr.msk.f32.mxu0 %vm153_vm1, %v33_v23  ;;  %v120_v2 = vld [vmem:[%s3990_s1 + $0x100] sm:$0xff]  ;;  %v121_v4 = vld [vmem:[%s3990_s1 + $0x108] sm:$0xff]  ;;  %v122_v6 = vld [vmem:[%s3990_s1 + $0x110] sm:$0xff] }
  0x18   :  { %v55_v3 = vld [vmem:[%s3991_s0 + $0x100] sm:$0xff]  ;;  %v56_v5 = vld [vmem:[%s3991_s0 + $0x108] sm:$0xff]  ;;  %v57_v7 = vld [vmem:[%s3991_s0 + $0x110] sm:$0xff] }
  0x19   :  { %2190 = vmatmul.mubr.msk.f32.gmra.mrb[10].mxu1 %vm153_vm1, %v99_v24  ;;  %v123_v8 = vld [vmem:[%s3990_s1 + $0x118] sm:$0xff]  ;;  %v124_v10 = vld [vmem:[%s3990_s1 + $0x120] sm:$0xff]  ;;  %v125_v12 = vld [vmem:[%s3990_s1 + $0x128] sm:$0xff] }
  0x1a   :  { %2288 = vmatmul.mubr.msk.f32.gmra.mrb[10].mxu0 %vm153_vm1, %v34_v25  ;;  %2192 = vmatprep.mubr.msk.f32.mxu1 %vm153_vm1, %v100_v26  ;;  %v58_v9 = vld [vmem:[%s3991_s0 + $0x118] sm:$0xff]  ;;  %v59_v11 = vld [vmem:[%s3991_s0 + $0x120] sm:$0xff]  ;;  %v60_v13 = vld [vmem:[%s3991_s0 + $0x128] sm:$0xff] }
  0x1b   :  { %2290 = vmatprep.mubr.msk.f32.mxu0 %vm153_vm1, %v35_v27  ;;  %v126_v14 = vld [vmem:[%s3990_s1 + $0x130] sm:$0xff]  ;;  %v127_v16 = vld [vmem:[%s3990_s1 + $0x138] sm:$0xff]  ;;  %v128_v18 = vld [vmem:[%s3990_s1 + $0x140] sm:$0xff] }
  0x1c   :  { %v61_v15 = vld [vmem:[%s3991_s0 + $0x130] sm:$0xff]  ;;  %v62_v17 = vld [vmem:[%s3991_s0 + $0x138] sm:$0xff]  ;;  %v63_v19 = vld [vmem:[%s3991_s0 + $0x140] sm:$0xff] }
  0x1d   :  { %2193 = vmatmul.mubr.msk.f32.gmra.mrb[12].mxu1 %vm153_vm1, %v101_v28  ;;  %v129_v20 = vld [vmem:[%s3990_s1 + $0x148] sm:$0xff]  ;;  %v130_v22 = vld [vmem:[%s3990_s1 + $0x150] sm:$0xff]  ;;  %v131_v24 = vld [vmem:[%s3990_s1 + $0x158] sm:$0xff] }
  0x1e   :  { %2291 = vmatmul.mubr.msk.f32.gmra.mrb[12].mxu0 %vm153_vm1, %v36_v29  ;;  %2195 = vmatprep.mubr.msk.f32.mxu1 %vm153_vm1, %v102_v30  ;;  %v64_v21 = vld [vmem:[%s3991_s0 + $0x148] sm:$0xff]  ;;  %v65_v23 = vld [vmem:[%s3991_s0 + $0x150] sm:$0xff]  ;;  %v66_v25 = vld [vmem:[%s3991_s0 + $0x158] sm:$0xff] }
  0x1f   :  { %2293 = vmatprep.mubr.msk.f32.mxu0 %vm153_vm1, %v37_v31  ;;  %v132_v26 = vld [vmem:[%s3990_s1 + $0x160] sm:$0xff]  ;;  %v133_v28 = vld [vmem:[%s3990_s1 + $0x168] sm:$0xff]  ;;  %v134_v30 = vld [vmem:[%s3990_s1 + $0x170] sm:$0xff] }
  0x20   :  { %v67_v27 = vld [vmem:[%s3991_s0 + $0x160] sm:$0xff]  ;;  %v68_v29 = vld [vmem:[%s3991_s0 + $0x168] sm:$0xff]  ;;  %v69_v31 = vld [vmem:[%s3991_s0 + $0x170] sm:$0xff] }
  0x21   :  { %2196 = vmatmul.mubr.msk.f32.gmra.mrb[14].mxu1 %vm153_vm1, %v103_v32  ;;  %v135_v32 = vld [vmem:[%s3990_s1 + $0x178] sm:$0xff] }
  0x22   :  { %2294 = vmatmul.mubr.msk.f32.gmra.mrb[14].mxu0 %vm153_vm1, %v38_v33  ;;  %2198 = vmatprep.mubr.msk.f32.mxu1 %vm153_vm1, %v104_v34  ;;  %v70_v33 = vld [vmem:[%s3991_s0 + $0x178] sm:$0xff]  ;;  %v136_v34 = vld [vmem:[%s3990_s1 + $0x180] sm:$0xff] }
  0x23   :  { %2296 = vmatprep.mubr.msk.f32.mxu0 %vm153_vm1, %v39_v35  ;;  %v71_v35 = vld [vmem:[%s3991_s0 + $0x180] sm:$0xff] }
  0x25   :  { %2199 = vmatmul.mubr.msk.f32.gmra.mrb[16].mxu1 %vm153_vm1, %v105_v36  ;;  %v137_v36 = vld [vmem:[%s3990_s1 + $0x188] sm:$0xff] }
  0x26   :  { %2297 = vmatmul.mubr.msk.f32.gmra.mrb[16].mxu0 %vm153_vm1, %v40_v37  ;;  %2201 = vmatprep.mubr.msk.f32.mxu1 %vm153_vm1, %v106_v38  ;;  %v72_v37 = vld [vmem:[%s3991_s0 + $0x188] sm:$0xff]  ;;  %v138_v38 = vld [vmem:[%s3990_s1 + $0x190] sm:$0xff] }
  0x27   :  { %2299 = vmatprep.mubr.msk.f32.mxu0 %vm153_vm1, %v41_v39  ;;  %v73_v39 = vld [vmem:[%s3991_s0 + $0x190] sm:$0xff] }
  0x29   :  { %2202 = vmatmul.mubr.msk.f32.gmra.mrb[18].mxu1 %vm153_vm1, %v107_v40  ;;  %v139_v40 = vld [vmem:[%s3990_s1 + $0x198] sm:$0xff] }
  0x2a   :  { %2300 = vmatmul.mubr.msk.f32.gmra.mrb[18].mxu0 %vm153_vm1, %v42_v41  ;;  %2204 = vmatprep.mubr.msk.f32.mxu1 %vm153_vm1, %v108_v42  ;;  %v74_v41 = vld [vmem:[%s3991_s0 + $0x198] sm:$0xff]  ;;  %v140_v42 = vld [vmem:[%s3990_s1 + $0x1a0] sm:$0xff] }
  0x2b   :  { %2302 = vmatprep.mubr.msk.f32.mxu0 %vm153_vm1, %v43_v43  ;;  %v75_v43 = vld [vmem:[%s3991_s0 + $0x1a0] sm:$0xff] }
  0x2d   :  { %2205 = vmatmul.mubr.msk.f32.gmra.mrb[20].mxu1 %vm153_vm1, %v109_v44  ;;  %v141_v44 = vld [vmem:[%s3990_s1 + $0x1a8] sm:$0xff] }
  0x2e   :  { %2303 = vmatmul.mubr.msk.f32.gmra.mrb[20].mxu0 %vm153_vm1, %v44_v45  ;;  %2207 = vmatprep.mubr.msk.f32.mxu1 %vm153_vm1, %v110_v46  ;;  %v76_v45 = vld [vmem:[%s3991_s0 + $0x1a8] sm:$0xff]  ;;  %v142_v46 = vld [vmem:[%s3990_s1 + $0x1b0] sm:$0xff] }
  0x2f   :  { %2305 = vmatprep.mubr.msk.f32.mxu0 %vm153_vm1, %v45_v47  ;;  %v77_v47 = vld [vmem:[%s3991_s0 + $0x1b0] sm:$0xff] }
  0x31   :  { %2208 = vmatmul.mubr.msk.f32.gmra.mrb[22].mxu1 %vm153_vm1, %v111_v48  ;;  %v143_v48 = vld [vmem:[%s3990_s1 + $0x1b8] sm:$0xff] }
  0x32   :  { %2306 = vmatmul.mubr.msk.f32.gmra.mrb[22].mxu0 %vm153_vm1, %v46_v49  ;;  %2210 = vmatprep.mubr.msk.f32.mxu1 %vm153_vm1, %v112_v50  ;;  %v78_v49 = vld [vmem:[%s3991_s0 + $0x1b8] sm:$0xff]  ;;  %v144_v50 = vld [vmem:[%s3990_s1 + $0x1c0] sm:$0xff] }
  0x33   :  { %2308 = vmatprep.mubr.msk.f32.mxu0 %vm153_vm1, %v47_v51  ;;  %v79_v51 = vld [vmem:[%s3991_s0 + $0x1c0] sm:$0xff] }
  0x35   :  { %2211 = vmatmul.mubr.msk.f32.gmra.mrb[24].mxu1 %vm153_vm1, %v113_v52  ;;  %v145_v52 = vld [vmem:[%s3990_s1 + $0x1c8] sm:$0xff] }
  0x36   :  { %2309 = vmatmul.mubr.msk.f32.gmra.mrb[24].mxu0 %vm153_vm1, %v48_v53  ;;  %2213 = vmatprep.mubr.msk.f32.mxu1 %vm153_vm1, %v114_v54  ;;  %v80_v53 = vld [vmem:[%s3991_s0 + $0x1c8] sm:$0xff]  ;;  %v146_v54 = vld [vmem:[%s3990_s1 + $0x1d0] sm:$0xff] }
  0x37   :  { %2311 = vmatprep.mubr.msk.f32.mxu0 %vm153_vm1, %v49_v55  ;;  %v81_v55 = vld [vmem:[%s3991_s0 + $0x1d0] sm:$0xff] }
  0x39   :  { %2214 = vmatmul.mubr.msk.f32.gmra.mrb[26].mxu1 %vm153_vm1, %v115_v56  ;;  %v147_v56 = vld [vmem:[%s3990_s1 + $0x1d8] sm:$0xff] }
  0x3a   :  { %2312 = vmatmul.mubr.msk.f32.gmra.mrb[26].mxu0 %vm153_vm1, %v50_v57  ;;  %2216 = vmatprep.mubr.msk.f32.mxu1 %vm153_vm1, %v116_v58  ;;  %v82_v57 = vld [vmem:[%s3991_s0 + $0x1d8] sm:$0xff]  ;;  %v148_v58 = vld [vmem:[%s3990_s1 + $0x1e0] sm:$0xff] }
  0x3b   :  { %2314 = vmatprep.mubr.msk.f32.mxu0 %vm153_vm1, %v51_v59  ;;  %v83_v59 = vld [vmem:[%s3991_s0 + $0x1e0] sm:$0xff] }
  0x3d   :  { %2217 = vmatmul.mubr.msk.f32.gmra.mrb[28].mxu1 %vm153_vm1, %v117_v60  ;;  %v149_v60 = vld [vmem:[%s3990_s1 + $0x1e8] sm:$0xff] }
  0x3e   :  { %2315 = vmatmul.mubr.msk.f32.gmra.mrb[28].mxu0 %vm153_vm1, %v52_v61  ;;  %2219 = vmatprep.mubr.msk.f32.mxu1 %vm153_vm1, %v118_v62  ;;  %v84_v61 = vld [vmem:[%s3991_s0 + $0x1e8] sm:$0xff]  ;;  %v150_v62 = vld [vmem:[%s3990_s1 + $0x1f0] sm:$0xff] }
  0x3f   :  { %2317 = vmatprep.mubr.msk.f32.mxu0 %vm153_vm1, %v53_v63  ;;  %v85_v63 = vld [vmem:[%s3991_s0 + $0x1f0] sm:$0xff] }
  0x41   :  { %2220 = vmatmul.mubr.msk.f32.gmra.mrb[30].mxu1 %vm153_vm1, %v119_v0  ;;  %v151_v0 = vld [vmem:[%s3990_s1 + $0x1f8] sm:$0xff] }
  0x42   :  { %2318 = vmatmul.mubr.msk.f32.gmra.mrb[30].mxu0 %vm153_vm1, %v54_v1  ;;  %2222 = vmatprep.mubr.msk.f32.mxu1 %vm153_vm1, %v120_v2  ;;  %v86_v1 = vld [vmem:[%s3991_s0 + $0x1f8] sm:$0xff] }
  0x43   :  { %2320 = vmatprep.mubr.msk.f32.mxu0 %vm153_vm1, %v55_v3 }
  0x45   :  { %2223 = vmatmul.mubr.msk.f32.gmra.mrb[32].mxu1 %vm153_vm1, %v121_v4  ;;  %v3250_v4 = vld [vmem:[%s3992_s4] ss:$0 sm:$0xff] }
  0x46   :  { %2321 = vmatmul.mubr.msk.f32.gmra.mrb[32].mxu0 %vm153_vm1, %v56_v5  ;;  %2225 = vmatprep.mubr.msk.f32.mxu1 %vm153_vm1, %v122_v6 }
  0x47   :  { %2323 = vmatprep.mubr.msk.f32.mxu0 %vm153_vm1, %v57_v7 }
  0x49   :  { %2226 = vmatmul.mubr.msk.f32.gmra.mrb[34].mxu1 %vm153_vm1, %v123_v8  ;;  %v3255_v8 = vld [vmem:[%s3993_s5] ss:$0 sm:$0xff] }
  0x4a   :  { %2324 = vmatmul.mubr.msk.f32.gmra.mrb[34].mxu0 %vm153_vm1, %v58_v9  ;;  %2228 = vmatprep.mubr.msk.f32.mxu1 %vm153_vm1, %v124_v10 }
  0x4b   :  { %2326 = vmatprep.mubr.msk.f32.mxu0 %vm153_vm1, %v59_v11 }
  0x4d   :  { %2229 = vmatmul.mubr.msk.f32.gmra.mrb[36].mxu1 %vm153_vm1, %v125_v12 }
  0x4e   :  { %2327 = vmatmul.mubr.msk.f32.gmra.mrb[36].mxu0 %vm153_vm1, %v60_v13  ;;  %2231 = vmatprep.mubr.msk.f32.mxu1 %vm153_vm1, %v126_v14 }
  0x4f   :  { %2329 = vmatprep.mubr.msk.f32.mxu0 %vm153_vm1, %v61_v15 }
  0x51   :  { %2232 = vmatmul.mubr.msk.f32.gmra.mrb[38].mxu1 %vm153_vm1, %v127_v16 }
  0x52   :  { %2330 = vmatmul.mubr.msk.f32.gmra.mrb[38].mxu0 %vm153_vm1, %v62_v17  ;;  %2234 = vmatprep.mubr.msk.f32.mxu1 %vm153_vm1, %v128_v18 }
  0x53   :  { %2332 = vmatprep.mubr.msk.f32.mxu0 %vm153_vm1, %v63_v19 }
  0x55   :  { %2235 = vmatmul.mubr.msk.f32.gmra.mrb[40].mxu1 %vm153_vm1, %v129_v20 }
  0x56   :  { %2333 = vmatmul.mubr.msk.f32.gmra.mrb[40].mxu0 %vm153_vm1, %v64_v21  ;;  %2237 = vmatprep.mubr.msk.f32.mxu1 %vm153_vm1, %v130_v22 }
  0x57   :  { %2335 = vmatprep.mubr.msk.f32.mxu0 %vm153_vm1, %v65_v23 }
  0x59   :  { %2238 = vmatmul.mubr.msk.f32.gmra.mrb[42].mxu1 %vm153_vm1, %v131_v24 }
  0x5a   :  { %2336 = vmatmul.mubr.msk.f32.gmra.mrb[42].mxu0 %vm153_vm1, %v66_v25  ;;  %2240 = vmatprep.mubr.msk.f32.mxu1 %vm153_vm1, %v132_v26 }
  0x5b   :  { %2338 = vmatprep.mubr.msk.f32.mxu0 %vm153_vm1, %v67_v27 }
  0x5d   :  { %2241 = vmatmul.mubr.msk.f32.gmra.mrb[44].mxu1 %vm153_vm1, %v133_v28 }
  0x5e   :  { %2339 = vmatmul.mubr.msk.f32.gmra.mrb[44].mxu0 %vm153_vm1, %v68_v29  ;;  %2243 = vmatprep.mubr.msk.f32.mxu1 %vm153_vm1, %v134_v30 }
  0x5f   :  { %2341 = vmatprep.mubr.msk.f32.mxu0 %vm153_vm1, %v69_v31 }
  0x61   :  { %2244 = vmatmul.mubr.msk.f32.gmra.mrb[46].mxu1 %vm153_vm1, %v135_v32 }
  0x62   :  { %2342 = vmatmul.mubr.msk.f32.gmra.mrb[46].mxu0 %vm153_vm1, %v70_v33  ;;  %2246 = vmatprep.mubr.msk.f32.mxu1 %vm153_vm1, %v136_v34 }
  0x63   :  { %2344 = vmatprep.mubr.msk.f32.mxu0 %vm153_vm1, %v71_v35 }
  0x65   :  { %2247 = vmatmul.mubr.msk.f32.gmra.mrb[48].mxu1 %vm153_vm1, %v137_v36 }
  0x66   :  { %2345 = vmatmul.mubr.msk.f32.gmra.mrb[48].mxu0 %vm153_vm1, %v72_v37  ;;  %2249 = vmatprep.mubr.msk.f32.mxu1 %vm153_vm1, %v138_v38 }
  0x67   :  { %2347 = vmatprep.mubr.msk.f32.mxu0 %vm153_vm1, %v73_v39 }
  0x69   :  { %2250 = vmatmul.mubr.msk.f32.gmra.mrb[50].mxu1 %vm153_vm1, %v139_v40 }
  0x6a   :  { %2348 = vmatmul.mubr.msk.f32.gmra.mrb[50].mxu0 %vm153_vm1, %v74_v41  ;;  %2252 = vmatprep.mubr.msk.f32.mxu1 %vm153_vm1, %v140_v42 }
  0x6b   :  { %2350 = vmatprep.mubr.msk.f32.mxu0 %vm153_vm1, %v75_v43 }
  0x6d   :  { %2253 = vmatmul.mubr.msk.f32.gmra.mrb[52].mxu1 %vm153_vm1, %v141_v44 }
  0x6e   :  { %2351 = vmatmul.mubr.msk.f32.gmra.mrb[52].mxu0 %vm153_vm1, %v76_v45  ;;  %2255 = vmatprep.mubr.msk.f32.mxu1 %vm153_vm1, %v142_v46 }
  0x6f   :  { %2353 = vmatprep.mubr.msk.f32.mxu0 %vm153_vm1, %v77_v47 }
  0x71   :  { %2256 = vmatmul.mubr.msk.f32.gmra.mrb[54].mxu1 %vm153_vm1, %v143_v48 }
  0x72   :  { %2354 = vmatmul.mubr.msk.f32.gmra.mrb[54].mxu0 %vm153_vm1, %v78_v49  ;;  %2258 = vmatprep.mubr.msk.f32.mxu1 %vm153_vm1, %v144_v50 }
  0x73   :  { %2356 = vmatprep.mubr.msk.f32.mxu0 %vm153_vm1, %v79_v51 }
  0x75   :  { %2259 = vmatmul.mubr.msk.f32.gmra.mrb[56].mxu1 %vm153_vm1, %v145_v52 }
  0x76   :  { %2357 = vmatmul.mubr.msk.f32.gmra.mrb[56].mxu0 %vm153_vm1, %v80_v53  ;;  %2261 = vmatprep.mubr.msk.f32.mxu1 %vm153_vm1, %v146_v54 }
  0x77   :  { %2359 = vmatprep.mubr.msk.f32.mxu0 %vm153_vm1, %v81_v55 }
  0x79   :  { %2262 = vmatmul.mubr.msk.f32.gmra.mrb[58].mxu1 %vm153_vm1, %v147_v56 }
  0x7a   :  { %2360 = vmatmul.mubr.msk.f32.gmra.mrb[58].mxu0 %vm153_vm1, %v82_v57  ;;  %2264 = vmatprep.mubr.msk.f32.mxu1 %vm153_vm1, %v148_v58 }
  0x7b   :  { %2362 = vmatprep.mubr.msk.f32.mxu0 %vm153_vm1, %v83_v59 }
  0x7d   :  { %2265 = vmatmul.mubr.msk.f32.gmra.mrb[60].mxu1 %vm153_vm1, %v149_v60 }
  0x7e   :  { %2363 = vmatmul.mubr.msk.f32.gmra.mrb[60].mxu0 %vm153_vm1, %v84_v61  ;;  %2267 = vmatprep.mubr.msk.f32.mxu1 %vm153_vm1, %v150_v62 }
  0x7f   :  { %2365 = vmatprep.mubr.msk.f32.mxu0 %vm153_vm1, %v85_v63 }
  0x81   :  { %2268 = vmatmul.mubr.msk.f32.gmra.mrb[62].mxu1 %vm153_vm1, %v151_v0 }
  0x82   :  { %2366 = vmatmul.mubr.msk.f32.gmra.mrb[62].mxu0 %vm153_vm1, %v86_v1 }
  0xd8   :  { %v2176_v2 = vpop.f32.mrb[0].mxu1 }
  0xd9   :  { %v2274_v3 = vpop.f32.mrb[0].mxu0  ;;  %v416_v6 = vpop.f32.mrb[1].mxu1 }
  0xda   :  { %v1002_v5 = vadd.f32 %v2274_v3, %v2176_v2  ;;  %v996_v7 = vpop.f32.mrb[1].mxu0 }
  0xdb   :  { %v997_v9 = vadd.f32 %v996_v7, %v416_v6 }
  0xdc   :  { %v1323_v10 = vmul.f32 %v3250_v4, %v1002_v5  ;;  %v2179_v12 = vpop.f32.mrb[2].mxu1 }
  0xdd   :  { %v1322_v11 = vmul.f32 %v3250_v4, %v997_v9  ;;  %v2277_v13 = vpop.f32.mrb[2].mxu0  ;;  %v426_v16 = vpop.f32.mrb[3].mxu1 }
  0xde   :  { %v3260_v14 = vadd.f32 %v3255_v8, %v1323_v10  ;;  %v1012_v15 = vadd.f32 %v2277_v13, %v2179_v12  ;;  %v1006_v17 = vpop.f32.mrb[3].mxu0 }
  0xdf   :  { %v3263_v18 = vadd.f32 %v3255_v8, %v1322_v11  ;;  %v1007_v19 = vadd.f32 %v1006_v17, %v426_v16 }
  0xe0   :  { %v1458_v20 = vsub.f32 0.0, %v3260_v14  ;;  %v1325_v21 = vmul.f32 %v3250_v4, %v1012_v15  ;;  %v2182_v24 = vpop.f32.mrb[4].mxu1 }
  0xe1   :  { %v1457_v22 = vsub.f32 0.0, %v3263_v18  ;;  %v1324_v23 = vmul.f32 %v3250_v4, %v1007_v19  ;;  %v2280_v25 = vpop.f32.mrb[4].mxu0  ;;  %v436_v29 = vpop.f32.mrb[5].mxu1 }
  0xe2   :  { %v1523_v26 = vmul.f32 1.442695, %v1458_v20  ;;  %v3270_v27 = vadd.f32 %v3255_v8, %v1325_v21  ;;  %v1022_v28 = vadd.f32 %v2280_v25, %v2182_v24  ;;  %v1016_v30 = vpop.f32.mrb[5].mxu0 }
  0xe3   :  { %v1521_v31 = vmul.f32 1.442695, %v1457_v22  ;;  %v3273_v32 = vadd.f32 %v3255_v8, %v1324_v23  ;;  %v1017_v33 = vadd.f32 %v1016_v30, %v436_v29 }
  0xe4   :  { %2432 = vpow2.f32 %v1523_v26  ;;  %v1460_v34 = vsub.f32 0.0, %v3270_v27  ;;  %v1327_v35 = vmul.f32 %v3250_v4, %v1022_v28  ;;  %v2185_v38 = vpop.f32.mrb[6].mxu1 }
  0xe5   :  { %2434 = vpow2.f32 %v1521_v31  ;;  %v1459_v36 = vsub.f32 0.0, %v3273_v32  ;;  %v1326_v37 = vmul.f32 %v3250_v4, %v1017_v33  ;;  %v2283_v39 = vpop.f32.mrb[6].mxu0  ;;  %v446_v43 = vpop.f32.mrb[7].mxu1 }
  0xe6   :  { %v1527_v40 = vmul.f32 1.442695, %v1460_v34  ;;  %v3280_v41 = vadd.f32 %v3255_v8, %v1327_v35  ;;  %v1032_v42 = vadd.f32 %v2283_v39, %v2185_v38  ;;  %v1026_v44 = vpop.f32.mrb[7].mxu0 }
  0xe7   :  { %v1525_v45 = vmul.f32 1.442695, %v1459_v36  ;;  %v3283_v46 = vadd.f32 %v3255_v8, %v1326_v37  ;;  %v1027_v47 = vadd.f32 %v1026_v44, %v446_v43 }
  0xe8   :  { %2436 = vpow2.f32 %v1527_v40  ;;  %v1462_v48 = vsub.f32 0.0, %v3280_v41  ;;  %v1329_v49 = vmul.f32 %v3250_v4, %v1032_v42  ;;  %v2188_v52 = vpop.f32.mrb[8].mxu1 }
  0xe9   :  { %2438 = vpow2.f32 %v1525_v45  ;;  %v1461_v50 = vsub.f32 0.0, %v3283_v46  ;;  %v1328_v51 = vmul.f32 %v3250_v4, %v1027_v47  ;;  %v2286_v53 = vpop.f32.mrb[8].mxu0  ;;  %v456_v57 = vpop.f32.mrb[9].mxu1 }
  0xea   :  { %v1531_v54 = vmul.f32 1.442695, %v1462_v48  ;;  %v3290_v55 = vadd.f32 %v3255_v8, %v1329_v49  ;;  %v1042_v56 = vadd.f32 %v2286_v53, %v2188_v52  ;;  %v1036_v58 = vpop.f32.mrb[9].mxu0 }
  0xeb   :  { %v1529_v59 = vmul.f32 1.442695, %v1461_v50  ;;  %v3293_v60 = vadd.f32 %v3255_v8, %v1328_v51  ;;  %v1037_v61 = vadd.f32 %v1036_v58, %v456_v57 }
  0xec   :  { %2440 = vpow2.f32 %v1531_v54  ;;  %v1464_v62 = vsub.f32 0.0, %v3290_v55  ;;  %v1331_v63 = vmul.f32 %v3250_v4, %v1042_v56  ;;  %v2191_v2 = vpop.f32.mrb[10].mxu1 }
  0xed   :  { %2442 = vpow2.f32 %v1529_v59  ;;  %v1463_v0 = vsub.f32 0.0, %v3293_v60  ;;  %v1330_v1 = vmul.f32 %v3250_v4, %v1037_v61  ;;  %v2289_v3 = vpop.f32.mrb[10].mxu0  ;;  %v466_v10 = vpop.f32.mrb[11].mxu1 }
  0xee   :  { %v2433_v5 = vpop.eup %2432  ;;  %v1535_v6 = vmul.f32 1.442695, %v1464_v62  ;;  %v3300_v7 = vadd.f32 %v3255_v8, %v1331_v63  ;;  %v1052_v9 = vadd.f32 %v2289_v3, %v2191_v2  ;;  %v1046_v11 = vpop.f32.mrb[11].mxu0 }
  0xef   :  { %v2435_v12 = vpop.eup %2434  ;;  %v1650_v13 = vadd.f32 1.0, %v2433_v5  ;;  %v1533_v15 = vmul.f32 1.442695, %v1463_v0  ;;  %v3303_v16 = vadd.f32 %v3255_v8, %v1330_v1  ;;  %v1047_v17 = vadd.f32 %v1046_v11, %v466_v10 }
  0xf0   :  { %v1649_v19 = vadd.f32 1.0, %v2435_v12  ;;  %2444 = vpow2.f32 %v1535_v6  ;;  %v1466_v20 = vsub.f32 0.0, %v3300_v7  ;;  %v1333_v21 = vmul.f32 %v3250_v4, %v1052_v9  ;;  %v2194_v24 = vpop.f32.mrb[12].mxu1 }
  0xf1   :  { %2446 = vrcp.f32 %v1650_v13  ;;  %v1465_v22 = vsub.f32 0.0, %v3303_v16  ;;  %v1332_v23 = vmul.f32 %v3250_v4, %v1047_v17  ;;  %v2292_v25 = vpop.f32.mrb[12].mxu0  ;;  %v476_v31 = vpop.f32.mrb[13].mxu1 }
  0xf2   :  { %v2437_v26 = vpop.eup %2436  ;;  %2448 = vrcp.f32 %v1649_v19  ;;  %v1539_v28 = vmul.f32 1.442695, %v1466_v20  ;;  %v3310_v29 = vadd.f32 %v3255_v8, %v1333_v21  ;;  %v1062_v30 = vadd.f32 %v2292_v25, %v2194_v24  ;;  %v1056_v33 = vpop.f32.mrb[13].mxu0 }
  0xf3   :  { %v2439_v34 = vpop.eup %2438  ;;  %v1652_v35 = vadd.f32 1.0, %v2437_v26  ;;  %2450 = vpow2.f32 %v1533_v15  ;;  %v1537_v36 = vmul.f32 1.442695, %v1465_v22  ;;  %v3313_v37 = vadd.f32 %v3255_v8, %v1332_v23 }
  0xf4   :  { %v1651_v38 = vadd.f32 1.0, %v2439_v34  ;;  %2452 = vpow2.f32 %v1539_v28  ;;  %v1468_v39 = vsub.f32 0.0, %v3310_v29  ;;  %v1335_v40 = vmul.f32 %v3250_v4, %v1062_v30  ;;  %v2197_v44 = vpop.f32.mrb[14].mxu1 }
  0xf5   :  { %2454 = vrcp.f32 %v1652_v35  ;;  %v1467_v42 = vsub.f32 0.0, %v3313_v37  ;;  %v1057_v43 = vadd.f32 %v1056_v33, %v476_v31  ;;  %v2295_v45 = vpop.f32.mrb[14].mxu0  ;;  %v486_v51 = vpop.f32.mrb[15].mxu1 }
  0xf6   :  { %v2441_v47 = vpop.eup %2440  ;;  %2456 = vrcp.f32 %v1651_v38  ;;  %v1543_v48 = vmul.f32 1.442695, %v1468_v39  ;;  %v3319_v49 = vadd.f32 %v3255_v8, %v1335_v40  ;;  %v1072_v50 = vadd.f32 %v2295_v45, %v2197_v44  ;;  %v1066_v52 = vpop.f32.mrb[15].mxu0 }
  0xf7   :  { %v2443_v53 = vpop.eup %2442  ;;  %v1654_v54 = vadd.f32 1.0, %v2441_v47  ;;  %2458 = vpow2.f32 %v1537_v36  ;;  %v1541_v56 = vmul.f32 1.442695, %v1467_v42  ;;  %v1334_v57 = vmul.f32 %v3250_v4, %v1057_v43 }
  0xf8   :  { %v1653_v58 = vadd.f32 1.0, %v2443_v53  ;;  %2460 = vpow2.f32 %v1543_v48  ;;  %v1470_v59 = vsub.f32 0.0, %v3319_v49  ;;  %v1337_v61 = vmul.f32 %v3250_v4, %v1072_v50  ;;  %v2200_v0 = vpop.f32.mrb[16].mxu1 }
  0xf9   :  { %2462 = vrcp.f32 %v1654_v54  ;;  %v3325_v62 = vadd.f32 %v3255_v8, %v1334_v57  ;;  %v1067_v63 = vadd.f32 %v1066_v52, %v486_v51  ;;  %v2298_v1 = vpop.f32.mrb[16].mxu0  ;;  %v496_v9 = vpop.f32.mrb[17].mxu1 }
  0xfa   :  { %v2445_v2 = vpop.eup %2444  ;;  %2464 = vrcp.f32 %v1653_v58  ;;  %v1547_v3 = vmul.f32 1.442695, %v1470_v59  ;;  %v3328_v5 = vadd.f32 %v3255_v8, %v1337_v61  ;;  %v1082_v6 = vadd.f32 %v2298_v1, %v2200_v0  ;;  %v1076_v10 = vpop.f32.mrb[17].mxu0 }
  0xfb   :  { %v2447_v11 = vpop.eup %2446  ;;  %v1656_v12 = vadd.f32 1.0, %v2445_v2  ;;  %2466 = vpow2.f32 %v1541_v56  ;;  %v1469_v13 = vsub.f32 0.0, %v3325_v62  ;;  %v1336_v15 = vmul.f32 %v3250_v4, %v1067_v63 }
  0xfc   :  { %v2449_v17 = vpop.eup %2448  ;;  %v1778_v19 = vmul.f32 %v2447_v11, %v3260_v14  ;;  %2468 = vpow2.f32 %v1547_v3  ;;  %v1472_v20 = vsub.f32 0.0, %v3328_v5  ;;  %v1339_v21 = vmul.f32 %v3250_v4, %v1082_v6  ;;  %v2203_v26 = vpop.f32.mrb[18].mxu1 }
  0xfd   :  { %v2451_v22 = vpop.eup %2450  ;;  %v1777_v23 = vmul.f32 %v2449_v17, %v3263_v18  ;;  %2470 = vrcp.f32 %v1656_v12  ;;  %v1545_v24 = vmul.f32 1.442695, %v1469_v13  ;;  %v3337_v25 = vadd.f32 %v3255_v8, %v1336_v15  ;;  %v2301_v28 = vpop.f32.mrb[18].mxu0 }
  0xfe   :  { %v2453_v30 = vpop.eup %2452  ;;  %1843 = vst.msk [vmem:[%s3994_s6 + $0x8] sm:$0xff] %vm1841_vm2, %v1778_v19  ;;  %v1655_v14 = vadd.f32 1.0, %v2451_v22  ;;  %v1551_v31 = vmul.f32 1.442695, %v1472_v20  ;;  %v3344_v33 = vadd.f32 %v3255_v8, %v1339_v21  ;;  %v1077_v34 = vadd.f32 %v1076_v10, %v496_v9  ;;  %v506_v18 = vpop.f32.mrb[19].mxu1 }
  0xff   :  { %v1086_v35 = vpop.f32.mrb[19].mxu0  ;;  %v2455_v36 = vpop.eup %2454  ;;  %1842 = vst.msk [vmem:[%s3994_s6] sm:$0xff] %vm1841_vm2, %v1777_v23  ;;  %v1658_v38 = vadd.f32 1.0, %v2453_v30  ;;  %2472 = vpow2.f32 %v1545_v24  ;;  %v1471_v39 = vsub.f32 0.0, %v3337_v25  ;;  %v1092_v40 = vadd.f32 %v2301_v28, %v2203_v26 }
 0x100   :  { %v2457_v42 = vpop.eup %2456  ;;  %v1780_v43 = vmul.f32 %v2455_v36, %v3270_v27  ;;  %2474 = vrcp.f32 %v1655_v14  ;;  %v1474_v44 = vsub.f32 0.0, %v3344_v33  ;;  %v1338_v45 = vmul.f32 %v3250_v4, %v1077_v34  ;;  %v2206_v52 = vpop.f32.mrb[20].mxu1 }
 0x101   :  { %v2459_v47 = vpop.eup %2458  ;;  %v1779_v48 = vmul.f32 %v2457_v42, %v3273_v32  ;;  %2476 = vrcp.f32 %v1658_v38  ;;  %v1549_v50 = vmul.f32 1.442695, %v1471_v39  ;;  %v1341_v51 = vmul.f32 %v3250_v4, %v1092_v40  ;;  %v2304_v53 = vpop.f32.mrb[20].mxu0 }
 0x102   :  { %v2461_v54 = vpop.eup %2460  ;;  %1845 = vst.msk [vmem:[%s3994_s6 + $0x18] sm:$0xff] %vm1841_vm2, %v1780_v43  ;;  %v1657_v27 = vadd.f32 1.0, %v2459_v47  ;;  %2478 = vpow2.f32 %v1551_v31  ;;  %v1555_v56 = vmul.f32 1.442695, %v1474_v44  ;;  %v3361_v57 = vadd.f32 %v3255_v8, %v1338_v45  ;;  %v516_v58 = vpop.f32.mrb[21].mxu1 }
 0x103   :  { %v1096_v32 = vpop.f32.mrb[21].mxu0  ;;  %v2463_v59 = vpop.eup %2462  ;;  %1844 = vst.msk [vmem:[%s3994_s6 + $0x10] sm:$0xff] %vm1841_vm2, %v1779_v48  ;;  %v1660_v61 = vadd.f32 1.0, %v2461_v54  ;;  %2480 = vpow2.f32 %v1549_v50  ;;  %v3368_v63 = vadd.f32 %v3255_v8, %v1341_v51  ;;  %v1087_v0 = vadd.f32 %v1086_v35, %v506_v18 }
 0x104   :  { %v2465_v1 = vpop.eup %2464  ;;  %v1782_v2 = vmul.f32 %v2463_v59, %v3280_v41  ;;  %2482 = vrcp.f32 %v1657_v27  ;;  %v1473_v3 = vsub.f32 0.0, %v3361_v57  ;;  %v1102_v6 = vadd.f32 %v2304_v53, %v2206_v52  ;;  %v2209_v13 = vpop.f32.mrb[22].mxu1 }
 0x105   :  { %v2467_v9 = vpop.eup %2466  ;;  %v1781_v10 = vmul.f32 %v2465_v1, %v3283_v46  ;;  %2484 = vrcp.f32 %v1660_v61  ;;  %v1476_v11 = vsub.f32 0.0, %v3368_v63  ;;  %v1340_v12 = vmul.f32 %v3250_v4, %v1087_v0  ;;  %v2307_v15 = vpop.f32.mrb[22].mxu0 }
 0x106   :  { %v2469_v17 = vpop.eup %2468  ;;  %1847 = vst.msk [vmem:[%s3994_s6 + $0x28] sm:$0xff] %vm1841_vm2, %v1782_v2  ;;  %v1659_v41 = vadd.f32 1.0, %v2467_v9  ;;  %2486 = vpow2.f32 %v1555_v56  ;;  %v1553_v19 = vmul.f32 1.442695, %v1473_v3  ;;  %v1343_v20 = vmul.f32 %v3250_v4, %v1102_v6  ;;  %v526_v21 = vpop.f32.mrb[23].mxu1 }
 0x107   :  { %v1106_v46 = vpop.f32.mrb[23].mxu0  ;;  %v2471_v22 = vpop.eup %2470  ;;  %1846 = vst.msk [vmem:[%s3994_s6 + $0x20] sm:$0xff] %vm1841_vm2, %v1781_v10  ;;  %v1662_v23 = vadd.f32 1.0, %v2469_v17  ;;  %v1559_v24 = vmul.f32 1.442695, %v1476_v11  ;;  %v3385_v26 = vadd.f32 %v3255_v8, %v1340_v12  ;;  %v1097_v28 = vadd.f32 %v1096_v32, %v516_v58 }
 0x108   :  { %v1784_v30 = vmul.f32 %v2471_v22, %v3290_v55  ;;  %2488 = vrcp.f32 %v1659_v41  ;;  %v3389_v14 = vadd.f32 %v3255_v8, %v1343_v20  ;;  %v1112_v31 = vadd.f32 %v2307_v15, %v2209_v13  ;;  %v2212_v38 = vpop.f32.mrb[24].mxu1 }
 0x109   :  { %v2473_v34 = vpop.eup %2472  ;;  %2490 = vrcp.f32 %v1662_v23  ;;  %v1475_v18 = vsub.f32 0.0, %v3385_v26  ;;  %v1342_v35 = vmul.f32 %v3250_v4, %v1097_v28  ;;  %v1107_v36 = vadd.f32 %v1106_v46, %v526_v21  ;;  %v2310_v39 = vpop.f32.mrb[24].mxu0 }
 0x10a   :  { %v2475_v40 = vpop.eup %2474  ;;  %1849 = vst.msk [vmem:[%s3994_s6 + $0x38] sm:$0xff] %vm1841_vm2, %v1784_v30  ;;  %v1661_v55 = vadd.f32 1.0, %v2473_v34  ;;  %2492 = vpow2.f32 %v1553_v19  ;;  %v1478_v42 = vsub.f32 0.0, %v3389_v14  ;;  %v1345_v43 = vmul.f32 %v3250_v4, %v1112_v31  ;;  %v536_v44 = vpop.f32.mrb[25].mxu1 }
 0x10b   :  { %v1116_v45 = vpop.f32.mrb[25].mxu0  ;;  %v2477_v47 = vpop.eup %2476  ;;  %v1783_v48 = vmul.f32 %v2475_v40, %v3293_v60  ;;  %2494 = vpow2.f32 %v1559_v24  ;;  %v1557_v50 = vmul.f32 1.442695, %v1475_v18  ;;  %v3401_v51 = vadd.f32 %v3255_v8, %v1342_v35 }
 0x10c   :  { %v2479_v52 = vpop.eup %2478  ;;  %v1786_v53 = vmul.f32 %v2477_v47, %v3300_v7  ;;  %2496 = vrcp.f32 %v1661_v55  ;;  %v1563_v54 = vmul.f32 1.442695, %v1478_v42  ;;  %v3405_v27 = vadd.f32 %v3255_v8, %v1345_v43  ;;  %v2215_v59 = vpop.f32.mrb[26].mxu1 }
 0x10d   :  { %v2481_v56 = vpop.eup %2480  ;;  %1848 = vst.msk [vmem:[%s3994_s6 + $0x30] sm:$0xff] %vm1841_vm2, %v1783_v48  ;;  %v1664_v60 = vadd.f32 1.0, %v2479_v52  ;;  %2498 = vpow2.f32 %v1557_v50  ;;  %v1477_v58 = vsub.f32 0.0, %v3401_v51  ;;  %v1344_v32 = vmul.f32 %v3250_v4, %v1107_v36  ;;  %v2313_v61 = vpop.f32.mrb[26].mxu0 }
 0x10e   :  { %v2483_v7 = vpop.eup %2482  ;;  %1851 = vst.msk [vmem:[%s3994_s6 + $0x48] sm:$0xff] %vm1841_vm2, %v1786_v53  ;;  %v1663_v0 = vadd.f32 1.0, %v2481_v56  ;;  %2500 = vpow2.f32 %v1563_v54  ;;  %v1480_v1 = vsub.f32 0.0, %v3405_v27  ;;  %v1122_v2 = vadd.f32 %v2310_v39, %v2212_v38  ;;  %v546_v3 = vpop.f32.mrb[27].mxu1 }
 0x10f   :  { %v1126_v6 = vpop.f32.mrb[27].mxu0  ;;  %v2485_v9 = vpop.eup %2484  ;;  %v1785_v10 = vmul.f32 %v2483_v7, %v3303_v16  ;;  %2502 = vrcp.f32 %v1664_v60  ;;  %v1561_v11 = vmul.f32 1.442695, %v1477_v58  ;;  %v3420_v12 = vadd.f32 %v3255_v8, %v1344_v32 }
 0x110   :  { %v2487_v13 = vpop.eup %2486  ;;  %v1788_v15 = vmul.f32 %v2485_v9, %v3310_v29  ;;  %2504 = vrcp.f32 %v1663_v0  ;;  %v1567_v17 = vmul.f32 1.442695, %v1480_v1  ;;  %v1347_v41 = vmul.f32 %v3250_v4, %v1122_v2  ;;  %v2218_v21 = vpop.f32.mrb[28].mxu1 }
 0x111   :  { %1850 = vst.msk [vmem:[%s3994_s6 + $0x40] sm:$0xff] %vm1841_vm2, %v1785_v10  ;;  %v1666_v19 = vadd.f32 1.0, %v2487_v13  ;;  %2506 = vpow2.f32 %v1561_v11  ;;  %v1479_v16 = vsub.f32 0.0, %v3420_v12  ;;  %v1117_v20 = vadd.f32 %v1116_v45, %v536_v44  ;;  %v2316_v46 = vpop.f32.mrb[28].mxu0  ;;  %v556_v28 = vpop.f32.mrb[29].mxu1 }
 0x112   :  { %v2489_v22 = vpop.eup %2488  ;;  %1853 = vst.msk [vmem:[%s3994_s6 + $0x58] sm:$0xff] %vm1841_vm2, %v1788_v15  ;;  %2508 = vpow2.f32 %v1567_v17  ;;  %v3434_v29 = vadd.f32 %v3255_v8, %v1347_v41  ;;  %v1132_v23 = vadd.f32 %v2313_v61, %v2215_v59  ;;  %v1127_v24 = vadd.f32 %v1126_v6, %v546_v3  ;;  %v1136_v30 = vpop.f32.mrb[29].mxu0 }
 0x113   :  { %v2491_v31 = vpop.eup %2490  ;;  %v1787_v34 = vmul.f32 %v2489_v22, %v3313_v37  ;;  %2510 = vrcp.f32 %v1666_v19  ;;  %v1565_v18 = vmul.f32 1.442695, %v1479_v16  ;;  %v1346_v35 = vmul.f32 %v3250_v4, %v1117_v20 }
 0x114   :  { %v2493_v36 = vpop.eup %2492  ;;  %v1790_v38 = vmul.f32 %v2491_v31, %v3319_v49  ;;  %v1482_v39 = vsub.f32 0.0, %v3434_v29  ;;  %v1349_v40 = vmul.f32 %v3250_v4, %v1132_v23  ;;  %v1348_v55 = vmul.f32 %v3250_v4, %v1127_v24  ;;  %v2221_v45 = vpop.f32.mrb[30].mxu1 }
 0x115   :  { %v2495_v42 = vpop.eup %2494  ;;  %1852 = vst.msk [vmem:[%s3994_s6 + $0x50] sm:$0xff] %vm1841_vm2, %v1787_v34  ;;  %v1665_v37 = vadd.f32 1.0, %v2493_v36  ;;  %2512 = vpow2.f32 %v1565_v18  ;;  %v3447_v43 = vadd.f32 %v3255_v8, %v1346_v35  ;;  %v1142_v44 = vadd.f32 %v2316_v46, %v2218_v21  ;;  %v2319_v49 = vpop.f32.mrb[30].mxu0 }
 0x116   :  { %v2497_v47 = vpop.eup %2496  ;;  %1855 = vst.msk [vmem:[%s3994_s6 + $0x68] sm:$0xff] %vm1841_vm2, %v1790_v38  ;;  %v1668_v48 = vadd.f32 1.0, %v2495_v42  ;;  %v1571_v50 = vmul.f32 1.442695, %v1482_v39  ;;  %v3454_v52 = vadd.f32 %v3255_v8, %v1349_v40  ;;  %v3457_v53 = vadd.f32 %v3255_v8, %v1348_v55  ;;  %v566_v54 = vpop.f32.mrb[31].mxu1 }
 0x117   :  { %v1146_v56 = vpop.f32.mrb[31].mxu0  ;;  %v2499_v60 = vpop.eup %2498  ;;  %v1789_v58 = vmul.f32 %v2497_v47, %v3325_v62  ;;  %2514 = vrcp.f32 %v1665_v37  ;;  %v1481_v32 = vsub.f32 0.0, %v3447_v43  ;;  %v1351_v59 = vmul.f32 %v3250_v4, %v1142_v44 }
 0x118   :  { %v2501_v61 = vpop.eup %2500  ;;  %2516 = vrcp.f32 %v1668_v48  ;;  %v1667_v7 = vadd.f32 1.0, %v2499_v60  ;;  %v1484_v0 = vsub.f32 0.0, %v3454_v52  ;;  %v1483_v1 = vsub.f32 0.0, %v3457_v53  ;;  %v2224_v9 = vpop.f32.mrb[32].mxu1 }
 0x119   :  { %v2503_v2 = vpop.eup %2502  ;;  %1854 = vst.msk [vmem:[%s3994_s6 + $0x60] sm:$0xff] %vm1841_vm2, %v1789_v58  ;;  %v1670_v3 = vadd.f32 1.0, %v2501_v61  ;;  %2518 = vpow2.f32 %v1571_v50  ;;  %v1569_v62 = vmul.f32 1.442695, %v1481_v32  ;;  %v3469_v6 = vadd.f32 %v3255_v8, %v1351_v59  ;;  %v2322_v10 = vpop.f32.mrb[32].mxu0 }
 0x11a   :  { %v2505_v11 = vpop.eup %2504  ;;  %v1792_v13 = vmul.f32 %v2503_v2, %v3328_v5  ;;  %2520 = vrcp.f32 %v1667_v7  ;;  %v1575_v15 = vmul.f32 1.442695, %v1484_v0  ;;  %v1573_v17 = vmul.f32 1.442695, %v1483_v1  ;;  %v576_v41 = vpop.f32.mrb[33].mxu1 }
 0x11b   :  { %v1156_v19 = vpop.f32.mrb[33].mxu0  ;;  %v2507_v16 = vpop.eup %2506  ;;  %v1791_v20 = vmul.f32 %v2505_v11, %v3337_v25  ;;  %2522 = vrcp.f32 %v1670_v3  ;;  %v1486_v21 = vsub.f32 0.0, %v3469_v6  ;;  %v1137_v46 = vadd.f32 %v1136_v30, %v556_v28 }
 0x11c   :  { %v2509_v22 = vpop.eup %2508  ;;  %1857 = vst.msk [vmem:[%s3994_s6 + $0x78] sm:$0xff] %vm1841_vm2, %v1792_v13  ;;  %v1669_v23 = vadd.f32 1.0, %v2507_v16  ;;  %2524 = vpow2.f32 %v1569_v62  ;;  %v1152_v5 = vadd.f32 %v2319_v49, %v2221_v45  ;;  %v1147_v24 = vadd.f32 %v1146_v56, %v566_v54  ;;  %v2227_v30 = vpop.f32.mrb[34].mxu1 }
 0x11d   :  { %v2511_v31 = vpop.eup %2510  ;;  %1856 = vst.msk [vmem:[%s3994_s6 + $0x70] sm:$0xff] %vm1841_vm2, %v1791_v20  ;;  %v1672_v25 = vadd.f32 1.0, %v2509_v22  ;;  %2526 = vpow2.f32 %v1575_v15  ;;  %v1579_v34 = vmul.f32 1.442695, %v1486_v21  ;;  %v1350_v28 = vmul.f32 %v3250_v4, %v1137_v46  ;;  %v2325_v18 = vpop.f32.mrb[34].mxu0 }
 0x11e   :  { %v1794_v35 = vmul.f32 %v2511_v31, %v3344_v33  ;;  %2528 = vrcp.f32 %v1669_v23  ;;  %v1353_v36 = vmul.f32 %v3250_v4, %v1152_v5  ;;  %v1352_v38 = vmul.f32 %v3250_v4, %v1147_v24  ;;  %v586_v39 = vpop.f32.mrb[35].mxu1  ;;  %v1166_v40 = vpop.f32.mrb[35].mxu0 }
 0x11f   :  { %v2513_v55 = vpop.eup %2512  ;;  %2530 = vrcp.f32 %v1672_v25  ;;  %v3487_v42 = vadd.f32 %v3255_v8, %v1350_v28  ;;  %v1162_v37 = vadd.f32 %v2322_v10, %v2224_v9  ;;  %v1157_v44 = vadd.f32 %v1156_v19, %v576_v41 }
 0x120   :  { %1859 = vst.msk [vmem:[%s3994_s6 + $0x88] sm:$0xff] %vm1841_vm2, %v1794_v35  ;;  %v1671_v33 = vadd.f32 1.0, %v2513_v55  ;;  %2532 = vpow2.f32 %v1573_v17  ;;  %v3494_v45 = vadd.f32 %v3255_v8, %v1353_v36  ;;  %v3497_v49 = vadd.f32 %v3255_v8, %v1352_v38  ;;  %v2230_v56 = vpop.f32.mrb[36].mxu1 }
 0x121   :  { %v2515_v47 = vpop.eup %2514  ;;  %2534 = vpow2.f32 %v1579_v34  ;;  %v1485_v48 = vsub.f32 0.0, %v3487_v42  ;;  %v1355_v50 = vmul.f32 %v3250_v4, %v1162_v37  ;;  %v1354_v54 = vmul.f32 %v3250_v4, %v1157_v44  ;;  %v2328_v60 = vpop.f32.mrb[36].mxu0 }
 0x122   :  { %v2517_v58 = vpop.eup %2516  ;;  %v1793_v32 = vmul.f32 %v2515_v47, %v3361_v57  ;;  %2536 = vrcp.f32 %v1671_v33  ;;  %v1488_v59 = vsub.f32 0.0, %v3494_v45  ;;  %v1487_v61 = vsub.f32 0.0, %v3497_v49  ;;  %v596_v7 = vpop.f32.mrb[37].mxu1 }
 0x123   :  { %v1176_v0 = vpop.f32.mrb[37].mxu0  ;;  %v2519_v1 = vpop.eup %2518  ;;  %v1796_v2 = vmul.f32 %v2517_v58, %v3368_v63  ;;  %v1577_v3 = vmul.f32 1.442695, %v1485_v48  ;;  %v3507_v62 = vadd.f32 %v3255_v8, %v1355_v50  ;;  %v3510_v9 = vadd.f32 %v3255_v8, %v1354_v54 }
 0x124   :  { %v2521_v10 = vpop.eup %2520  ;;  %1858 = vst.msk [vmem:[%s3994_s6 + $0x80] sm:$0xff] %vm1841_vm2, %v1793_v32  ;;  %v1674_v57 = vadd.f32 1.0, %v2519_v1  ;;  %v1583_v11 = vmul.f32 1.442695, %v1488_v59  ;;  %v1581_v13 = vmul.f32 1.442695, %v1487_v61  ;;  %v1172_v15 = vadd.f32 %v2325_v18, %v2227_v30 }
 0x125   :  { %v2523_v17 = vpop.eup %2522  ;;  %1861 = vst.msk [vmem:[%s3994_s6 + $0x98] sm:$0xff] %vm1841_vm2, %v1796_v2  ;;  %v1795_v63 = vmul.f32 %v2521_v10, %v3385_v26  ;;  %2538 = vpow2.f32 %v1577_v3  ;;  %v1490_v41 = vsub.f32 0.0, %v3507_v62  ;;  %v1489_v19 = vsub.f32 0.0, %v3510_v9  ;;  %v2233_v16 = vpop.f32.mrb[38].mxu1 }
 0x126   :  { %v2331_v20 = vpop.f32.mrb[38].mxu0  ;;  %v2525_v21 = vpop.eup %2524  ;;  %v1798_v46 = vmul.f32 %v2523_v17, %v3389_v14  ;;  %2540 = vrcp.f32 %v1674_v57  ;;  %v1357_v22 = vmul.f32 %v3250_v4, %v1172_v15  ;;  %v1167_v23 = vadd.f32 %v1166_v40, %v586_v39 }
 0x127   :  { %v606_v5 = vpop.f32.mrb[39].mxu1  ;;  %v1186_v24 = vpop.f32.mrb[39].mxu0  ;;  %1860 = vst.msk [vmem:[%s3994_s6 + $0x90] sm:$0xff] %vm1841_vm2, %v1795_v63  ;;  %v1673_v26 = vadd.f32 1.0, %v2525_v21  ;;  %2542 = vpow2.f32 %v1583_v11  ;;  %v1587_v25 = vmul.f32 1.442695, %v1490_v41  ;;  %v1182_v38 = vadd.f32 %v2328_v60, %v2230_v56 }
 0x128   :  { %v2527_v31 = vpop.eup %2526  ;;  %v1585_v34 = vmul.f32 1.442695, %v1489_v19  ;;  %1863 = vst.msk [vmem:[%s3994_s6 + $0xa8] sm:$0xff] %vm1841_vm2, %v1798_v46  ;;  %2544 = vpow2.f32 %v1581_v13  ;;  %v3534_v30 = vadd.f32 %v3255_v8, %v1357_v22  ;;  %v1356_v18 = vmul.f32 %v3250_v4, %v1167_v23  ;;  %v2236_v40 = vpop.f32.mrb[40].mxu1 }
 0x129   :  { %v2529_v28 = vpop.eup %2528  ;;  %v1676_v14 = vadd.f32 1.0, %v2527_v31  ;;  %2546 = vrcp.f32 %v1673_v26  ;;  %v1177_v39 = vadd.f32 %v1176_v0, %v596_v7  ;;  %v2334_v55 = vpop.f32.mrb[40].mxu0  ;;  %v1359_v56 = vmul.f32 %v3250_v4, %v1182_v38 }
 0x12a   :  { %v2531_v35 = vpop.eup %2530  ;;  %v1797_v36 = vmul.f32 %v2529_v28, %v3401_v51  ;;  %v1492_v33 = vsub.f32 0.0, %v3534_v30  ;;  %v3541_v47 = vadd.f32 %v3255_v8, %v1356_v18  ;;  %v616_v48 = vpop.f32.mrb[41].mxu1  ;;  %v1192_v10 = vadd.f32 %v2331_v20, %v2233_v16 }
 0x12b   :  { %v2533_v37 = vpop.eup %2532  ;;  %v1800_v44 = vmul.f32 %v2531_v35, %v3405_v27  ;;  %2548 = vrcp.f32 %v1676_v14  ;;  %v1196_v50 = vpop.f32.mrb[41].mxu0  ;;  %v1358_v27 = vmul.f32 %v3250_v4, %v1177_v39  ;;  %v3556_v7 = vadd.f32 %v3255_v8, %v1359_v56 }
 0x12c   :  { %v2535_v54 = vpop.eup %2534  ;;  %1862 = vst.msk [vmem:[%s3994_s6 + $0xa0] sm:$0xff] %vm1841_vm2, %v1797_v36  ;;  %v1675_v51 = vadd.f32 1.0, %v2533_v37  ;;  %2550 = vpow2.f32 %v1587_v25  ;;  %v1591_v32 = vmul.f32 1.442695, %v1492_v33  ;;  %v1491_v59 = vsub.f32 0.0, %v3541_v47  ;;  %v3561_v1 = vpop.f32.mrb[42].mxu1 }
 0x12d   :  { %v2537_v60 = vpop.eup %2536  ;;  %1865 = vst.msk [vmem:[%s3994_s6 + $0xb8] sm:$0xff] %vm1841_vm2, %v1800_v44  ;;  %v1678_v58 = vadd.f32 1.0, %v2535_v54  ;;  %2552 = vpow2.f32 %v1585_v34  ;;  %v3559_v0 = vadd.f32 %v3255_v8, %v1358_v27  ;;  %v3563_v2 = vpop.f32.mrb[42].mxu0  ;;  %v1187_v57 = vadd.f32 %v1186_v24, %v606_v5 }
 0x12e   :  { %v1799_v61 = vmul.f32 %v2537_v60, %v3420_v12  ;;  %2554 = vrcp.f32 %v1675_v51  ;;  %v1589_v3 = vmul.f32 1.442695, %v1491_v59  ;;  %v3565_v11 = vpop.f32.mrb[43].mxu1  ;;  %v1206_v13 = vpop.f32.mrb[43].mxu0  ;;  %v1494_v12 = vsub.f32 0.0, %v3556_v7 }
 0x12f   :  { %2556 = vrcp.f32 %v1678_v58  ;;  %v2539_v15 = vpop.eup %2538  ;;  %v1493_v17 = vsub.f32 0.0, %v3559_v0  ;;  %v1202_v63 = vadd.f32 %v2334_v55, %v2236_v40  ;;  %v1361_v16 = vmul.f32 %v3250_v4, %v1192_v10 }
 0x130   :  { %1864 = vst.msk [vmem:[%s3994_s6 + $0xb0] sm:$0xff] %vm1841_vm2, %v1799_v61  ;;  %2558 = vpow2.f32 %v1591_v32  ;;  %v2541_v41 = vpop.eup %2540  ;;  %v1677_v19 = vadd.f32 1.0, %v2539_v15  ;;  %v1360_v20 = vmul.f32 %v3250_v4, %v1187_v57  ;;  %v1595_v22 = vmul.f32 1.442695, %v1494_v12  ;;  %v2242_v24 = vpop.f32.mrb[44].mxu1 }
 0x131   :  { %2560 = vpow2.f32 %v1589_v3  ;;  %v2543_v21 = vpop.eup %2542  ;;  %v1802_v46 = vmul.f32 %v2541_v41, %v3434_v29  ;;  %v1593_v23 = vmul.f32 1.442695, %v1493_v17  ;;  %v1363_v5 = vmul.f32 %v3250_v4, %v1202_v63  ;;  %v2340_v31 = vpop.f32.mrb[44].mxu0  ;;  %v3613_v32 = vld [vmem:[%s3993_s5] ss:$0 sm:$0xff] }
 0x132   :  { %v2545_v26 = vpop.eup %2544  ;;  %2562 = vrcp.f32 %v1677_v19  ;;  %v1680_v25 = vadd.f32 1.0, %v2543_v21  ;;  %v3578_v34 = vadd.f32 %v3255_v8, %v1361_v16  ;;  %v3581_v28 = vadd.f32 %v3255_v8, %v1360_v20  ;;  %v3583_v14 = vpop.f32.mrb[45].mxu1  ;;  %v3629_v19 = vld [vmem:[%s3992_s4] ss:$0 sm:$0xff] }
 0x133   :  { %v3585_v18 = vpop.f32.mrb[45].mxu0  ;;  %v2547_v29 = vpop.eup %2546  ;;  %1867 = vst.msk [vmem:[%s3994_s6 + $0xc8] sm:$0xff] %vm1841_vm2, %v1802_v46  ;;  %v1679_v35 = vadd.f32 1.0, %v2545_v26  ;;  %2564 = vpow2.f32 %v1595_v22  ;;  %v3592_v36 = vadd.f32 %v3255_v8, %v1363_v5  ;;  %v1197_v38 = vadd.f32 %v1196_v50, %v616_v48 }
 0x134   :  { %v1801_v40 = vmul.f32 %v2547_v29, %v3447_v43  ;;  %2566 = vrcp.f32 %v1680_v25  ;;  %v1496_v55 = vsub.f32 0.0, %v3578_v34  ;;  %v1495_v37 = vsub.f32 0.0, %v3581_v28  ;;  %v2245_v56 = vpop.f32.mrb[46].mxu1 }
 0x135   :  { %v2549_v39 = vpop.eup %2548  ;;  %2568 = vrcp.f32 %v1679_v35  ;;  %v1498_v54 = vsub.f32 0.0, %v3592_v36  ;;  %v1362_v51 = vmul.f32 %v3250_v4, %v1197_v38  ;;  %v2343_v8 = vpop.f32.mrb[46].mxu0  ;;  %v1212_v61 = vadd.f32 %v3563_v2, %v3561_v1 }
 0x136   :  { %v2551_v44 = vpop.eup %2550  ;;  %v1804_v33 = vmul.f32 %v2549_v39, %v3454_v52  ;;  %1866 = vst.msk [vmem:[%s3994_s6 + $0xc0] sm:$0xff] %vm1841_vm2, %v1801_v40  ;;  %2570 = vpow2.f32 %v1593_v23  ;;  %v1599_v48 = vmul.f32 1.442695, %v1496_v55  ;;  %v1597_v50 = vmul.f32 1.442695, %v1495_v37  ;;  %v3604_v60 = vpop.f32.mrb[47].mxu1 }
 0x137   :  { %v2553_v27 = vpop.eup %2552  ;;  %v1682_v43 = vadd.f32 1.0, %v2551_v44  ;;  %v1603_v58 = vmul.f32 1.442695, %v1498_v54  ;;  %v3616_v59 = vadd.f32 %v3613_v32, %v1362_v51  ;;  %v3620_v3 = vpop.f32.mrb[47].mxu0  ;;  %v1207_v15 = vadd.f32 %v1206_v13, %v3565_v11 }
 0x138   :  { %v2555_v52 = vpop.eup %2554  ;;  %1869 = vst.msk [vmem:[%s3994_s6 + $0xd8] sm:$0xff] %vm1841_vm2, %v1804_v33  ;;  %v1681_v4 = vadd.f32 1.0, %v2553_v27  ;;  %v1222_v12 = vadd.f32 %v2340_v31, %v2242_v24  ;;  %v1365_v1 = vmul.f32 %v3629_v19, %v1212_v61  ;;  %v2248_v2 = vpop.f32.mrb[48].mxu1  ;;  %v1217_v26 = vadd.f32 %v3585_v18, %v3583_v14 }
 0x139   :  { %v2557_v10 = vpop.eup %2556  ;;  %v1803_v57 = vmul.f32 %v2555_v52, %v3457_v53  ;;  %2572 = vrcp.f32 %v1682_v43  ;;  %v1497_v41 = vsub.f32 0.0, %v3616_v59  ;;  %v2346_v16 = vpop.f32.mrb[48].mxu0  ;;  %v1232_v38 = vadd.f32 %v2343_v8, %v2245_v56 }
 0x13a   :  { %v2559_v17 = vpop.eup %2558  ;;  %v1806_v63 = vmul.f32 %v2557_v10, %v3469_v6  ;;  %2574 = vrcp.f32 %v1681_v4  ;;  %v1364_v6 = vmul.f32 %v3629_v19, %v1207_v15  ;;  %v1367_v13 = vmul.f32 %v3629_v19, %v1222_v12  ;;  %v656_v20 = vpop.f32.mrb[49].mxu1 }
 0x13b   :  { %v2561_v53 = vpop.eup %2560  ;;  %1868 = vst.msk [vmem:[%s3994_s6 + $0xd0] sm:$0xff] %vm1841_vm2, %v1803_v57  ;;  %v1684_v11 = vadd.f32 1.0, %v2559_v17  ;;  %2576 = vpow2.f32 %v1599_v48  ;;  %v1236_v21 = vpop.f32.mrb[49].mxu0  ;;  %v1601_v22 = vmul.f32 1.442695, %v1497_v41  ;;  %v3643_v23 = vadd.f32 %v3613_v32, %v1365_v1 }
 0x13c   :  { %1871 = vst.msk [vmem:[%s3994_s6 + $0xe8] sm:$0xff] %vm1841_vm2, %v1806_v63  ;;  %v1683_v46 = vadd.f32 1.0, %v2561_v53  ;;  %2578 = vpow2.f32 %v1597_v50  ;;  %v2563_v5 = vpop.eup %2562  ;;  %v3646_v24 = vadd.f32 %v3613_v32, %v1364_v6  ;;  %v3649_v31 = vadd.f32 %v3613_v32, %v1367_v13  ;;  %v2251_v39 = vpop.f32.mrb[50].mxu1 }
 0x13d   :  { %2580 = vrcp.f32 %v1684_v11  ;;  %v2565_v25 = vpop.eup %2564  ;;  %v1805_v29 = vmul.f32 %v2563_v5, %v3487_v42  ;;  %v1500_v35 = vsub.f32 0.0, %v3643_v23  ;;  %v2349_v40 = vpop.f32.mrb[50].mxu0  ;;  %v1366_v56 = vmul.f32 %v3629_v19, %v1217_v26 }
 0x13e   :  { %2582 = vrcp.f32 %v1683_v46  ;;  %v2567_v55 = vpop.eup %2566  ;;  %v1686_v37 = vadd.f32 1.0, %v2565_v25  ;;  %v1499_v44 = vsub.f32 0.0, %v3646_v24  ;;  %v1502_v33 = vsub.f32 0.0, %v3649_v31  ;;  %v3657_v54 = vpop.f32.mrb[51].mxu1 }
 0x13f   :  { %2584 = vpow2.f32 %v1603_v58  ;;  %v3659_v51 = vpop.f32.mrb[51].mxu0  ;;  %v2569_v14 = vpop.eup %2568  ;;  %1870 = vst.msk [vmem:[%s3994_s6 + $0xe0] sm:$0xff] %vm1841_vm2, %v1805_v29  ;;  %v1808_v42 = vmul.f32 %v2567_v55, %v3494_v45  ;;  %v1607_v18 = vmul.f32 1.442695, %v1500_v35  ;;  %v3673_v52 = vadd.f32 %v3613_v32, %v1366_v56 }
 0x140   :  { %2586 = vpow2.f32 %v1601_v22  ;;  %v2571_v8 = vpop.eup %2570  ;;  %v1807_v27 = vmul.f32 %v2569_v14, %v3497_v49  ;;  %v1605_v43 = vmul.f32 1.442695, %v1499_v44  ;;  %v1611_v48 = vmul.f32 1.442695, %v1502_v33  ;;  %v3676_v4 = vpop.f32.mrb[52].mxu1 }
 0x141   :  { %2588 = vrcp.f32 %v1686_v37  ;;  %1873 = vst.msk [vmem:[%s3994_s6 + $0xf8] sm:$0xff] %vm1841_vm2, %v1808_v42  ;;  %v1685_v50 = vadd.f32 1.0, %v2571_v8  ;;  %v1369_v45 = vmul.f32 %v3629_v19, %v1232_v38  ;;  %v3678_v58 = vpop.f32.mrb[52].mxu0  ;;  %v1227_v61 = vadd.f32 %v3620_v3, %v3604_v60  ;;  %v3686_v15 = vpop.f32.mrb[53].mxu1 }
 0x142   :  { %2590 = vpow2.f32 %v1607_v18  ;;  %1872 = vst.msk [vmem:[%s3994_s6 + $0xf0] sm:$0xff] %vm1841_vm2, %v1807_v27  ;;  %v1242_v10 = vadd.f32 %v2346_v16, %v2248_v2  ;;  %v1237_v57 = vadd.f32 %v1236_v21, %v656_v20  ;;  %v3688_v12 = vpop.f32.mrb[53].mxu0  ;;  %v1501_v41 = vsub.f32 0.0, %v3673_v52 }
 0x143   :  { %v2573_v49 = vpop.eup %2572  ;;  %2592 = vpow2.f32 %v1605_v43  ;;  %v3693_v1 = vadd.f32 %v3613_v32, %v1369_v45  ;;  %v1368_v60 = vmul.f32 %v3629_v19, %v1227_v61  ;;  %v1252_v26 = vadd.f32 %v2349_v40, %v2251_v39 }
 0x144   :  { %v2575_v17 = vpop.eup %2574  ;;  %v1810_v63 = vmul.f32 %v2573_v49, %v3507_v62  ;;  %2594 = vrcp.f32 %v1685_v50  ;;  %v1371_v3 = vmul.f32 %v3629_v19, %v1242_v10  ;;  %v1609_v16 = vmul.f32 1.442695, %v1501_v41  ;;  %v3704_v20 = vpop.f32.mrb[54].mxu1 }
 0x145   :  { %v2577_v53 = vpop.eup %2576  ;;  %v1809_v11 = vmul.f32 %v2575_v17, %v3510_v9  ;;  %2596 = vpow2.f32 %v1611_v48  ;;  %v1504_v6 = vsub.f32 0.0, %v3693_v1  ;;  %v1370_v13 = vmul.f32 %v3629_v19, %v1237_v57  ;;  %v3706_v9 = vpop.f32.mrb[54].mxu0 }
 0x146   :  { %v2579_v2 = vpop.eup %2578  ;;  %1875 = vst.msk [vmem:[%s3994_s6 + $0x108] sm:$0xff] %vm1841_vm2, %v1810_v63  ;;  %v1688_v62 = vadd.f32 1.0, %v2577_v53  ;;  %v3713_v22 = vadd.f32 %v3613_v32, %v1368_v60  ;;  %v3716_v5 = vadd.f32 %v3613_v32, %v1371_v3  ;;  %v3718_v25 = vpop.f32.mrb[55].mxu1  ;;  %v1373_v18 = vmul.f32 %v3629_v19, %v1252_v26 }
 0x147   :  { %v2581_v21 = vpop.eup %2580  ;;  %1874 = vst.msk [vmem:[%s3994_s6 + $0x100] sm:$0xff] %vm1841_vm2, %v1809_v11  ;;  %v1687_v46 = vadd.f32 1.0, %v2579_v2  ;;  %v3720_v29 = vpop.f32.mrb[55].mxu0  ;;  %v1615_v55 = vmul.f32 1.442695, %v1504_v6  ;;  %v3724_v37 = vadd.f32 %v3613_v32, %v1370_v13  ;;  %v1247_v41 = vadd.f32 %v3659_v51, %v3657_v54 }
 0x148   :  { %v2583_v35 = vpop.eup %2582  ;;  %v1812_v38 = vmul.f32 %v2581_v21, %v3534_v30  ;;  %2598 = vrcp.f32 %v1688_v62  ;;  %v1503_v14 = vsub.f32 0.0, %v3713_v22  ;;  %v1506_v39 = vsub.f32 0.0, %v3716_v5  ;;  %v2260_v56 = vpop.f32.mrb[56].mxu1 }
 0x149   :  { %v2585_v44 = vpop.eup %2584  ;;  %v1811_v33 = vmul.f32 %v2583_v35, %v3541_v47  ;;  %2600 = vrcp.f32 %v1687_v46  ;;  %v1505_v42 = vsub.f32 0.0, %v3724_v37  ;;  %v2358_v8 = vpop.f32.mrb[56].mxu0  ;;  %v3743_v10 = vadd.f32 %v3613_v32, %v1373_v18 }
 0x14a   :  { %v2587_v40 = vpop.eup %2586  ;;  %1877 = vst.msk [vmem:[%s3994_s6 + $0x118] sm:$0xff] %vm1841_vm2, %v1812_v38  ;;  %v1690_v30 = vadd.f32 1.0, %v2585_v44  ;;  %2602 = vpow2.f32 %v1609_v16  ;;  %v1613_v43 = vmul.f32 1.442695, %v1503_v14  ;;  %v1619_v48 = vmul.f32 1.442695, %v1506_v39 }
 0x14b   :  { %v2589_v47 = vpop.eup %2588  ;;  %1876 = vst.msk [vmem:[%s3994_s6 + $0x110] sm:$0xff] %vm1841_vm2, %v1811_v33  ;;  %v1689_v27 = vadd.f32 1.0, %v2587_v40  ;;  %2604 = vpow2.f32 %v1615_v55  ;;  %v3739_v50 = vpop.f32.mrb[57].mxu1  ;;  %v1617_v61 = vmul.f32 1.442695, %v1505_v42  ;;  %v1262_v53 = vadd.f32 %v3678_v58, %v3676_v4 }
 0x14c   :  { %v2591_v45 = vpop.eup %2590  ;;  %v1814_v49 = vmul.f32 %v2589_v47, %v3556_v7  ;;  %2606 = vrcp.f32 %v1690_v30  ;;  %v3745_v57 = vpop.f32.mrb[57].mxu0  ;;  %v1508_v60 = vsub.f32 0.0, %v3743_v10  ;;  %v1257_v3 = vadd.f32 %v3688_v12, %v3686_v15 }
 0x14d   :  { %v2593_v17 = vpop.eup %2592  ;;  %2608 = vrcp.f32 %v1689_v27  ;;  %v1692_v63 = vadd.f32 1.0, %v2591_v45  ;;  %v3758_v2 = vpop.f32.mrb[58].mxu1  ;;  %v1372_v4 = vmul.f32 %v3629_v19, %v1247_v41  ;;  %v1375_v58 = vmul.f32 %v3629_v19, %v1262_v53 }
 0x14e   :  { %v2595_v11 = vpop.eup %2594  ;;  %1879 = vst.msk [vmem:[%s3994_s6 + $0x128] sm:$0xff] %vm1841_vm2, %v1814_v49  ;;  %v1691_v7 = vadd.f32 1.0, %v2593_v17  ;;  %2610 = vpow2.f32 %v1613_v43  ;;  %v3760_v62 = vpop.f32.mrb[58].mxu0  ;;  %v1623_v21 = vmul.f32 1.442695, %v1508_v60  ;;  %v1374_v15 = vmul.f32 %v3629_v19, %v1257_v3 }
 0x14f   :  { %v2597_v54 = vpop.eup %2596  ;;  %v1813_v51 = vmul.f32 %v2595_v11, %v3559_v0  ;;  %2612 = vrcp.f32 %v1692_v63  ;;  %v3765_v16 = vpop.f32.mrb[59].mxu1  ;;  %v3775_v0 = vadd.f32 %v3613_v32, %v1372_v4  ;;  %v3778_v12 = vadd.f32 %v3613_v32, %v1375_v58 }
 0x150   :  { %v3767_v6 = vpop.f32.mrb[59].mxu0  ;;  %2614 = vrcp.f32 %v1691_v7  ;;  %v1694_v13 = vadd.f32 1.0, %v2597_v54  ;;  %v1272_v46 = vadd.f32 %v3706_v9, %v3704_v20  ;;  %v3783_v35 = vadd.f32 %v3613_v32, %v1374_v15  ;;  %v3787_v44 = vpop.f32.mrb[60].mxu1 }
 0x151   :  { %1878 = vst.msk [vmem:[%s3994_s6 + $0x120] sm:$0xff] %vm1841_vm2, %v1813_v51  ;;  %2616 = vpow2.f32 %v1619_v48  ;;  %v1267_v38 = vadd.f32 %v3720_v29, %v3718_v25  ;;  %v1282_v55 = vadd.f32 %v2358_v8, %v2260_v56  ;;  %v3789_v33 = vpop.f32.mrb[60].mxu0  ;;  %v1507_v40 = vsub.f32 0.0, %v3775_v0  ;;  %v3794_v9 = vpop.f32.mrb[61].mxu1 }
 0x152   :  { %v2599_v26 = vpop.eup %2598  ;;  %2618 = vrcp.f32 %v1694_v13  ;;  %v1510_v20 = vsub.f32 0.0, %v3778_v12  ;;  %v3796_v30 = vpop.f32.mrb[61].mxu0  ;;  %v1509_v29 = vsub.f32 0.0, %v3783_v35  ;;  %v1377_v18 = vmul.f32 %v3629_v19, %v1272_v46 }
 0x153   :  { %v2601_v14 = vpop.eup %2600  ;;  %v1816_v39 = vmul.f32 %v2599_v26, %v3578_v34  ;;  %2620 = vpow2.f32 %v1617_v61  ;;  %v1621_v8 = vmul.f32 1.442695, %v1507_v40  ;;  %v1376_v27 = vmul.f32 %v3629_v19, %v1267_v38 }
 0x154   :  { %v2603_v42 = vpop.eup %2602  ;;  %v1815_v25 = vmul.f32 %v2601_v14, %v3581_v28  ;;  %2622 = vpow2.f32 %v1623_v21  ;;  %v1627_v47 = vmul.f32 1.442695, %v1510_v20  ;;  %v1625_v48 = vmul.f32 1.442695, %v1509_v29  ;;  %v2269_v61 = vpop.f32.mrb[62].mxu1 }
 0x155   :  { %v2605_v56 = vpop.eup %2604  ;;  %1881 = vst.msk [vmem:[%s3994_s6 + $0x138] sm:$0xff] %vm1841_vm2, %v1816_v39  ;;  %v1693_v34 = vadd.f32 1.0, %v2603_v42  ;;  %v3811_v45 = vadd.f32 %v3613_v32, %v1377_v18  ;;  %v1379_v49 = vmul.f32 %v3629_v19, %v1282_v55  ;;  %v2367_v17 = vpop.f32.mrb[62].mxu0  ;;  %v3816_v53 = vadd.f32 %v3613_v32, %v1376_v27 }
 0x156   :  { %v2607_v43 = vpop.eup %2606  ;;  %1880 = vst.msk [vmem:[%s3994_s6 + $0x130] sm:$0xff] %vm1841_vm2, %v1815_v25  ;;  %v1696_v28 = vadd.f32 1.0, %v2605_v56  ;;  %v1277_v11 = vadd.f32 %v3745_v57, %v3739_v50  ;;  %v726_v7 = vpop.f32.mrb[63].mxu1  ;;  %v1292_v40 = vadd.f32 %v3760_v62, %v3758_v2  ;;  %v1287_v25 = vadd.f32 %v3767_v6, %v3765_v16 }
 0x157   :  { %v2609_v63 = vpop.eup %2608  ;;  %v1818_v41 = vmul.f32 %v2607_v43, %v3592_v36  ;;  %2624 = vrcp.f32 %v1693_v34  ;;  %v1306_v60 = vpop.f32.mrb[63].mxu0  ;;  %v1512_v51 = vsub.f32 0.0, %v3811_v45  ;;  %v3823_v4 = vadd.f32 %v3613_v32, %v1379_v49 }
 0x158   :  { %v2611_v3 = vpop.eup %2610  ;;  %v1817_v54 = vmul.f32 %v2609_v63, %v3616_v59  ;;  %2626 = vrcp.f32 %v1696_v28  ;;  %v1511_v50 = vsub.f32 0.0, %v3816_v53  ;;  %v1378_v57 = vmul.f32 %v3629_v19, %v1277_v11 }
 0x159   :  { %v2613_v58 = vpop.eup %2612  ;;  %1883 = vst.msk [vmem:[%s3994_s6 + $0x148] sm:$0xff] %vm1841_vm2, %v1818_v41  ;;  %v1695_v36 = vadd.f32 1.0, %v2611_v3  ;;  %2628 = vpow2.f32 %v1621_v8  ;;  %v1631_v21 = vmul.f32 1.442695, %v1512_v51  ;;  %v1514_v15 = vsub.f32 0.0, %v3823_v4 }
 0x15a   :  { %v2615_v13 = vpop.eup %2614  ;;  %1882 = vst.msk [vmem:[%s3994_s6 + $0x140] sm:$0xff] %vm1841_vm2, %v1817_v54  ;;  %v1820_v59 = vmul.f32 %v2613_v58, %v3643_v23  ;;  %2630 = vpow2.f32 %v1627_v47  ;;  %v1629_v38 = vmul.f32 1.442695, %v1511_v50  ;;  %v3839_v55 = vadd.f32 %v3613_v32, %v1378_v57 }
 0x15b   :  { %v2617_v46 = vpop.eup %2616  ;;  %v1819_v26 = vmul.f32 %v2615_v13, %v3646_v24  ;;  %2632 = vrcp.f32 %v1695_v36  ;;  %v1635_v23 = vmul.f32 1.442695, %v1514_v15  ;;  %v1381_v56 = vmul.f32 %v3629_v19, %v1292_v40 }
 0x15c   :  { %v2619_v14 = vpop.eup %2618  ;;  %1885 = vst.msk [vmem:[%s3994_s6 + $0x158] sm:$0xff] %vm1841_vm2, %v1820_v59  ;;  %v1698_v39 = vadd.f32 1.0, %v2617_v46  ;;  %2634 = vpow2.f32 %v1625_v48  ;;  %v1513_v42 = vsub.f32 0.0, %v3839_v55  ;;  %v1302_v2 = vadd.f32 %v3789_v33, %v3787_v44 }
 0x15d   :  { %v2621_v20 = vpop.eup %2620  ;;  %1884 = vst.msk [vmem:[%s3994_s6 + $0x150] sm:$0xff] %vm1841_vm2, %v1819_v26  ;;  %v1822_v24 = vmul.f32 %v2619_v14, %v3649_v31  ;;  %2636 = vpow2.f32 %v1631_v21  ;;  %v1380_v34 = vmul.f32 %v3629_v19, %v1287_v25  ;;  %v3864_v16 = vadd.f32 %v3613_v32, %v1381_v56 }
 0x15e   :  { %v2623_v29 = vpop.eup %2622  ;;  %2638 = vrcp.f32 %v1698_v39  ;;  %v1697_v18 = vadd.f32 1.0, %v2621_v20  ;;  %v1633_v62 = vmul.f32 1.442695, %v1513_v42  ;;  %v1383_v6 = vmul.f32 %v3629_v19, %v1302_v2 }
 0x15f   :  { %1887 = vst.msk [vmem:[%s3994_s6 + $0x168] sm:$0xff] %vm1841_vm2, %v1822_v24  ;;  %v1700_v31 = vadd.f32 1.0, %v2623_v29  ;;  %2640 = vpow2.f32 %v1629_v38  ;;  %v1297_v8 = vadd.f32 %v3796_v30, %v3794_v9  ;;  %v3870_v33 = vadd.f32 %v3613_v32, %v1380_v34 }
 0x160   :  { %2642 = vrcp.f32 %v1697_v18  ;;  %v1312_v47 = vadd.f32 %v2367_v17, %v2269_v61  ;;  %v1307_v27 = vadd.f32 %v1306_v60, %v726_v7  ;;  %v1516_v48 = vsub.f32 0.0, %v3864_v16 }
 0x161   :  { %v2625_v44 = vpop.eup %2624  ;;  %2644 = vrcp.f32 %v1700_v31  ;;  %v3875_v49 = vadd.f32 %v3613_v32, %v1383_v6  ;;  %v1515_v9 = vsub.f32 0.0, %v3870_v33  ;;  %v1382_v30 = vmul.f32 %v3629_v19, %v1297_v8 }
 0x162   :  { %v2627_v43 = vpop.eup %2626  ;;  %v1821_v28 = vmul.f32 %v2625_v44, %v3673_v52  ;;  %2646 = vpow2.f32 %v1635_v23  ;;  %v1639_v61 = vmul.f32 1.442695, %v1516_v48  ;;  %v1385_v17 = vmul.f32 %v3629_v19, %v1312_v47 }
 0x163   :  { %v2629_v63 = vpop.eup %2628  ;;  %v1824_v41 = vmul.f32 %v2627_v43, %v3693_v1  ;;  %2648 = vpow2.f32 %v1633_v62  ;;  %v1518_v60 = vsub.f32 0.0, %v3875_v49  ;;  %v3891_v3 = vadd.f32 %v3613_v32, %v1382_v30 }
 0x164   :  { %v2631_v11 = vpop.eup %2630  ;;  %1886 = vst.msk [vmem:[%s3994_s6 + $0x160] sm:$0xff] %vm1841_vm2, %v1821_v28  ;;  %v1699_v52 = vadd.f32 1.0, %v2629_v63  ;;  %v1384_v54 = vmul.f32 %v3629_v19, %v1307_v27  ;;  %v1637_v36 = vmul.f32 1.442695, %v1515_v9  ;;  %v3896_v50 = vadd.f32 %v3613_v32, %v1385_v17 }
 0x165   :  { %v2633_v7 = vpop.eup %2632  ;;  %1889 = vst.msk [vmem:[%s3994_s6 + $0x178] sm:$0xff] %vm1841_vm2, %v1824_v41  ;;  %v1702_v1 = vadd.f32 1.0, %v2631_v11  ;;  %v1517_v59 = vsub.f32 0.0, %v3891_v3  ;;  %v1643_v26 = vmul.f32 1.442695, %v1518_v60 }
 0x166   :  { %v2635_v51 = vpop.eup %2634  ;;  %v1823_v58 = vmul.f32 %v2633_v7, %v3713_v22  ;;  %2650 = vrcp.f32 %v1699_v52  ;;  %v3900_v21 = vadd.f32 %v3613_v32, %v1384_v54  ;;  %v1520_v38 = vsub.f32 0.0, %v3896_v50 }
 0x167   :  { %v2637_v57 = vpop.eup %2636  ;;  %2652 = vrcp.f32 %v1702_v1  ;;  %v1701_v13 = vadd.f32 1.0, %v2635_v51  ;;  %v1641_v32 = vmul.f32 1.442695, %v1517_v59 }
 0x168   :  { %v2639_v15 = vpop.eup %2638  ;;  %1888 = vst.msk [vmem:[%s3994_s6 + $0x170] sm:$0xff] %vm1841_vm2, %v1823_v58  ;;  %v1704_v19 = vadd.f32 1.0, %v2637_v57  ;;  %2654 = vpow2.f32 %v1639_v61  ;;  %v1519_v23 = vsub.f32 0.0, %v3900_v21  ;;  %v1647_v29 = vmul.f32 1.442695, %v1520_v38 }
 0x169   :  { %v2641_v22 = vpop.eup %2640  ;;  %v1826_v46 = vmul.f32 %v2639_v15, %v3716_v5  ;;  %2656 = vrcp.f32 %v1701_v13 }
 0x16a   :  { %v2643_v14 = vpop.eup %2642  ;;  %2658 = vrcp.f32 %v1704_v19  ;;  %v1703_v39 = vadd.f32 1.0, %v2641_v22  ;;  %v1645_v18 = vmul.f32 1.442695, %v1519_v23 }
 0x16b   :  { %v2645_v40 = vpop.eup %2644  ;;  %1891 = vst.msk [vmem:[%s3994_s6 + $0x188] sm:$0xff] %vm1841_vm2, %v1826_v46  ;;  %v1825_v20 = vmul.f32 %v2643_v14, %v3724_v37  ;;  %2660 = vpow2.f32 %v1637_v36 }
 0x16c   :  { %v2647_v5 = vpop.eup %2646  ;;  %v1828_v24 = vmul.f32 %v2645_v40, %v3743_v10  ;;  %2662 = vrcp.f32 %v1703_v39 }
 0x16d   :  { %v2649_v42 = vpop.eup %2648  ;;  %1890 = vst.msk [vmem:[%s3994_s6 + $0x180] sm:$0xff] %vm1841_vm2, %v1825_v20  ;;  %v1706_v25 = vadd.f32 1.0, %v2647_v5  ;;  %2664 = vpow2.f32 %v1643_v26 }
 0x16e   :  { %1893 = vst.msk [vmem:[%s3994_s6 + $0x198] sm:$0xff] %vm1841_vm2, %v1828_v24  ;;  %v1705_v37 = vadd.f32 1.0, %v2649_v42  ;;  %2666 = vpow2.f32 %v1641_v32 }
 0x16f   :  { %2668 = vrcp.f32 %v1706_v25 }
 0x170   :  { %v2651_v10 = vpop.eup %2650  ;;  %2670 = vrcp.f32 %v1705_v37 }
 0x171   :  { %v2653_v56 = vpop.eup %2652  ;;  %v1827_v2 = vmul.f32 %v2651_v10, %v3775_v0  ;;  %2672 = vpow2.f32 %v1647_v29 }
 0x172   :  { %v2655_v31 = vpop.eup %2654  ;;  %v1830_v62 = vmul.f32 %v2653_v56, %v3778_v12  ;;  %2674 = vpow2.f32 %v1645_v18 }
 0x173   :  { %v2657_v34 = vpop.eup %2656  ;;  %1892 = vst.msk [vmem:[%s3994_s6 + $0x190] sm:$0xff] %vm1841_vm2, %v1827_v2  ;;  %v1708_v6 = vadd.f32 1.0, %v2655_v31 }
 0x174   :  { %v2659_v8 = vpop.eup %2658  ;;  %1895 = vst.msk [vmem:[%s3994_s6 + $0x1a8] sm:$0xff] %vm1841_vm2, %v1830_v62  ;;  %v1829_v0 = vmul.f32 %v2657_v34, %v3783_v35 }
 0x175   :  { %v2661_v44 = vpop.eup %2660  ;;  %v1832_v47 = vmul.f32 %v2659_v8, %v3811_v45  ;;  %2676 = vrcp.f32 %v1708_v6 }
 0x176   :  { %v2663_v12 = vpop.eup %2662  ;;  %1894 = vst.msk [vmem:[%s3994_s6 + $0x1a0] sm:$0xff] %vm1841_vm2, %v1829_v0  ;;  %v1707_v27 = vadd.f32 1.0, %v2661_v44 }
 0x177   :  { %v2665_v43 = vpop.eup %2664  ;;  %1897 = vst.msk [vmem:[%s3994_s6 + $0x1b8] sm:$0xff] %vm1841_vm2, %v1832_v47  ;;  %v1831_v28 = vmul.f32 %v2663_v12, %v3816_v53 }
 0x178   :  { %v2667_v35 = vpop.eup %2666  ;;  %2678 = vrcp.f32 %v1707_v27  ;;  %v1710_v48 = vadd.f32 1.0, %v2665_v43 }
 0x179   :  { %v2669_v45 = vpop.eup %2668  ;;  %1896 = vst.msk [vmem:[%s3994_s6 + $0x1b0] sm:$0xff] %vm1841_vm2, %v1831_v28  ;;  %v1709_v63 = vadd.f32 1.0, %v2667_v35 }
 0x17a   :  { %v2671_v41 = vpop.eup %2670  ;;  %v1834_v9 = vmul.f32 %v2669_v45, %v3823_v4  ;;  %2680 = vrcp.f32 %v1710_v48 }
 0x17b   :  { %v2673_v30 = vpop.eup %2672  ;;  %v1833_v11 = vmul.f32 %v2671_v41, %v3839_v55  ;;  %2682 = vrcp.f32 %v1709_v63 }
 0x17c   :  { %v2675_v52 = vpop.eup %2674  ;;  %1899 = vst.msk [vmem:[%s3994_s6 + $0x1c8] sm:$0xff] %vm1841_vm2, %v1834_v9  ;;  %v1712_v53 = vadd.f32 1.0, %v2673_v30 }
 0x17d   :  { %1898 = vst.msk [vmem:[%s3994_s6 + $0x1c0] sm:$0xff] %vm1841_vm2, %v1833_v11  ;;  %v1711_v61 = vadd.f32 1.0, %v2675_v52 }
 0x17e   :  { %2684 = vrcp.f32 %v1712_v53 }
 0x17f   :  { %v2677_v4 = vpop.eup %2676  ;;  %2686 = vrcp.f32 %v1711_v61 }
 0x180   :  { %v1836_v17 = vmul.f32 %v2677_v4, %v3864_v16 }
 0x182   :  { %v2679_v55 = vpop.eup %2678  ;;  %1901 = vst.msk [vmem:[%s3994_s6 + $0x1d8] sm:$0xff] %vm1841_vm2, %v1836_v17 }
 0x183   :  { %v1835_v7 = vmul.f32 %v2679_v55, %v3870_v33 }
 0x184   :  { %v2681_v1 = vpop.eup %2680 }
 0x185   :  { %v2683_v60 = vpop.eup %2682  ;;  %1900 = vst.msk [vmem:[%s3994_s6 + $0x1d0] sm:$0xff] %vm1841_vm2, %v1835_v7  ;;  %v1838_v54 = vmul.f32 %v2681_v1, %v3875_v49 }
 0x186   :  { %v1837_v51 = vmul.f32 %v2683_v60, %v3891_v3 }
 0x187   :  { %1903 = vst.msk [vmem:[%s3994_s6 + $0x1e8] sm:$0xff] %vm1841_vm2, %v1838_v54 }
 0x188   :  { %v2685_v16 = vpop.eup %2684  ;;  %1902 = vst.msk [vmem:[%s3994_s6 + $0x1e0] sm:$0xff] %vm1841_vm2, %v1837_v51 }
 0x189   :  { %v2687_v33 = vpop.eup %2686  ;;  %v1840_v58 = vmul.f32 %v2685_v16, %v3896_v50 }
 0x18a   :  { %v1839_v36 = vmul.f32 %v2687_v33, %v3900_v21 }
 0x18b   :  { %1905 = vst.msk [vmem:[%s3994_s6 + $0x1f8] sm:$0xff] %vm1841_vm2, %v1840_v58 }
 0x18c   :  { %1904 = vst.msk [vmem:[%s3994_s6 + $0x1f0] sm:$0xff] %vm1841_vm2, %v1839_v36 }

// kernel: csp_block_forward.2
= control target key start
LH: loop header
LB: loop body
LE: loop exit
PB: predicated region body
PF: predicated region fallthrough
CT: control target
= control target key end

     0   :  { %s8132_s18 = smov 0   ;;  %s10031_s0 = inlined_call_operand.vmem [shape: f32[2,256,4], index: 0, kind: input, shape index: {}]   ;;  %s10032_s1 = inlined_call_operand.vmem [shape: f32[4,4], index: 1, kind: input, shape index: {}]   ;;  %s10033_s2 = inlined_call_operand.vmem [shape: f32[3,3,4,4], index: 2, kind: input, shape index: {}]   ;;  %s10034_s3 = inlined_call_operand.vmem [shape: f32[1,4], index: 3, kind: input, shape index: {}]   ;;  %s10035_s4 = inlined_call_operand.vmem [shape: f32[1,4], index: 4, kind: input, shape index: {}]   ;;  %s10036_s5 = inlined_call_operand.vmem [shape: f32[2,256,4], index: 5, kind: output, shape index: {}]  }
   0x1 LB: > { %s6529_s19 = sadd.s32 4294967295, %s8099_s18   ;;  %p6533_p0 = scmp.ge.s32.totalorder %s8099_s18, 1  ;;  %s8099_s18 = sphi %s8132_s18, %s15_s18  }
   0x2   : > { %p187_p1 = scmp.lt.s32.totalorder %s8099_s18, 3 }
   0x4   : > { %p188_p2 = pnand %p6533_p0, %p187_p1 }
   0x6   : > { %191 = sbr.rel (%p188_p2) target bundleno = 813 (0x32d), region = 40 }
   0xd   : > { %v257_v0 = vld [vmem:[%s10032_s1] sm:$0xf]  ;;  %vm355_vm0 = vcmask 1043456   ;;  %p215_p3 = scmp.lt.s32.totalorder %s6529_s19, 1  ;;  %v6571_v1 = vld [vmem:[%s10033_s2 + $0x4] sm:$0xf]  ;;  %v584_v38 = vlaneseq }
   0xe   : > { %7200 = vmatprep.subr.msk.mxu0 %vm355_vm0, %v257_v0  ;;  %vm258_vm1 = vcmask 31744   ;;  %v10039_v34 = vmov 0.0   ;;  %v6700_v35 = vld [vmem:[%s10033_s2 + $0x10] sm:$0xf]  ;;  %v6734_v36 = vld [vmem:[%s10033_s2 + $0x14] sm:$0xf] }
   0xf   : > { %7201 = vmatpush3.msk.msra.mxu0 %vm355_vm0, %v257_v0  ;;  %s10428_s19 = smov (!%p215_p3, %s6529_s19), 1  ;;  %7450 = vmatprep.subr.msk.mxu1 %vm355_vm0, %v6700_v35  ;;  %v1001_v37 = vld [vmem:[%s10033_s2] sm:$0xf]  ;;  %v8240_v39 = vshrl.u32 %v584_v38, 7  ;;  %v8249_v46 = vld [vmem:[%s10033_s2 + $0x8] sm:$0xf] }
  0x10   : > { %7250 = vmatprep.subr.msk.mxu0 %vm355_vm0, %v6571_v1  ;;  %s6868_s24 = sshll.u32 %s10428_s19, 8  ;;  %7451 = vmatpush3.msk.msra.mxu1 %vm355_vm0, %v6700_v35  ;;  %v8277_v63 = vld [vmem:[%s10033_s2 + $0x18] sm:$0xf] }
  0x11   : > { %s8157_s27 = scalar_lea.vmem %s10031_s0, %s6868_s24  ;;  %7500 = vmatprep.subr.msk.mxu1 %vm355_vm0, %v6734_v36  ;;  %v587_v40 = vadd.s32 16, %v8240_v39  ;;  %v586_v41 = vadd.s32 8, %v8240_v39  ;;  %v589_v42 = vadd.s32 32, %v8240_v39  ;;  %v588_v43 = vadd.s32 24, %v8240_v39  ;;  %s9828_s28 = scalar_lea.vmem %s10036_s5, %s6868_s24 }
  0x12   : > { %v225_v2 = vld [vmem:[%s8157_s27] sm:$0xff]  ;;  %v226_v3 = vld [vmem:[%s8157_s27 + $0x8] sm:$0xff]  ;;  %v227_v4 = vld [vmem:[%s8157_s27 + $0x10] sm:$0xff]  ;;  %v621_v47 = vand.u32 15, %v8240_v39  ;;  %v591_v49 = vadd.s32 48, %v8240_v39  ;;  %v590_v51 = vadd.s32 40, %v8240_v39 }
  0x13   : > { %7202 = vmatprep.mubr.msk.f32.mxu0 %vm258_vm1, %v225_v2  ;;  %v228_v5 = vld [vmem:[%s8157_s27 + $0x18] sm:$0xff]  ;;  %v229_v6 = vld [vmem:[%s8157_s27 + $0x20] sm:$0xff]  ;;  %v230_v7 = vld [vmem:[%s8157_s27 + $0x28] sm:$0xff]  ;;  %v635_v44 = vand.u32 15, %v587_v40  ;;  %v628_v45 = vand.u32 15, %v586_v41  ;;  %v649_v48 = vand.u32 15, %v589_v42 }
  0x14   : > { %7203 = vmatmul.mubr.msk.f32.vlgmr.msra.gmra.mrb[0].mxu0 %vm258_vm1, %v226_v3  ;;  %v231_v8 = vld [vmem:[%s8157_s27 + $0x30] sm:$0xff]  ;;  %v232_v9 = vld [vmem:[%s8157_s27 + $0x38] sm:$0xff]  ;;  %v233_v10 = vld [vmem:[%s8157_s27 + $0x40] sm:$0xff]  ;;  %v642_v50 = vand.u32 15, %v588_v43  ;;  %v593_v52 = vadd.s32 64, %v8240_v39  ;;  %vm2359_vm2 = vcmp.lt.s32.totalorder %v8240_v39, 7 }
  0x15   : > { %7205 = vmatprep.mubr.msk.f32.mxu0 %vm258_vm1, %v227_v4  ;;  %7251 = vmatpush3.msk.msra.mxu0 %vm355_vm0, %v6571_v1  ;;  %v234_v11 = vld [vmem:[%s8157_s27 + $0x48] sm:$0xff]  ;;  %v235_v12 = vld [vmem:[%s8157_s27 + $0x50] sm:$0xff]  ;;  %v236_v13 = vld [vmem:[%s8157_s27 + $0x58] sm:$0xff]  ;;  %vm1034_vm3 = vcmp.lt.s32.totalorder %v8240_v39, 1  ;;  %v8259_v54 = vadd.s32 4294967295, %v635_v44  ;;  %v8261_v55 = vadd.s32 1, %v628_v45 }
  0x16   : > { %v237_v14 = vld [vmem:[%s8157_s27 + $0x60] sm:$0xff]  ;;  %v238_v15 = vld [vmem:[%s8157_s27 + $0x68] sm:$0xff]  ;;  %v239_v16 = vld [vmem:[%s8157_s27 + $0x70] sm:$0xff]  ;;  %7300 = vmatprep.subr.msk.mxu0 %vm355_vm0, %v1001_v37  ;;  %v592_v59 = vadd.s32 56, %v8240_v39  ;;  %v8266_v60 = vadd.s32 4294967295, %v621_v47  ;;  %v8279_v0 = vadd.s32 4294967295, %v649_v48 }
  0x17   : > { %v240_v17 = vld [vmem:[%s8157_s27 + $0x78] sm:$0xff]  ;;  %v241_v18 = vld [vmem:[%s8157_s27 + $0x80] sm:$0xff]  ;;  %v242_v19 = vld [vmem:[%s8157_s27 + $0x88] sm:$0xff]  ;;  %v663_v1 = vand.u32 15, %v591_v49  ;;  %v8283_v2 = vadd.s32 1, %v642_v50  ;;  %v656_v3 = vand.u32 15, %v590_v51 }
  0x18   : > { %7206 = vmatmul.mubr.msk.f32.gmra.mrb[2].mxu0 %vm258_vm1, %v228_v5  ;;  %v243_v20 = vld [vmem:[%s8157_s27 + $0x90] sm:$0xff]  ;;  %v244_v21 = vld [vmem:[%s8157_s27 + $0x98] sm:$0xff]  ;;  %v245_v22 = vld [vmem:[%s8157_s27 + $0xa0] sm:$0xff]  ;;  %v677_v4 = vand.u32 15, %v593_v52  ;;  %v595_v5 = vadd.s32 80, %v8240_v39  ;;  %vm1229_vm4 = vcmp.ge.s32.totalorder %v8259_v54, 0 }
  0x19   : > { %7208 = vmatprep.mubr.msk.f32.mxu0 %vm258_vm1, %v229_v6  ;;  %v246_v23 = vld [vmem:[%s8157_s27 + $0xa8] sm:$0xff]  ;;  %v247_v24 = vld [vmem:[%s8157_s27 + $0xb0] sm:$0xff]  ;;  %v248_v25 = vld [vmem:[%s8157_s27 + $0xb8] sm:$0xff]  ;;  %vm2489_vm5 = vcmp.lt.s32.totalorder %v8261_v55, 16  ;;  %vm1227_vm6 = vcmp.ge.s32.totalorder %v8266_v60, 0  ;;  %vm1231_vm7 = vcmp.ge.s32.totalorder %v8279_v0, 0 }
  0x1a   : > { %v249_v26 = vld [vmem:[%s8157_s27 + $0xc0] sm:$0xff]  ;;  %v250_v27 = vld [vmem:[%s8157_s27 + $0xc8] sm:$0xff]  ;;  %v251_v28 = vld [vmem:[%s8157_s27 + $0xd0] sm:$0xff]  ;;  %vm2491_vm8 = vcmp.lt.s32.totalorder %v8283_v2, 16  ;;  %v599_v38 = vadd.s32 112, %v8240_v39  ;;  %v598_v51 = vadd.s32 104, %v8240_v39 }
  0x1b   : > { %v252_v29 = vld [vmem:[%s8157_s27 + $0xd8] sm:$0xff]  ;;  %v253_v30 = vld [vmem:[%s8157_s27 + $0xe0] sm:$0xff]  ;;  %v254_v31 = vld [vmem:[%s8157_s27 + $0xe8] sm:$0xff] }
  0x1c   : > { %7209 = vmatmul.mubr.msk.f32.gmra.mrb[4].mxu0 %vm258_vm1, %v230_v7  ;;  %v255_v32 = vld [vmem:[%s8157_s27 + $0xf0] sm:$0xff]  ;;  %v256_v33 = vld [vmem:[%s8157_s27 + $0xf8] sm:$0xff] }
  0x1d   : > { %7211 = vmatprep.mubr.msk.f32.mxu0 %vm258_vm1, %v231_v8 }
  0x20   : > { %7212 = vmatmul.mubr.msk.f32.gmra.mrb[6].mxu0 %vm258_vm1, %v232_v9 }
  0x21   : > { %7214 = vmatprep.mubr.msk.f32.mxu0 %vm258_vm1, %v233_v10 }
  0x24   : > { %7215 = vmatmul.mubr.msk.f32.gmra.mrb[8].mxu0 %vm258_vm1, %v234_v11 }
  0x25   : > { %7217 = vmatprep.mubr.msk.f32.mxu0 %vm258_vm1, %v235_v12  ;;  %v670_v12 = vand.u32 15, %v592_v59 }
  0x28   : > { %7218 = vmatmul.mubr.msk.f32.gmra.mrb[10].mxu0 %vm258_vm1, %v236_v13 }
  0x29   : > { %7220 = vmatprep.mubr.msk.f32.mxu0 %vm258_vm1, %v237_v14 }
  0x2c   : > { %7221 = vmatmul.mubr.msk.f32.gmra.mrb[12].mxu0 %vm258_vm1, %v238_v15  ;;  %v8317_v15 = vadd.s32 4294967295, %v663_v1 }
  0x2d   : > { %7223 = vmatprep.mubr.msk.f32.mxu0 %vm258_vm1, %v239_v16  ;;  %v594_v16 = vadd.s32 72, %v8240_v39 }
  0x2e   : > { %vm10050_vm9 = vcmp.ge.s32.totalorder %v8317_v15, 0 }
  0x30   : > { %7224 = vmatmul.mubr.msk.f32.gmra.mrb[14].mxu0 %vm258_vm1, %v240_v17  ;;  %v8324_v17 = vadd.s32 1, %v656_v3  ;;  %v719_v3 = vand.u32 15, %v599_v38 }
  0x31   : > { %7226 = vmatprep.mubr.msk.f32.mxu0 %vm258_vm1, %v241_v18  ;;  %v8326_v18 = vadd.s32 4294967295, %v677_v4 }
  0x32   : > { %vm10049_vm10 = vcmp.lt.s32.totalorder %v8324_v17, 16 }
  0x33   : > { %vm10056_vm11 = vcmp.ge.s32.totalorder %v8326_v18, 0 }
  0x34   : > { %7227 = vmatmul.mubr.msk.f32.gmra.mrb[16].mxu0 %vm258_vm1, %v242_v19  ;;  %v691_v19 = vand.u32 15, %v595_v5 }
  0x35   : > { %7229 = vmatprep.mubr.msk.f32.mxu0 %vm258_vm1, %v243_v20  ;;  %v597_v20 = vadd.s32 96, %v8240_v39 }
  0x38   : > { %7230 = vmatmul.mubr.msk.f32.gmra.mrb[18].mxu0 %vm258_vm1, %v244_v21 }
  0x39   : > { %7232 = vmatprep.mubr.msk.f32.mxu0 %vm258_vm1, %v245_v22 }
  0x3c   : > { %7233 = vmatmul.mubr.msk.f32.gmra.mrb[20].mxu0 %vm258_vm1, %v246_v23 }
  0x3d   : > { %7235 = vmatprep.mubr.msk.f32.mxu0 %vm258_vm1, %v247_v24 }
  0x40   : > { %7236 = vmatmul.mubr.msk.f32.gmra.mrb[22].mxu0 %vm258_vm1, %v248_v25 }
  0x41   : > { %7238 = vmatprep.mubr.msk.f32.mxu0 %vm258_vm1, %v249_v26 }
  0x44   : > { %7239 = vmatmul.mubr.msk.f32.gmra.mrb[24].mxu0 %vm258_vm1, %v250_v27 }
  0x45   : > { %7241 = vmatprep.mubr.msk.f32.mxu0 %vm258_vm1, %v251_v28 }
  0x48   : > { %7242 = vmatmul.mubr.msk.f32.gmra.mrb[26].mxu0 %vm258_vm1, %v252_v29  ;;  %v8351_v29 = vadd.s32 1, %v670_v12 }
  0x49   : > { %7244 = vmatprep.mubr.msk.f32.mxu0 %vm258_vm1, %v253_v30  ;;  %v596_v30 = vadd.s32 88, %v8240_v39 }
  0x4a   : > { %vm10055_vm12 = vcmp.lt.s32.totalorder %v8351_v29, 16 }
  0x4b   : > { %v698_v50 = vand.u32 15, %v596_v30 }
  0x4c   : > { %7245 = vmatmul.mubr.msk.f32.gmra.mrb[28].mxu0 %vm258_vm1, %v254_v31 }
  0x4d   : > { %7247 = vmatprep.mubr.msk.f32.mxu0 %vm258_vm1, %v255_v32 }
  0x50   : > { %7248 = vmatmul.mubr.msk.f32.gmra.mrb[30].mxu0 %vm258_vm1, %v256_v33  ;;  %v684_v33 = vand.u32 15, %v594_v16 }
  0x51   : > { %7252 = vmatprep.mubr.f32.mxu0 %v10039_v34 }
  0x52   : > { %v8424_v59 = vadd.s32 1, %v684_v33  ;;  %v8475_v33 = vadd.s32 4294967295, %v719_v3 }
  0x54   : > { %7253 = vmatmul.mubr.f32.vlgmr.msra.gmra.mrb[32].mxu0 %v10039_v34  ;;  %vm10063_vm14 = vcmp.lt.s32.totalorder %v8424_v59, 16 }
  0x55   : > { %7301 = vmatpush3.msk.msra.mxu0 %vm355_vm0, %v1001_v37  ;;  %v705_v37 = vand.u32 15, %v597_v20  ;;  %v8455_v20 = vadd.s32 1, %v698_v50 }
  0x56   : > { %7350 = vmatprep.subr.msk.mxu0 %vm355_vm0, %v8249_v46 }
  0x57   : > { %v8426_v1 = vadd.s32 4294967295, %v705_v37  ;;  %10162 = vst [vmem:[#allocation16_spill] sm:$0xff] %v8455_v20  ;;  %v600_v37 = vadd.s32 120, %v8240_v39 }
  0x59   : > { %vm10077_vm15 = vcmp.ge.s32.totalorder %v8426_v1, 0 }
  0xe7   : > { %v7204_v53 = vpop.f32.mrb[0].mxu0 }
  0xe8   : > { %v1003_v56 = vrot.slane %v7204_v53, 7  ;;  %v2328_v57 = vrot.slane %v7204_v53, 1  ;;  %v8263_v58 = vpop.f32.mrb[1].mxu0 }
  0xe9   : > { %v10038_v61 = vrot.slane %v8263_v58, 7  ;;  %v10037_v62 = vrot.slane %v8263_v58, 1  ;;  %7255 = vmatprep.mubr.msk.f32.mxu0 %vm258_vm1, %v8263_v58  ;;  %7452 = vmatprep.mubr.msk.f32.mxu1 %vm258_vm1, %v8263_v58 }
  0xea   : > { %7256 = vmatmul.mubr.msk.f32.gmra.mrb[34].mxu0 %vm258_vm1, %v7204_v53  ;;  %7453 = vmatmul.mubr.msk.f32.vlgmr.msra.gmra.mrb[0].mxu1 %vm258_vm1, %v7204_v53 }
  0xeb   : > { %7501 = vmatpush3.msk.msra.mxu1 %vm355_vm0, %v6734_v36  ;;  %v8287_v6 = vpop.f32.mrb[2].mxu0  ;;  %v8293_v7 = vsel %vm2359_vm2, %v10037_v62, %v2328_v57  ;;  %v8300_v8 = vsel %vm1034_vm3, %v10038_v61, %v1003_v56  ;;  %v8371_v36 = vadd.s32 4294967295, %v691_v19 }
  0xec   : > { %10148 = vst [vmem:[#allocation2_spill] sm:$0xff] %v8287_v6  ;;  %10149 = vst [vmem:[#allocation3_spill] sm:$0xff] %v8300_v8  ;;  %v8303_v9 = vpop.f32.mrb[3].mxu0  ;;  %7550 = vmatprep.subr.msk.mxu1 %vm355_vm0, %v8277_v63  ;;  %v2330_v10 = vrot.slane %v8287_v6, 1  ;;  %v1005_v11 = vrot.slane %v8287_v6, 7 }
  0xed   : > { %10150 = vst [vmem:[#allocation4_spill] sm:$0xff] %v8303_v9  ;;  %v1004_v13 = vrot.slane %v8303_v9, 7  ;;  %v2329_v14 = vrot.slane %v8303_v9, 1  ;;  %7258 = vmatprep.mubr.msk.f32.mxu0 %vm258_vm1, %v8303_v9  ;;  %7455 = vmatprep.mubr.msk.f32.mxu1 %vm258_vm1, %v8303_v9  ;;  %vm10064_vm13 = vcmp.ge.s32.totalorder %v8371_v36, 0 }
  0xee   : > { %7259 = vmatmul.mubr.msk.f32.gmra.mrb[36].mxu0 %vm258_vm1, %v8287_v6  ;;  %7456 = vmatmul.mubr.msk.f32.gmra.mrb[2].mxu1 %vm258_vm1, %v8287_v6 }
  0xef   : > { %v8329_v21 = vpop.f32.mrb[4].mxu0  ;;  %v8333_v22 = vsel %vm2359_vm2, %v2328_v57, %v2329_v14  ;;  %v8337_v23 = vsel %vm1034_vm3, %v1003_v56, %v1004_v13  ;;  %v8341_v24 = vsel %vm2359_vm2, %v2329_v14, %v2330_v10  ;;  %v8345_v25 = vsel %vm1034_vm3, %v1004_v13, %v1005_v11 }
  0xf0   : > { %10151 = vst [vmem:[#allocation5_spill] sm:$0xff] %v8329_v21  ;;  %v8347_v26 = vpop.f32.mrb[5].mxu0  ;;  %v2332_v27 = vrot.slane %v8329_v21, 1  ;;  %v1007_v28 = vrot.slane %v8329_v21, 7  ;;  %v8365_v35 = vsel %vm1227_vm6, %v8337_v23, 0.0  ;;  %v8377_v40 = vsel %vm1229_vm4, %v8337_v23, 0.0 }
  0xf1   : > { %10152 = vst [vmem:[#allocation6_spill] sm:$0xff] %v8347_v26  ;;  %v1006_v31 = vrot.slane %v8347_v26, 7  ;;  %v2331_v32 = vrot.slane %v8347_v26, 1  ;;  %7261 = vmatprep.mubr.msk.f32.mxu0 %vm258_vm1, %v8347_v26  ;;  %7458 = vmatprep.mubr.msk.f32.mxu1 %vm258_vm1, %v8347_v26  ;;  %10153 = vst [vmem:[#allocation7_spill] sm:$0xff] %v8365_v35  ;;  %v4107_v54 = vsel %vm2489_vm5, %v8333_v22, 0.0  ;;  %v1423_v60 = vsel %vm1231_vm7, %v8337_v23, 0.0 }
  0xf2   : > { %7262 = vmatmul.mubr.msk.f32.gmra.mrb[38].mxu0 %vm258_vm1, %v8329_v21  ;;  %7459 = vmatmul.mubr.msk.f32.gmra.mrb[4].mxu1 %vm258_vm1, %v8329_v21  ;;  %10154 = vst [vmem:[#allocation8_spill] sm:$0xff] %v8377_v40 }
  0xf3   : > { %v8379_v41 = vpop.f32.mrb[6].mxu0  ;;  %v8383_v42 = vsel %vm2359_vm2, %v2330_v10, %v2331_v32  ;;  %v8387_v43 = vsel %vm1034_vm3, %v1005_v11, %v1006_v31  ;;  %v8391_v44 = vsel %vm2359_vm2, %v2331_v32, %v2332_v27  ;;  %v8395_v45 = vsel %vm1034_vm3, %v1006_v31, %v1007_v28 }
  0xf4   : > { %10155 = vst [vmem:[#allocation9_spill] sm:$0xff] %v8379_v41  ;;  %v8397_v47 = vpop.f32.mrb[7].mxu0  ;;  %v8402_v48 = vsel %vm2489_vm5, %v8383_v42, 0.0  ;;  %v2334_v49 = vrot.slane %v8379_v41, 1  ;;  %v1009_v56 = vrot.slane %v8379_v41, 7  ;;  %v8418_v57 = vsel %vm1229_vm4, %v8387_v43, 0.0 }
  0xf5   : > { %10156 = vst [vmem:[#allocation10_spill] sm:$0xff] %v8397_v47  ;;  %10157 = vst [vmem:[#allocation11_spill] sm:$0xff] %v8402_v48  ;;  %v1008_v52 = vrot.slane %v8397_v47, 7  ;;  %v2333_v53 = vrot.slane %v8397_v47, 1  ;;  %7264 = vmatprep.mubr.msk.f32.mxu0 %vm258_vm1, %v8397_v47  ;;  %7461 = vmatprep.mubr.msk.f32.mxu1 %vm258_vm1, %v8397_v47  ;;  %v8431_v4 = vsel %vm1231_vm7, %v8387_v43, 0.0  ;;  %v712_v31 = vand.u32 15, %v598_v51 }
  0xf6   : > { %10158 = vst [vmem:[#allocation12_spill] sm:$0xff] %v8418_v57  ;;  %7265 = vmatmul.mubr.msk.f32.gmra.mrb[40].mxu0 %vm258_vm1, %v8379_v41  ;;  %7462 = vmatmul.mubr.msk.f32.gmra.mrb[6].mxu1 %vm258_vm1, %v8379_v41  ;;  %10159 = vst [vmem:[#allocation13_spill] sm:$0xff] %v8431_v4  ;;  %v603_v48 = vadd.s32 144, %v8240_v39  ;;  %v4109_v0 = vsel %vm2491_vm8, %v8383_v42, 0.0  ;;  %vm10274_vm5 = vcmp.ge.s32.totalorder %v8326_v18, 0 }
  0xf7   : > { %v8433_v5 = vpop.f32.mrb[8].mxu0  ;;  %v8437_v10 = vsel %vm2359_vm2, %v2332_v27, %v2333_v53  ;;  %v8441_v11 = vsel %vm1034_vm3, %v1007_v28, %v1008_v52  ;;  %v8445_v12 = vsel %vm2359_vm2, %v2333_v53, %v2334_v49  ;;  %v8449_v13 = vsel %vm1034_vm3, %v1008_v52, %v1009_v56 }
  0xf8   : > { %10160 = vst [vmem:[#allocation14_spill] sm:$0xff] %v8433_v5  ;;  %v8451_v14 = vpop.f32.mrb[9].mxu0  ;;  %v2336_v16 = vrot.slane %v8433_v5, 1  ;;  %v1011_v19 = vrot.slane %v8433_v5, 7  ;;  %v601_v27 = vadd.s32 128, %v8240_v39  ;;  %v8469_v32 = vsel %vm1231_vm7, %v8441_v11, 0.0 }
  0xf9   : > { %10161 = vst [vmem:[#allocation15_spill] sm:$0xff] %v8451_v14  ;;  %v1010_v28 = vrot.slane %v8451_v14, 7  ;;  %v2335_v30 = vrot.slane %v8451_v14, 1  ;;  %7267 = vmatprep.mubr.msk.f32.mxu0 %vm258_vm1, %v8451_v14  ;;  %7464 = vmatprep.mubr.msk.f32.mxu1 %vm258_vm1, %v8451_v14  ;;  %10163 = vst [vmem:[#allocation17_spill] sm:$0xff] %v8469_v32  ;;  %v8481_v38 = vsel %vm10050_vm9, %v8441_v11, 0.0  ;;  %v8486_v50 = vsel %vm2491_vm8, %v8437_v10, 0.0 }
  0xfa   : > { %7268 = vmatmul.mubr.msk.f32.gmra.mrb[42].mxu0 %vm258_vm1, %v8433_v5  ;;  %7465 = vmatmul.mubr.msk.f32.gmra.mrb[8].mxu1 %vm258_vm1, %v8433_v5  ;;  %10164 = vst [vmem:[#allocation18_spill] sm:$0xff] %v8481_v38  ;;  %10165 = vst [vmem:[#allocation19_spill] sm:$0xff] %v8486_v50  ;;  %v747_v26 = vand.u32 15, %v603_v48  ;;  %vm10276_vm7 = vcmp.ge.s32.totalorder %v8371_v36, 0 }
  0xfb   : > { %v8488_v51 = vpop.f32.mrb[10].mxu0  ;;  %v8492_v52 = vsel %vm2359_vm2, %v2334_v49, %v2335_v30  ;;  %v8496_v53 = vsel %vm1034_vm3, %v1009_v56, %v1010_v28  ;;  %v8500_v3 = vsel %vm2359_vm2, %v2335_v30, %v2336_v16  ;;  %v8504_v62 = vsel %vm1034_vm3, %v1010_v28, %v1011_v19 }
  0xfc   : > { %10166 = vst [vmem:[#allocation20_spill] sm:$0xff] %v8488_v51  ;;  %v8506_v61 = vpop.f32.mrb[11].mxu0  ;;  %v2338_v34 = vrot.slane %v8488_v51, 1  ;;  %v1013_v50 = vrot.slane %v8488_v51, 7  ;;  %v733_v49 = vand.u32 15, %v601_v27  ;;  %v8519_v28 = vadd.s32 1, %v712_v31 }
  0xfd   : > { %10167 = vst [vmem:[#allocation21_spill] sm:$0xff] %v8506_v61  ;;  %v1012_v56 = vrot.slane %v8506_v61, 7  ;;  %v2337_v5 = vrot.slane %v8506_v61, 1  ;;  %7270 = vmatprep.mubr.msk.f32.mxu0 %vm258_vm1, %v8506_v61  ;;  %7467 = vmatprep.mubr.msk.f32.mxu1 %vm258_vm1, %v8506_v61  ;;  %v8524_v27 = vsel %vm10050_vm9, %v8496_v53, 0.0  ;;  %v726_v30 = vand.u32 15, %v600_v37 }
  0xfe   : > { %10168 = vst [vmem:[#allocation22_spill] sm:$0xff] %v8519_v28  ;;  %10169 = vst [vmem:[#allocation23_spill] sm:$0xff] %v8524_v27  ;;  %7271 = vmatmul.mubr.msk.f32.gmra.mrb[44].mxu0 %vm258_vm1, %v8488_v51  ;;  %7468 = vmatmul.mubr.msk.f32.gmra.mrb[10].mxu1 %vm258_vm1, %v8488_v51  ;;  %v602_v61 = vadd.s32 136, %v8240_v39  ;;  %v8534_v14 = vsel %vm10056_vm11, %v8496_v53, 0.0  ;;  %v8539_v31 = vsel %vm10049_vm10, %v8492_v52, 0.0  ;;  %vm10076_vm10 = vcmp.lt.s32.totalorder %v8455_v20, 16 }
  0xff   : > { %10170 = vst [vmem:[#allocation24_spill] sm:$0xff] %v8534_v14  ;;  %10171 = vst [vmem:[#allocation25_spill] sm:$0xff] %v8539_v31  ;;  %v8541_v41 = vpop.f32.mrb[12].mxu0  ;;  %v8545_v47 = vsel %vm2359_vm2, %v2336_v16, %v2337_v5  ;;  %v8549_v37 = vsel %vm1034_vm3, %v1011_v19, %v1012_v56  ;;  %v8553_v51 = vsel %vm2359_vm2, %v2337_v5, %v2338_v34  ;;  %v8563_v16 = vadd.s32 4294967295, %v733_v49 }
 0x100   : > { %10172 = vst [vmem:[#allocation26_spill] sm:$0xff] %v8541_v41  ;;  %v8557_v14 = vsel %vm1034_vm3, %v1012_v56, %v1013_v50  ;;  %v8559_v38 = vpop.f32.mrb[13].mxu0  ;;  %v2340_v31 = vrot.slane %v8541_v41, 1  ;;  %v1015_v21 = vrot.slane %v8541_v41, 7  ;;  %vm10099_vm9 = vcmp.ge.s32.totalorder %v8475_v33, 0 }
 0x101   : > { %10173 = vst [vmem:[#allocation27_spill] sm:$0xff] %v8557_v14  ;;  %10174 = vst [vmem:[#allocation28_spill] sm:$0xff] %v8559_v38  ;;  %v1014_v19 = vrot.slane %v8559_v38, 7  ;;  %v2339_v4 = vrot.slane %v8559_v38, 1  ;;  %7273 = vmatprep.mubr.msk.f32.mxu0 %vm258_vm1, %v8559_v38  ;;  %7470 = vmatprep.mubr.msk.f32.mxu1 %vm258_vm1, %v8559_v38  ;;  %v605_v5 = vadd.s32 160, %v8240_v39  ;;  %v8577_v48 = vsel %vm10056_vm11, %v8549_v37, 0.0 }
 0x102   : > { %10175 = vst [vmem:[#allocation29_spill] sm:$0xff] %v8577_v48  ;;  %7274 = vmatmul.mubr.msk.f32.gmra.mrb[46].mxu0 %vm258_vm1, %v8541_v41  ;;  %7471 = vmatmul.mubr.msk.f32.gmra.mrb[12].mxu1 %vm258_vm1, %v8541_v41  ;;  %v8583_v49 = vadd.s32 1, %v726_v30  ;;  %v740_v56 = vand.u32 15, %v602_v61  ;;  %v8588_v38 = vsel %vm10064_vm13, %v8549_v37, 0.0  ;;  %v8593_v6 = vsel %vm10055_vm12, %v8545_v47, 0.0 }
 0x103   : > { %10177 = vst [vmem:[#allocation31_spill] sm:$0xff] %v8588_v38  ;;  %10178 = vst [vmem:[#allocation32_spill] sm:$0xff] %v8593_v6  ;;  %v8595_v9 = vpop.f32.mrb[14].mxu0  ;;  %v8599_v40 = vsel %vm2359_vm2, %v2338_v34, %v2339_v4  ;;  %v8603_v30 = vsel %vm1034_vm3, %v1013_v50, %v1014_v19  ;;  %v8607_v61 = vsel %vm2359_vm2, %v2339_v4, %v2340_v31  ;;  %v8617_v34 = vadd.s32 4294967295, %v747_v26 }
 0x104   : > { %10176 = vst [vmem:[#allocation30_spill] sm:$0xff] %v8583_v49  ;;  %10179 = vst [vmem:[#allocation33_spill] sm:$0xff] %v8595_v9  ;;  %v8611_v41 = vsel %vm1034_vm3, %v1014_v19, %v1015_v21  ;;  %v8613_v38 = vpop.f32.mrb[15].mxu0  ;;  %v2342_v6 = vrot.slane %v8595_v9, 1  ;;  %v1017_v48 = vrot.slane %v8595_v9, 7  ;;  %v604_v27 = vadd.s32 152, %v8240_v39 }
 0x105   : > { %10180 = vst [vmem:[#allocation34_spill] sm:$0xff] %v8599_v40  ;;  %10181 = vst [vmem:[#allocation35_spill] sm:$0xff] %v8603_v30  ;;  %v1016_v50 = vrot.slane %v8613_v38, 7  ;;  %v2341_v32 = vrot.slane %v8613_v38, 1  ;;  %7276 = vmatprep.mubr.msk.f32.mxu0 %vm258_vm1, %v8613_v38  ;;  %7473 = vmatprep.mubr.msk.f32.mxu1 %vm258_vm1, %v8613_v38  ;;  %vm10087_vm12 = vcmp.lt.s32.totalorder %v8519_v28, 16  ;;  %vm10098_vm11 = vcmp.ge.s32.totalorder %v8563_v16, 0 }
 0x106   : > { %10182 = vst [vmem:[#allocation36_spill] sm:$0xff] %v8607_v61  ;;  %10183 = vst [vmem:[#allocation37_spill] sm:$0xff] %v8611_v41  ;;  %v761_v4 = vand.u32 15, %v605_v5  ;;  %v8631_v26 = vsel %vm10064_vm13, %v8603_v30, 0.0  ;;  %7277 = vmatmul.mubr.msk.f32.gmra.mrb[48].mxu0 %vm258_vm1, %v8595_v9  ;;  %7474 = vmatmul.mubr.msk.f32.gmra.mrb[14].mxu1 %vm258_vm1, %v8595_v9  ;;  %v8637_v19 = vadd.s32 1, %v740_v56  ;;  %v8643_v57 = vsel %vm10077_vm15, %v8603_v30, 0.0 }
 0x107   : > { %10184 = vst [vmem:[#allocation38_spill] sm:$0xff] %v8613_v38  ;;  %10185 = vst [vmem:[#allocation39_spill] sm:$0xff] %v8617_v34  ;;  %v607_v38 = vadd.s32 176, %v8240_v39  ;;  %v8648_v5 = vsel %vm10063_vm14, %v8599_v40, 0.0  ;;  %v8654_v35 = vsel %vm2359_vm2, %v2340_v31, %v2341_v32  ;;  %v8658_v56 = vsel %vm1034_vm3, %v1015_v21, %v1016_v50 }
 0x108   : > { %10186 = vst [vmem:[#allocation40_spill] sm:$0xff] %v8631_v26  ;;  %10187 = vst [vmem:[#allocation41_spill] sm:$0xff] %v8637_v19  ;;  %v8650_v26 = vpop.f32.mrb[16].mxu0  ;;  %v8662_v9 = vsel %vm2359_vm2, %v2341_v32, %v2342_v6  ;;  %v754_v31 = vand.u32 15, %v604_v27  ;;  %v606_v30 = vadd.s32 168, %v8240_v39  ;;  %vm10093_vm14 = vcmp.lt.s32.totalorder %v8583_v49, 16 }
 0x109   : > { %10188 = vst [vmem:[#allocation42_spill] sm:$0xff] %v8643_v57  ;;  %10189 = vst [vmem:[#allocation43_spill] sm:$0xff] %v8648_v5  ;;  %v8666_v57 = vsel %vm1034_vm3, %v1016_v50, %v1017_v48  ;;  %v8668_v41 = vpop.f32.mrb[17].mxu0  ;;  %v2344_v5 = vrot.slane %v8650_v26, 1  ;;  %v1019_v61 = vrot.slane %v8650_v26, 7  ;;  %vm1245_vm13 = vcmp.ge.s32.totalorder %v8617_v34, 0 }
 0x10a   : > { %10190 = vst [vmem:[#allocation44_spill] sm:$0xff] %v8650_v26  ;;  %10191 = vst [vmem:[#allocation45_spill] sm:$0xff] %v8654_v35  ;;  %v1018_v21 = vrot.slane %v8668_v41, 7  ;;  %v2343_v14 = vrot.slane %v8668_v41, 1  ;;  %7279 = vmatprep.mubr.msk.f32.mxu0 %vm258_vm1, %v8668_v41  ;;  %7476 = vmatprep.mubr.msk.f32.mxu1 %vm258_vm1, %v8668_v41  ;;  %v8681_v32 = vadd.s32 4294967295, %v761_v4  ;;  %v8686_v27 = vsel %vm10077_vm15, %v8658_v56, 0.0 }
 0x10b   : > { %10192 = vst [vmem:[#allocation46_spill] sm:$0xff] %v8658_v56  ;;  %10193 = vst [vmem:[#allocation47_spill] sm:$0xff] %v8662_v9  ;;  %7280 = vmatmul.mubr.msk.f32.gmra.mrb[50].mxu0 %vm258_vm1, %v8650_v26  ;;  %7477 = vmatmul.mubr.msk.f32.gmra.mrb[16].mxu1 %vm258_vm1, %v8650_v26  ;;  %v775_v50 = vand.u32 15, %v607_v38  ;;  %v8701_v4 = vsel %vm10076_vm10, %v8654_v35, 0.0  ;;  %v768_v20 = vand.u32 15, %v606_v30  ;;  %vm10109_vm10 = vcmp.lt.s32.totalorder %v8637_v19, 16 }
 0x10c   : > { %10194 = vst [vmem:[#allocation48_spill] sm:$0xff] %v8666_v57  ;;  %10195 = vst [vmem:[#allocation49_spill] sm:$0xff] %v8668_v41  ;;  %v609_v41 = vadd.s32 192, %v8240_v39  ;;  %v8696_v57 = vsel %vm10099_vm9, %v8658_v56, 0.0  ;;  %v8707_v9 = vsel %vm2359_vm2, %v2342_v6, %v2343_v14  ;;  %v8711_v38 = vsel %vm1034_vm3, %v1017_v48, %v1018_v21  ;;  %v10279_v36 = vld [vmem:[#allocation34_spill] sm:$0xff] }
 0x10d   : > { %10196 = vst [vmem:[#allocation50_spill] sm:$0xff] %v8681_v32  ;;  %10197 = vst [vmem:[#allocation51_spill] sm:$0xff] %v8686_v27  ;;  %v8703_v27 = vpop.f32.mrb[18].mxu0  ;;  %v8715_v26 = vsel %vm2359_vm2, %v2343_v14, %v2344_v5  ;;  %v8725_v6 = vadd.s32 1, %v754_v31  ;;  %vm1247_vm15 = vcmp.ge.s32.totalorder %v8681_v32, 0  ;;  %v608_v14 = vadd.s32 184, %v8240_v39 }
 0x10e   : > { %10198 = vst [vmem:[#allocation52_spill] sm:$0xff] %v8696_v57  ;;  %10199 = vst [vmem:[#allocation53_spill] sm:$0xff] %v8701_v4  ;;  %v8719_v57 = vsel %vm1034_vm3, %v1018_v21, %v1019_v61  ;;  %v8721_v56 = vpop.f32.mrb[19].mxu0  ;;  %v2346_v4 = vrot.slane %v8703_v27, 1  ;;  %v1021_v35 = vrot.slane %v8703_v27, 7  ;;  %v8739_v30 = vsel %vm10099_vm9, %v8711_v38, 0.0 }
 0x10f   : > { %10200 = vst [vmem:[#allocation54_spill] sm:$0xff] %v8703_v27  ;;  %10201 = vst [vmem:[#allocation55_spill] sm:$0xff] %v8707_v9  ;;  %v1020_v48 = vrot.slane %v8721_v56, 7  ;;  %v2345_v40 = vrot.slane %v8721_v56, 1  ;;  %7282 = vmatprep.mubr.msk.f32.mxu0 %vm258_vm1, %v8721_v56  ;;  %7479 = vmatprep.mubr.msk.f32.mxu1 %vm258_vm1, %v8721_v56  ;;  %v8745_v31 = vadd.s32 4294967295, %v775_v50  ;;  %v789_v21 = vand.u32 15, %v609_v41 }
 0x110   : > { %10202 = vst [vmem:[#allocation56_spill] sm:$0xff] %v8711_v38  ;;  %10203 = vst [vmem:[#allocation57_spill] sm:$0xff] %v8715_v26  ;;  %7283 = vmatmul.mubr.msk.f32.gmra.mrb[52].mxu0 %vm258_vm1, %v8703_v27  ;;  %7480 = vmatmul.mubr.msk.f32.gmra.mrb[18].mxu1 %vm258_vm1, %v8703_v27 }
 0x111   : > { %10204 = vst [vmem:[#allocation58_spill] sm:$0xff] %v8719_v57  ;;  %10205 = vst [vmem:[#allocation59_spill] sm:$0xff] %v8721_v56  ;;  %v8750_v56 = vsel %vm10098_vm11, %v8711_v38, 0.0  ;;  %v8755_v57 = vsel %vm10087_vm12, %v8707_v9, 0.0  ;;  %v8761_v26 = vsel %vm2359_vm2, %v2344_v5, %v2345_v40  ;;  %v8765_v50 = vsel %vm1034_vm3, %v1019_v61, %v1020_v48 }
 0x112   : > { %10206 = vst [vmem:[#allocation60_spill] sm:$0xff] %v8725_v6  ;;  %10207 = vst [vmem:[#allocation61_spill] sm:$0xff] %v8739_v30  ;;  %v8757_v30 = vpop.f32.mrb[20].mxu0  ;;  %v8769_v41 = vsel %vm2359_vm2, %v2345_v40, %v2346_v4  ;;  %v8773_v27 = vsel %vm1034_vm3, %v1020_v48, %v1021_v35  ;;  %v8779_v5 = vadd.s32 1, %v768_v20  ;;  %v611_v9 = vadd.s32 208, %v8240_v39 }
 0x113   : > { %10208 = vst [vmem:[#allocation62_spill] sm:$0xff] %v8750_v56  ;;  %10209 = vst [vmem:[#allocation63_spill] sm:$0xff] %v8755_v57  ;;  %v8775_v56 = vpop.f32.mrb[21].mxu0  ;;  %v2348_v57 = vrot.slane %v8757_v30, 1  ;;  %v1023_v38 = vrot.slane %v8757_v30, 7  ;;  %vm10121_vm12 = vcmp.lt.s32.totalorder %v8725_v6, 16 }
 0x114   : > { %10210 = vst [vmem:[#allocation64_spill] sm:$0xff] %v8757_v30  ;;  %10211 = vst [vmem:[#allocation65_spill] sm:$0xff] %v8761_v26  ;;  %v1022_v61 = vrot.slane %v8775_v56, 7  ;;  %v2347_v28 = vrot.slane %v8775_v56, 1  ;;  %7285 = vmatprep.mubr.msk.f32.mxu0 %vm258_vm1, %v8775_v56  ;;  %7482 = vmatprep.mubr.msk.f32.mxu1 %vm258_vm1, %v8775_v56  ;;  %v782_v40 = vand.u32 15, %v608_v14  ;;  %v8792_v20 = vsel %vm10098_vm11, %v8765_v50, 0.0 }
 0x115   : > { %10212 = vst [vmem:[#allocation66_spill] sm:$0xff] %v8765_v50  ;;  %10213 = vst [vmem:[#allocation67_spill] sm:$0xff] %v8769_v41  ;;  %7286 = vmatmul.mubr.msk.f32.gmra.mrb[54].mxu0 %vm258_vm1, %v8757_v30  ;;  %7483 = vmatmul.mubr.msk.f32.gmra.mrb[20].mxu1 %vm258_vm1, %v8757_v30  ;;  %v8798_v48 = vadd.s32 4294967295, %v789_v21  ;;  %v8809_v14 = vsel %vm10093_vm14, %v8761_v26, 0.0  ;;  %vm1249_vm14 = vcmp.ge.s32.totalorder %v8745_v31, 0  ;;  %v803_v26 = vand.u32 15, %v611_v9 }
 0x116   : > { %10214 = vst [vmem:[#allocation68_spill] sm:$0xff] %v8773_v27  ;;  %10215 = vst [vmem:[#allocation69_spill] sm:$0xff] %v8775_v56  ;;  %v610_v27 = vadd.s32 200, %v8240_v39  ;;  %v8804_v56 = vsel %vm1245_vm13, %v8765_v50, 0.0  ;;  %v8815_v41 = vsel %vm2359_vm2, %v2346_v4, %v2347_v28  ;;  %v8819_v21 = vsel %vm1034_vm3, %v1021_v35, %v1022_v61 }
 0x117   : > { %10216 = vst [vmem:[#allocation70_spill] sm:$0xff] %v8779_v5  ;;  %10217 = vst [vmem:[#allocation71_spill] sm:$0xff] %v8792_v20  ;;  %v8811_v20 = vpop.f32.mrb[22].mxu0  ;;  %v8823_v30 = vsel %vm2359_vm2, %v2347_v28, %v2348_v57  ;;  %vm10131_vm11 = vcmp.lt.s32.totalorder %v8779_v5, 16  ;;  %v8841_v28 = vadd.s32 1, %v782_v40  ;;  %vm10140_vm9 = vcmp.ge.s32.totalorder %v8798_v48, 0 }
 0x118   : > { %10218 = vst [vmem:[#allocation72_spill] sm:$0xff] %v8804_v56  ;;  %10219 = vst [vmem:[#allocation73_spill] sm:$0xff] %v8809_v14  ;;  %v8827_v56 = vsel %vm1034_vm3, %v1022_v61, %v1023_v38  ;;  %v8829_v50 = vpop.f32.mrb[23].mxu0  ;;  %v2350_v14 = vrot.slane %v8811_v20, 1  ;;  %v1025_v4 = vrot.slane %v8811_v20, 7  ;;  %v8846_v61 = vsel %vm1245_vm13, %v8819_v21, 0.0 }
 0x119   : > { %10220 = vst [vmem:[#allocation74_spill] sm:$0xff] %v8811_v20  ;;  %10221 = vst [vmem:[#allocation75_spill] sm:$0xff] %v8815_v41  ;;  %v1024_v35 = vrot.slane %v8829_v50, 7  ;;  %v2349_v49 = vrot.slane %v8829_v50, 1  ;;  %7288 = vmatprep.mubr.msk.f32.mxu0 %vm258_vm1, %v8829_v50  ;;  %7485 = vmatprep.mubr.msk.f32.mxu1 %vm258_vm1, %v8829_v50  ;;  %v796_v9 = vand.u32 15, %v610_v27  ;;  %v8861_v40 = vsel %vm10109_vm10, %v8815_v41, 0.0 }
 0x11a   : > { %10222 = vst [vmem:[#allocation76_spill] sm:$0xff] %v8819_v21  ;;  %10223 = vst [vmem:[#allocation77_spill] sm:$0xff] %v8823_v30  ;;  %7289 = vmatmul.mubr.msk.f32.gmra.mrb[56].mxu0 %vm258_vm1, %v8811_v20  ;;  %7486 = vmatmul.mubr.msk.f32.gmra.mrb[22].mxu1 %vm258_vm1, %v8811_v20  ;;  %v613_v41 = vadd.s32 224, %v8240_v39  ;;  %vm10137_vm10 = vcmp.lt.s32.totalorder %v8841_v28, 16  ;;  %v614_v6 = vadd.s32 232, %v8240_v39 }
 0x11b   : > { %10224 = vst [vmem:[#allocation78_spill] sm:$0xff] %v8827_v56  ;;  %10225 = vst [vmem:[#allocation79_spill] sm:$0xff] %v8829_v50  ;;  %v8856_v50 = vsel %vm1247_vm15, %v8819_v21, 0.0  ;;  %v8867_v56 = vsel %vm2359_vm2, %v2348_v57, %v2349_v49  ;;  %v8871_v20 = vsel %vm1034_vm3, %v1023_v38, %v1024_v35  ;;  %v8875_v27 = vsel %vm2359_vm2, %v2349_v49, %v2350_v14 }
 0x11c   : > { %10226 = vst [vmem:[#allocation80_spill] sm:$0xff] %v8846_v61  ;;  %10227 = vst [vmem:[#allocation81_spill] sm:$0xff] %v8856_v50  ;;  %v8863_v61 = vpop.f32.mrb[24].mxu0  ;;  %v8879_v50 = vsel %vm1034_vm3, %v1024_v35, %v1025_v4  ;;  %v612_v49 = vadd.s32 216, %v8240_v39  ;;  %v8905_v35 = vadd.s32 1, %v796_v9 }
 0x11d   : > { %10228 = vst [vmem:[#allocation82_spill] sm:$0xff] %v8861_v40  ;;  %10229 = vst [vmem:[#allocation83_spill] sm:$0xff] %v8863_v61  ;;  %v8881_v30 = vpop.f32.mrb[25].mxu0  ;;  %v8883_v40 = vadd.s32 4294967295, %v803_v26  ;;  %v2352_v21 = vrot.slane %v8863_v61, 1  ;;  %v1027_v57 = vrot.slane %v8863_v61, 7 }
 0x11e   : > { %10230 = vst [vmem:[#allocation84_spill] sm:$0xff] %v8867_v56  ;;  %10231 = vst [vmem:[#allocation85_spill] sm:$0xff] %v8871_v20  ;;  %v1026_v38 = vrot.slane %v8881_v30, 7  ;;  %v2351_v19 = vrot.slane %v8881_v30, 1  ;;  %7291 = vmatprep.mubr.msk.f32.mxu0 %vm258_vm1, %v8881_v30  ;;  %7488 = vmatprep.mubr.msk.f32.mxu1 %vm258_vm1, %v8881_v30  ;;  %v8899_v26 = vsel %vm1247_vm15, %v8871_v20, 0.0 }
 0x11f   : > { %10232 = vst [vmem:[#allocation86_spill] sm:$0xff] %v8875_v27  ;;  %10233 = vst [vmem:[#allocation87_spill] sm:$0xff] %v8879_v50  ;;  %7292 = vmatmul.mubr.msk.f32.gmra.mrb[58].mxu0 %vm258_vm1, %v8863_v61  ;;  %7489 = vmatmul.mubr.msk.f32.gmra.mrb[24].mxu1 %vm258_vm1, %v8863_v61  ;;  %v615_v50 = vadd.s32 240, %v8240_v39  ;;  %v8916_v27 = vsel %vm10121_vm12, %v8867_v56, 0.0  ;;  %vm10145_vm12 = vcmp.ge.s32.totalorder %v8883_v40, 0 }
 0x120   : > { %10234 = vst [vmem:[#allocation88_spill] sm:$0xff] %v8881_v30  ;;  %10235 = vst [vmem:[#allocation89_spill] sm:$0xff] %v8899_v26  ;;  %v8911_v30 = vsel %vm1249_vm14, %v8871_v20, 0.0  ;;  %v8918_v26 = vpop.f32.mrb[26].mxu0  ;;  %v8922_v32 = vsel %vm2359_vm2, %v2350_v14, %v2351_v19  ;;  %v8926_v9 = vsel %vm1034_vm3, %v1025_v4, %v1026_v38  ;;  %v8930_v61 = vsel %vm2359_vm2, %v2351_v19, %v2352_v21 }
 0x121   : > { %10236 = vst [vmem:[#allocation90_spill] sm:$0xff] %v8911_v30  ;;  %10237 = vst [vmem:[#allocation91_spill] sm:$0xff] %v8916_v27  ;;  %v8934_v30 = vsel %vm1034_vm3, %v1026_v38, %v1027_v57  ;;  %v8936_v20 = vpop.f32.mrb[27].mxu0  ;;  %v817_v27 = vand.u32 15, %v613_v41  ;;  %v2354_v56 = vrot.slane %v8918_v26, 1  ;;  %v1029_v14 = vrot.slane %v8918_v26, 7 }
 0x122   : > { %10238 = vst [vmem:[#allocation92_spill] sm:$0xff] %v8918_v26  ;;  %10239 = vst [vmem:[#allocation93_spill] sm:$0xff] %v8922_v32  ;;  %v1028_v4 = vrot.slane %v8936_v20, 7  ;;  %v2353_v34 = vrot.slane %v8936_v20, 1  ;;  %7294 = vmatprep.mubr.msk.f32.mxu0 %vm258_vm1, %v8936_v20  ;;  %7491 = vmatprep.mubr.msk.f32.mxu1 %vm258_vm1, %v8936_v20  ;;  %v810_v19 = vand.u32 15, %v612_v49  ;;  %v8950_v41 = vsel %vm1249_vm14, %v8926_v9, 0.0 }
 0x123   : > { %10240 = vst [vmem:[#allocation94_spill] sm:$0xff] %v8926_v9  ;;  %10241 = vst [vmem:[#allocation95_spill] sm:$0xff] %v8930_v61  ;;  %7295 = vmatmul.mubr.msk.f32.gmra.mrb[60].mxu0 %vm258_vm1, %v8918_v26  ;;  %7492 = vmatmul.mubr.msk.f32.gmra.mrb[26].mxu1 %vm258_vm1, %v8918_v26  ;;  %v831_v38 = vand.u32 15, %v615_v50  ;;  %v8965_v49 = vsel %vm10131_vm11, %v8922_v32, 0.0  ;;  %v824_v32 = vand.u32 15, %v614_v6  ;;  %vm2513_vm11 = vcmp.lt.s32.totalorder %v8905_v35, 16 }
 0x124   : > { %10242 = vst [vmem:[#allocation96_spill] sm:$0xff] %v8934_v30  ;;  %10243 = vst [vmem:[#allocation97_spill] sm:$0xff] %v8936_v20  ;;  %v8960_v30 = vsel %vm10140_vm9, %v8926_v9, 0.0  ;;  %v8967_v20 = vpop.f32.mrb[28].mxu0  ;;  %v8975_v26 = vsel %vm1034_vm3, %v1027_v57, %v1028_v4  ;;  %v8979_v50 = vsel %vm2359_vm2, %v2353_v34, %v2354_v56 }
 0x125   : > { %10244 = vst [vmem:[#allocation98_spill] sm:$0xff] %v8950_v41  ;;  %10245 = vst [vmem:[#allocation99_spill] sm:$0xff] %v8960_v30  ;;  %v8971_v41 = vsel %vm2359_vm2, %v2352_v21, %v2353_v34  ;;  %v8983_v30 = vsel %vm1034_vm3, %v1028_v4, %v1029_v14  ;;  %v8985_v61 = vpop.f32.mrb[29].mxu0  ;;  %v2356_v9 = vrot.slane %v8967_v20, 1  ;;  %v1031_v21 = vrot.slane %v8967_v20, 7 }
 0x126   : > { %10246 = vst [vmem:[#allocation100_spill] sm:$0xff] %v8965_v49  ;;  %10247 = vst [vmem:[#allocation101_spill] sm:$0xff] %v8967_v20  ;;  %v8987_v49 = vadd.s32 4294967295, %v817_v27  ;;  %v1030_v57 = vrot.slane %v8985_v61, 7  ;;  %v2355_v5 = vrot.slane %v8985_v61, 1  ;;  %7297 = vmatprep.mubr.msk.f32.mxu0 %vm258_vm1, %v8985_v61  ;;  %7494 = vmatprep.mubr.msk.f32.mxu1 %vm258_vm1, %v8985_v61  ;;  %v8997_v34 = vadd.s32 1, %v810_v19 }
 0x127   : > { %10248 = vst [vmem:[#allocation102_spill] sm:$0xff] %v8971_v41  ;;  %10249 = vst [vmem:[#allocation103_spill] sm:$0xff] %v8975_v26  ;;  %v9002_v27 = vsel %vm10140_vm9, %v8975_v26, 0.0  ;;  %7298 = vmatmul.mubr.msk.f32.gmra.mrb[62].mxu0 %vm258_vm1, %v8967_v20  ;;  %7495 = vmatmul.mubr.msk.f32.gmra.mrb[28].mxu1 %vm258_vm1, %v8967_v20  ;;  %v9009_v6 = vadd.s32 4294967295, %v831_v38  ;;  %v9014_v4 = vsel %vm10145_vm12, %v8975_v26, 0.0  ;;  %v9019_v19 = vsel %vm10137_vm10, %v8971_v41, 0.0 }
 0x128   : > { %10250 = vst [vmem:[#allocation104_spill] sm:$0xff] %v8979_v50  ;;  %10251 = vst [vmem:[#allocation105_spill] sm:$0xff] %v8983_v30  ;;  %v9026_v20 = vsel %vm2359_vm2, %v2354_v56, %v2355_v5  ;;  %v9030_v38 = vsel %vm1034_vm3, %v1029_v14, %v1030_v57  ;;  %v9038_v30 = vsel %vm1034_vm3, %v1030_v57, %v1031_v21  ;;  %vm1255_vm10 = vcmp.ge.s32.totalorder %v8987_v49, 0  ;;  %v9060_v57 = vld [vmem:[%s10033_s2 + $0xc] sm:$0xf]  ;;  %v10319_v31 = vld [vmem:[#allocation86_spill] sm:$0xff] }
 0x129   : > { %10252 = vst [vmem:[#allocation106_spill] sm:$0xff] %v8985_v61  ;;  %10253 = vst [vmem:[#allocation107_spill] sm:$0xff] %v9002_v27  ;;  %v9021_v61 = vpop.f32.mrb[30].mxu0  ;;  %v10257_v27 = vmov 0.0   ;;  %v9045_v56 = vadd.s32 1, %v824_v32  ;;  %vm2515_vm9 = vcmp.lt.s32.totalorder %v8997_v34, 16 }
 0x12a   : > { %10254 = vst [vmem:[#allocation108_spill] sm:$0xff] %v9014_v4  ;;  %10255 = vst [vmem:[#allocation109_spill] sm:$0xff] %v9019_v19  ;;  %7302 = vmatprep.mubr.f32.mxu0 %v10257_v27  ;;  %v9034_v4 = vsel %vm2359_vm2, %v2355_v5, %v2356_v9  ;;  %v1033_v19 = vrot.slane %v9021_v61, 7  ;;  %v2358_v50 = vrot.slane %v9021_v61, 1  ;;  %v9042_v26 = vpop.f32.mrb[31].mxu0  ;;  %v9055_v5 = vsel %vm10145_vm12, %v9030_v38, 0.0 }
 0x12b   : > { %10256 = vst [vmem:[#allocation110_spill] sm:$0xff] %v9021_v61  ;;  %10258 = vst [vmem:[#allocation111_spill] sm:$0xff] %v9034_v4  ;;  %v1032_v14 = vrot.slane %v9042_v26, 7  ;;  %v2357_v41 = vrot.slane %v9042_v26, 1  ;;  %7497 = vmatprep.mubr.msk.f32.mxu1 %vm258_vm1, %v9042_v26  ;;  %7303 = vmatmul.mubr.f32.vlgmr.msra.gmra.mrb[32].mxu0 %v10257_v27  ;;  %v10262_v32 = vrot.slane %v8263_v58, 7  ;;  %v9078_v4 = vsel %vm1255_vm10, %v9030_v38, 0.0 }
 0x12c   : > { %10259 = vst [vmem:[#allocation112_spill] sm:$0xff] %v9038_v30  ;;  %10260 = vst [vmem:[#allocation113_spill] sm:$0xff] %v9042_v26  ;;  %7498 = vmatmul.mubr.msk.f32.gmra.mrb[30].mxu1 %vm258_vm1, %v9021_v61  ;;  %v10263_v30 = vrot.slane %v8263_v58, 1  ;;  %v9083_v61 = vsel %vm2513_vm11, %v9026_v20, 0.0  ;;  %vm1257_vm12 = vcmp.ge.s32.totalorder %v9009_v6, 0  ;;  %7351 = vmatpush3.msk.msra.mxu0 %vm355_vm0, %v8249_v46 }
 0x12d   : > { %10261 = vst [vmem:[#allocation114_spill] sm:$0xff] %v9055_v5  ;;  %v1066_v26 = vsel %vm1034_vm3, %v1033_v19, %v10262_v32  ;;  %10264 = vst [vmem:[#allocation115_spill] sm:$0xff] %v9078_v4  ;;  %7502 = vmatprep.mubr.msk.f32.mxu1 %vm258_vm1, %v8293_v7  ;;  %v9096_v32 = vsel %vm2359_vm2, %v2357_v41, %v2358_v50  ;;  %7400 = vmatprep.subr.msk.mxu0 %vm355_vm0, %v9060_v57  ;;  %v9116_v46 = vld [vmem:[%s10033_s2 + $0x1c] sm:$0xf]  ;;  %v1449_v49 = vsel %vm1257_vm12, %v9030_v38, 0.0  ;;  %v10333_v38 = vld [vmem:[#allocation7_spill] sm:$0xff] }
 0x12e   : > { %v9073_v5 = vsel %vm2359_vm2, %v2358_v50, %v10263_v30  ;;  %10265 = vst [vmem:[#allocation116_spill] sm:$0xff] %v9083_v61  ;;  %v1421_v58 = vsel %vm1229_vm4, %v1066_v26, 0.0  ;;  %v9092_v30 = vsel %vm2359_vm2, %v2356_v9, %v2357_v41  ;;  %vm2517_vm4 = vcmp.lt.s32.totalorder %v9045_v56, 16  ;;  %v10366_v56 = vld [vmem:[#allocation3_spill] sm:$0xff] }
 0x12f   : > { %7305 = vmatprep.mubr.msk.f32.mxu0 %vm258_vm1, %v1421_v58  ;;  %v1036_v61 = vsel %vm1034_vm3, %v1031_v21, %v1032_v14  ;;  %v9109_v9 = vsel %vm1034_vm3, %v1032_v14, %v1033_v19  ;;  %v9124_v41 = vsel %vm1227_vm6, %v1066_v26, 0.0  ;;  %v9133_v21 = vsel %vm2515_vm9, %v9092_v30, 0.0  ;;  %v10282_v14 = vld [vmem:[#allocation27_spill] sm:$0xff] }
 0x130   : > { %10266 = vst [vmem:[#allocation117_spill] sm:$0xff] %v9109_v9  ;;  %v9120_v55 = vsel %vm1255_vm10, %v1036_v61, 0.0  ;;  %10268 = vst [vmem:[#allocation119_spill] sm:$0xff] %v9124_v41  ;;  %v9128_v50 = vsel %vm1257_vm12, %v1036_v61, 0.0  ;;  %7306 = vmatmul.mubr.msk.f32.gmra.mrb[34].mxu0 %vm258_vm1, %v8300_v8  ;;  %7503 = vmatmul.mubr.msk.f32.vlgmr.msra.gmra.mrb[0].mxu1 %vm258_vm1, %v4107_v54  ;;  %v9144_v26 = vsel %vm2517_vm4, %v9073_v5, 0.0  ;;  %vm10272_vm2 = vcmp.ge.s32.totalorder %v8317_v15, 0 }
 0x131   : > { %10267 = vst [vmem:[#allocation118_spill] sm:$0xff] %v9120_v55  ;;  %10269 = vst [vmem:[#allocation120_spill] sm:$0xff] %v9128_v50  ;;  %7551 = vmatpush3.msk.msra.mxu1 %vm355_vm0, %v8277_v63  ;;  %7308 = vmatprep.mubr.msk.f32.mxu0 %vm258_vm1, %v1423_v60  ;;  %v1425_v63 = vsel %vm10272_vm2, %v8387_v43, 0.0  ;;  %vm10273_vm3 = vcmp.lt.s32.totalorder %v8324_v17, 16  ;;  %v1427_v61 = vsel %vm10274_vm5, %v8441_v11, 0.0  ;;  %vm10275_vm6 = vcmp.lt.s32.totalorder %v8351_v29, 16 }
 0x132   : > { %10270 = vst [vmem:[#allocation121_spill] sm:$0xff] %v9133_v21  ;;  %10271 = vst [vmem:[#allocation122_spill] sm:$0xff] %v9144_v26  ;;  %7505 = vmatprep.mubr.msk.f32.mxu1 %vm258_vm1, %v8341_v24  ;;  %7600 = vmatprep.subr.msk.mxu1 %vm355_vm0, %v9116_v46  ;;  %v4111_v23 = vsel %vm10273_vm3, %v8437_v10, 0.0  ;;  %v4113_v15 = vsel %vm10275_vm6, %v8492_v52, 0.0  ;;  %v1429_v43 = vsel %vm10276_vm7, %v8496_v53, 0.0  ;;  %vm10277_vm2 = vcmp.lt.s32.totalorder %v8424_v59, 16 }
 0x133   : > { %v4115_v18 = vsel %vm10277_vm2, %v8545_v47, 0.0  ;;  %vm10278_vm3 = vcmp.ge.s32.totalorder %v8426_v1, 0  ;;  %v10280_v53 = vld [vmem:[#allocation16_spill] sm:$0xff]  ;;  %v10283_v58 = vld [vmem:[#allocation35_spill] sm:$0xff]  ;;  %vm10284_vm6 = vcmp.ge.s32.totalorder %v8475_v33, 0  ;;  %v10287_v60 = vld [vmem:[#allocation22_spill] sm:$0xff] }
 0x134   : > { %7309 = vmatmul.mubr.msk.f32.gmra.mrb[36].mxu0 %vm258_vm1, %v8345_v25  ;;  %7506 = vmatmul.mubr.msk.f32.gmra.mrb[2].mxu1 %vm258_vm1, %v4109_v0  ;;  %v1431_v11 = vsel %vm10278_vm3, %v8549_v37, 0.0  ;;  %vm10281_vm5 = vcmp.lt.s32.totalorder %v10280_v53, 16  ;;  %v1433_v54 = vsel %vm10284_vm6, %v10283_v58, 0.0  ;;  %v10285_v1 = vld [vmem:[#allocation36_spill] sm:$0xff]  ;;  %v10286_v37 = vld [vmem:[#allocation45_spill] sm:$0xff]  ;;  %vm10288_vm7 = vcmp.lt.s32.totalorder %v10287_v60, 16 }
 0x135   : > { %7311 = vmatprep.mubr.msk.f32.mxu0 %vm258_vm1, %v1425_v63  ;;  %7508 = vmatprep.mubr.msk.f32.mxu1 %vm258_vm1, %v8391_v44  ;;  %v4117_v19 = vsel %vm10281_vm5, %v10279_v36, 0.0  ;;  %v4119_v0 = vsel %vm10288_vm7, %v10286_v37, 0.0  ;;  %v10289_v63 = vld [vmem:[#allocation37_spill] sm:$0xff]  ;;  %vm10291_vm2 = vcmp.ge.s32.totalorder %v8563_v16, 0  ;;  %v10292_v33 = vld [vmem:[#allocation47_spill] sm:$0xff]  ;;  %v10303_v26 = vld [vmem:[#allocation58_spill] sm:$0xff] }
 0x136   : > { %v10299_v16 = vld [vmem:[#allocation57_spill] sm:$0xff]  ;;  %v10304_v21 = vld [vmem:[#allocation66_spill] sm:$0xff]  ;;  %v10307_v58 = vld [vmem:[#allocation75_spill] sm:$0xff]  ;;  %vm10318_vm6 = vcmp.ge.s32.totalorder %v8798_v48, 0  ;;  %vm10324_vm7 = vcmp.ge.s32.totalorder %v8883_v40, 0  ;;  %v616_v48 = vadd.s32 248, %v8240_v39 }
 0x137   : > { %v1439_v50 = vsel %vm1247_vm15, %v10304_v21, 0.0  ;;  %v10310_v8 = vld [vmem:[#allocation68_spill] sm:$0xff]  ;;  %v10312_v21 = vld [vmem:[#allocation77_spill] sm:$0xff]  ;;  %v10316_v55 = vld [vmem:[#allocation78_spill] sm:$0xff]  ;;  %vm10337_vm12 = vcmp.lt.s32.totalorder %v8351_v29, 16 }
 0x138   : > { %7312 = vmatmul.mubr.msk.f32.gmra.mrb[38].mxu0 %vm258_vm1, %v8395_v45  ;;  %7509 = vmatmul.mubr.msk.f32.gmra.mrb[4].mxu1 %vm258_vm1, %v4111_v23  ;;  %v10290_v23 = vld [vmem:[#allocation46_spill] sm:$0xff]  ;;  %v10311_v41 = vld [vmem:[#allocation76_spill] sm:$0xff]  ;;  %v10340_v29 = vld [vmem:[#allocation29_spill] sm:$0xff] }
 0x139   : > { %7314 = vmatprep.mubr.msk.f32.mxu0 %vm258_vm1, %v1427_v61  ;;  %7511 = vmatprep.mubr.msk.f32.mxu1 %vm258_vm1, %v8445_v12  ;;  %v1435_v61 = vsel %vm10291_vm2, %v10290_v23, 0.0  ;;  %v10301_v23 = vld [vmem:[#allocation41_spill] sm:$0xff]  ;;  %v10329_v39 = vld [vmem:[#allocation104_spill] sm:$0xff]  ;;  %vm10339_vm2 = vcmp.lt.s32.totalorder %v8424_v59, 16  ;;  %v10362_v35 = vld [vmem:[#allocation114_spill] sm:$0xff] }
 0x13a   : > { %vm10302_vm5 = vcmp.lt.s32.totalorder %v10301_v23, 16  ;;  %v10342_v59 = vld [vmem:[#allocation40_spill] sm:$0xff]  ;;  %v10363_v34 = vld [vmem:[#allocation118_spill] sm:$0xff] }
 0x13c   : > { %7315 = vmatmul.mubr.msk.f32.gmra.mrb[40].mxu0 %vm258_vm1, %v8449_v13  ;;  %7512 = vmatmul.mubr.msk.f32.gmra.mrb[6].mxu1 %vm258_vm1, %v4113_v15  ;;  %v10293_v15 = vld [vmem:[#allocation55_spill] sm:$0xff] }
 0x13d   : > { %7317 = vmatprep.mubr.msk.f32.mxu0 %vm258_vm1, %v1429_v43  ;;  %7514 = vmatprep.mubr.msk.f32.mxu1 %vm258_vm1, %v8500_v3  ;;  %v10294_v43 = vld [vmem:[#allocation30_spill] sm:$0xff] }
 0x13e   : > { %vm10295_vm3 = vcmp.lt.s32.totalorder %v10294_v43, 16 }
 0x140   : > { %7318 = vmatmul.mubr.msk.f32.gmra.mrb[42].mxu0 %vm258_vm1, %v8504_v62  ;;  %7515 = vmatmul.mubr.msk.f32.gmra.mrb[8].mxu1 %vm258_vm1, %v4115_v18  ;;  %v4121_v18 = vsel %vm10295_vm3, %v10293_v15, 0.0  ;;  %vm10341_vm3 = vcmp.lt.s32.totalorder %v10280_v53, 16 }
 0x141   : > { %7320 = vmatprep.mubr.msk.f32.mxu0 %vm258_vm1, %v1431_v11  ;;  %7517 = vmatprep.mubr.msk.f32.mxu1 %vm258_vm1, %v8553_v51  ;;  %v10296_v11 = vld [vmem:[#allocation48_spill] sm:$0xff] }
 0x144   : > { %7321 = vmatmul.mubr.msk.f32.gmra.mrb[44].mxu0 %vm258_vm1, %v10282_v14  ;;  %7518 = vmatmul.mubr.msk.f32.gmra.mrb[10].mxu1 %vm258_vm1, %v4117_v19  ;;  %v10297_v19 = vld [vmem:[#allocation56_spill] sm:$0xff] }
 0x145   : > { %7323 = vmatprep.mubr.msk.f32.mxu0 %vm258_vm1, %v1433_v54  ;;  %7520 = vmatprep.mubr.msk.f32.mxu1 %vm258_vm1, %v10285_v1  ;;  %v1437_v54 = vsel %vm1245_vm13, %v10297_v19, 0.0  ;;  %v10306_v19 = vld [vmem:[#allocation67_spill] sm:$0xff] }
 0x148   : > { %7324 = vmatmul.mubr.msk.f32.gmra.mrb[46].mxu0 %vm258_vm1, %v10289_v63  ;;  %7521 = vmatmul.mubr.msk.f32.gmra.mrb[12].mxu1 %vm258_vm1, %v4119_v0  ;;  %v10300_v0 = vld [vmem:[#allocation65_spill] sm:$0xff] }
 0x149   : > { %7326 = vmatprep.mubr.msk.f32.mxu0 %vm258_vm1, %v1435_v61  ;;  %7523 = vmatprep.mubr.msk.f32.mxu1 %vm258_vm1, %v10292_v33  ;;  %v4123_v61 = vsel %vm10302_vm5, %v10300_v0, 0.0  ;;  %vm10343_vm5 = vcmp.lt.s32.totalorder %v10287_v60, 16 }
 0x14c   : > { %7327 = vmatmul.mubr.msk.f32.gmra.mrb[48].mxu0 %vm258_vm1, %v10296_v11  ;;  %7524 = vmatmul.mubr.msk.f32.gmra.mrb[14].mxu1 %vm258_vm1, %v4121_v18  ;;  %v10314_v18 = vld [vmem:[#allocation70_spill] sm:$0xff] }
 0x14d   : > { %7329 = vmatprep.mubr.msk.f32.mxu0 %vm258_vm1, %v1437_v54  ;;  %7526 = vmatprep.mubr.msk.f32.mxu1 %vm258_vm1, %v10299_v16  ;;  %v10308_v54 = vld [vmem:[#allocation60_spill] sm:$0xff]  ;;  %vm10315_vm15 = vcmp.lt.s32.totalorder %v10314_v18, 16 }
 0x14e   : > { %vm10309_vm13 = vcmp.lt.s32.totalorder %v10308_v54, 16 }
 0x14f   : > { %v4125_v4 = vsel %vm10309_vm13, %v10307_v58, 0.0  ;;  %v10317_v58 = vld [vmem:[#allocation85_spill] sm:$0xff]  ;;  %vm10345_vm13 = vcmp.lt.s32.totalorder %v10294_v43, 16  ;;  %v10351_v43 = vld [vmem:[#allocation75_spill] sm:$0xff] }
 0x150   : > { %7330 = vmatmul.mubr.msk.f32.gmra.mrb[50].mxu0 %vm258_vm1, %v10303_v26  ;;  %7527 = vmatmul.mubr.msk.f32.gmra.mrb[16].mxu1 %vm258_vm1, %v4123_v61  ;;  %v1441_v61 = vsel %vm1249_vm14, %v10311_v41, 0.0  ;;  %v10320_v41 = vld [vmem:[#allocation93_spill] sm:$0xff]  ;;  %vm10321_vm14 = vcmp.lt.s32.totalorder %v8841_v28, 16 }
 0x151   : > { %7332 = vmatprep.mubr.msk.f32.mxu0 %vm258_vm1, %v1439_v50  ;;  %7529 = vmatprep.mubr.msk.f32.mxu1 %vm258_vm1, %v10306_v19  ;;  %v10313_v50 = vld [vmem:[#allocation84_spill] sm:$0xff] }
 0x152   : > { %v4127_v9 = vsel %vm10315_vm15, %v10313_v50, 0.0  ;;  %v10323_v50 = vld [vmem:[#allocation94_spill] sm:$0xff]  ;;  %vm10347_vm15 = vcmp.lt.s32.totalorder %v10301_v23, 16 }
 0x153   : > { %v2633_v53 = vsel %vm10347_vm15, %v10293_v15, 0.0  ;;  %v10350_v15 = vld [vmem:[#allocation80_spill] sm:$0xff] }
 0x154   : > { %7333 = vmatmul.mubr.msk.f32.gmra.mrb[52].mxu0 %vm258_vm1, %v10310_v8  ;;  %7530 = vmatmul.mubr.msk.f32.gmra.mrb[18].mxu1 %vm258_vm1, %v4125_v4  ;;  %v1443_v4 = vsel %vm10318_vm6, %v10317_v58, 0.0  ;;  %v10325_v58 = vld [vmem:[#allocation95_spill] sm:$0xff]  ;;  %vm10349_vm6 = vcmp.lt.s32.totalorder %v10308_v54, 16  ;;  %v10354_v54 = vld [vmem:[#allocation89_spill] sm:$0xff] }
 0x155   : > { %7335 = vmatprep.mubr.msk.f32.mxu0 %vm258_vm1, %v1441_v61  ;;  %7532 = vmatprep.mubr.msk.f32.mxu1 %vm258_vm1, %v10312_v21  ;;  %v4129_v61 = vsel %vm10321_vm14, %v10320_v41, 0.0  ;;  %v10322_v21 = vld [vmem:[#allocation87_spill] sm:$0xff]  ;;  %v2635_v60 = vsel %vm10349_vm6, %v10300_v0, 0.0  ;;  %vm10352_vm14 = vcmp.lt.s32.totalorder %v10314_v18, 16  ;;  %v10353_v0 = vld [vmem:[#allocation77_spill] sm:$0xff]  ;;  %v10357_v18 = vld [vmem:[#allocation86_spill] sm:$0xff] }
 0x156   : > { %v2637_v23 = vsel %vm10352_vm14, %v10351_v43, 0.0  ;;  %v10388_v43 = vld [vmem:[#allocation62_spill] sm:$0xff] }
 0x158   : > { %7336 = vmatmul.mubr.msk.f32.gmra.mrb[54].mxu0 %vm258_vm1, %v10316_v55  ;;  %7533 = vmatmul.mubr.msk.f32.gmra.mrb[20].mxu1 %vm258_vm1, %v4127_v9  ;;  %v1445_v9 = vsel %vm10324_vm7, %v10323_v50, 0.0  ;;  %v838_v50 = vand.u32 15, %v616_v48  ;;  %v10331_v48 = vld [vmem:[#allocation111_spill] sm:$0xff]  ;;  %vm10356_vm7 = vcmp.lt.s32.totalorder %v8841_v28, 16 }
 0x159   : > { %7338 = vmatprep.mubr.msk.f32.mxu0 %vm258_vm1, %v1443_v4  ;;  %7535 = vmatprep.mubr.msk.f32.mxu1 %vm258_vm1, %v10319_v31  ;;  %v10326_v4 = vld [vmem:[#allocation102_spill] sm:$0xff]  ;;  %v10327_v31 = vld [vmem:[#allocation96_spill] sm:$0xff]  ;;  %v10360_v28 = vld [vmem:[#allocation107_spill] sm:$0xff] }
 0x15a   : > { %v4131_v41 = vsel %vm2513_vm11, %v10326_v4, 0.0  ;;  %v10330_v4 = vld [vmem:[#allocation105_spill] sm:$0xff] }
 0x15c   : > { %7339 = vmatmul.mubr.msk.f32.gmra.mrb[56].mxu0 %vm258_vm1, %v10322_v21  ;;  %7536 = vmatmul.mubr.msk.f32.gmra.mrb[22].mxu1 %vm258_vm1, %v4129_v61  ;;  %v10328_v61 = vld [vmem:[#allocation103_spill] sm:$0xff] }
 0x15d   : > { %7341 = vmatprep.mubr.msk.f32.mxu0 %vm258_vm1, %v1445_v9  ;;  %7538 = vmatprep.mubr.msk.f32.mxu1 %vm258_vm1, %v10325_v58  ;;  %v1447_v40 = vsel %vm1255_vm10, %v10328_v61, 0.0  ;;  %v4133_v9 = vsel %vm2515_vm9, %v9026_v20, 0.0  ;;  %v4135_v61 = vsel %vm2517_vm4, %v9092_v30, 0.0 }
 0x160   : > { %7342 = vmatmul.mubr.msk.f32.gmra.mrb[58].mxu0 %vm258_vm1, %v10327_v31  ;;  %7539 = vmatmul.mubr.msk.f32.gmra.mrb[24].mxu1 %vm258_vm1, %v4131_v41  ;;  %v9307_v41 = vadd.s32 1, %v838_v50  ;;  %v2619_v50 = vsel %vm2491_vm8, %v8333_v22, 0.0  ;;  %vm10335_vm8 = vcmp.lt.s32.totalorder %v8324_v17, 16  ;;  %v10336_v22 = vld [vmem:[#allocation17_spill] sm:$0xff]  ;;  %v10338_v17 = vld [vmem:[#allocation23_spill] sm:$0xff] }
 0x161   : > { %7344 = vmatprep.mubr.msk.f32.mxu0 %vm258_vm1, %v1447_v40  ;;  %7541 = vmatprep.mubr.msk.f32.mxu1 %vm258_vm1, %v10329_v39  ;;  %v10332_v40 = vld [vmem:[#allocation112_spill] sm:$0xff]  ;;  %v2621_v2 = vsel %vm10335_vm8, %v8383_v42, 0.0  ;;  %v2625_v42 = vsel %vm10339_vm2, %v8492_v52, 0.0  ;;  %v2629_v52 = vsel %vm10343_vm5, %v10279_v36, 0.0  ;;  %v10346_v36 = vld [vmem:[#allocation61_spill] sm:$0xff] }
 0x162   : > { %vm2519_vm10 = vcmp.lt.s32.totalorder %v9307_v41, 16  ;;  %v10368_v41 = vld [vmem:[#allocation4_spill] sm:$0xff] }
 0x163   : > { %v4137_v6 = vsel %vm2519_vm10, %v9073_v5, 0.0  ;;  %v9339_v5 = vld [vmem:[%s10033_s2 + $0x20] sm:$0xf] }
 0x164   : > { %7345 = vmatmul.mubr.msk.f32.gmra.mrb[60].mxu0 %vm258_vm1, %v10330_v4  ;;  %7542 = vmatmul.mubr.msk.f32.gmra.mrb[26].mxu1 %vm258_vm1, %v4133_v9  ;;  %v10355_v9 = vld [vmem:[#allocation84_spill] sm:$0xff] }
 0x165   : > { %7347 = vmatprep.mubr.msk.f32.mxu0 %vm258_vm1, %v1449_v49  ;;  %7544 = vmatprep.mubr.msk.f32.mxu1 %vm258_vm1, %v10331_v48  ;;  %v2639_v49 = vsel %vm10356_vm7, %v10355_v9, 0.0  ;;  %v10392_v9 = vld [vmem:[#allocation59_spill] sm:$0xff] }
 0x168   : > { %7348 = vmatmul.mubr.msk.f32.gmra.mrb[62].mxu0 %vm258_vm1, %v10332_v40  ;;  %7545 = vmatmul.mubr.msk.f32.gmra.mrb[28].mxu1 %vm258_vm1, %v4135_v61  ;;  %v10358_v61 = vld [vmem:[#allocation98_spill] sm:$0xff] }
 0x169   : > { %7547 = vmatprep.mubr.msk.f32.mxu1 %vm258_vm1, %v9096_v32  ;;  %7352 = vmatprep.mubr.f32.mxu0 %v10257_v27 }
 0x16c   : > { %7353 = vmatmul.mubr.f32.vlgmr.msra.gmra.mrb[32].mxu0 %v10257_v27  ;;  %7548 = vmatmul.mubr.msk.f32.gmra.mrb[30].mxu1 %vm258_vm1, %v4137_v6  ;;  %v10359_v6 = vld [vmem:[#allocation93_spill] sm:$0xff] }
 0x16d   : > { %7355 = vmatprep.mubr.msk.f32.mxu0 %vm258_vm1, %v8293_v7  ;;  %7552 = vmatprep.mubr.msk.f32.mxu1 %vm258_vm1, %v10333_v38  ;;  %v10334_v7 = vld [vmem:[#allocation12_spill] sm:$0xff]  ;;  %v2641_v38 = vsel %vm2513_vm11, %v10359_v6, 0.0  ;;  %v10397_v6 = vld [vmem:[#allocation90_spill] sm:$0xff] }
 0x16e   : > { %7401 = vmatpush3.msk.msra.mxu0 %vm355_vm0, %v9060_v57  ;;  %v2623_v57 = vsel %vm10337_vm12, %v8437_v10, 0.0  ;;  %v2627_v10 = vsel %vm10341_vm3, %v8545_v47, 0.0  ;;  %v10344_v47 = vld [vmem:[#allocation51_spill] sm:$0xff] }
 0x170   : > { %7356 = vmatmul.mubr.msk.f32.gmra.mrb[34].mxu0 %vm258_vm1, %v2619_v50  ;;  %7553 = vmatmul.mubr.msk.f32.vlgmr.msra.gmra.mrb[0].mxu1 %vm258_vm1, %v8345_v25  ;;  %v10361_v50 = vld [vmem:[#allocation102_spill] sm:$0xff] }
 0x171   : > { %7601 = vmatpush3.msk.msra.mxu1 %vm355_vm0, %v9116_v46  ;;  %7358 = vmatprep.mubr.msk.f32.mxu0 %vm258_vm1, %v8341_v24  ;;  %v2631_v46 = vsel %vm10345_vm13, %v10286_v37, 0.0  ;;  %v10348_v37 = vld [vmem:[#allocation71_spill] sm:$0xff] }
 0x172   : > { %7555 = vmatprep.mubr.msk.f32.mxu1 %vm258_vm1, %v10334_v7  ;;  %7650 = vmatprep.subr.msk.mxu1 %vm355_vm0, %v9339_v5  ;;  %v2643_v7 = vsel %vm2515_vm9, %v10361_v50, 0.0  ;;  %v10401_v50 = vld [vmem:[#allocation88_spill] sm:$0xff] }
 0x174   : > { %7359 = vmatmul.mubr.msk.f32.gmra.mrb[36].mxu0 %vm258_vm1, %v2621_v2  ;;  %7556 = vmatmul.mubr.msk.f32.gmra.mrb[2].mxu1 %vm258_vm1, %v8395_v45  ;;  %v2645_v2 = vsel %vm2517_vm4, %v9026_v20, 0.0  ;;  %v10365_v20 = vld [vmem:[#allocation119_spill] sm:$0xff] }
 0x175   : > { %7361 = vmatprep.mubr.msk.f32.mxu0 %vm258_vm1, %v8391_v44  ;;  %7558 = vmatprep.mubr.msk.f32.mxu1 %vm258_vm1, %v10336_v22  ;;  %v2647_v22 = vsel %vm2519_vm10, %v9092_v30, 0.0  ;;  %v10369_v30 = vld [vmem:[#allocation2_spill] sm:$0xff] }
 0x178   : > { %7362 = vmatmul.mubr.msk.f32.gmra.mrb[38].mxu0 %vm258_vm1, %v2623_v57  ;;  %7559 = vmatmul.mubr.msk.f32.gmra.mrb[4].mxu1 %vm258_vm1, %v8449_v13  ;;  %v10364_v57 = vld [vmem:[#allocation117_spill] sm:$0xff] }
 0x179   : > { %7364 = vmatprep.mubr.msk.f32.mxu0 %vm258_vm1, %v8445_v12  ;;  %7561 = vmatprep.mubr.msk.f32.mxu1 %vm258_vm1, %v10338_v17  ;;  %v10367_v17 = vld [vmem:[#allocation8_spill] sm:$0xff] }
 0x17c   : > { %7365 = vmatmul.mubr.msk.f32.gmra.mrb[40].mxu0 %vm258_vm1, %v2625_v42  ;;  %7562 = vmatmul.mubr.msk.f32.gmra.mrb[6].mxu1 %vm258_vm1, %v8504_v62  ;;  %v10370_v42 = vld [vmem:[#allocation13_spill] sm:$0xff] }
 0x17d   : > { %7367 = vmatprep.mubr.msk.f32.mxu0 %vm258_vm1, %v8500_v3  ;;  %7564 = vmatprep.mubr.msk.f32.mxu1 %vm258_vm1, %v10340_v29  ;;  %v10371_v29 = vld [vmem:[#allocation6_spill] sm:$0xff] }
 0x180   : > { %7368 = vmatmul.mubr.msk.f32.gmra.mrb[42].mxu0 %vm258_vm1, %v2627_v10  ;;  %7565 = vmatmul.mubr.msk.f32.gmra.mrb[8].mxu1 %vm258_vm1, %v10282_v14  ;;  %v10372_v10 = vld [vmem:[#allocation5_spill] sm:$0xff] }
 0x181   : > { %7370 = vmatprep.mubr.msk.f32.mxu0 %vm258_vm1, %v8553_v51  ;;  %7567 = vmatprep.mubr.msk.f32.mxu1 %vm258_vm1, %v10342_v59  ;;  %v10373_v59 = vld [vmem:[#allocation18_spill] sm:$0xff] }
 0x184   : > { %7371 = vmatmul.mubr.msk.f32.gmra.mrb[44].mxu0 %vm258_vm1, %v2629_v52  ;;  %7568 = vmatmul.mubr.msk.f32.gmra.mrb[10].mxu1 %vm258_vm1, %v10289_v63  ;;  %v10376_v52 = vld [vmem:[#allocation24_spill] sm:$0xff] }
 0x185   : > { %7373 = vmatprep.mubr.msk.f32.mxu0 %vm258_vm1, %v10285_v1  ;;  %7570 = vmatprep.mubr.msk.f32.mxu1 %vm258_vm1, %v10344_v47  ;;  %v10377_v47 = vld [vmem:[#allocation15_spill] sm:$0xff] }
 0x188   : > { %7374 = vmatmul.mubr.msk.f32.gmra.mrb[46].mxu0 %vm258_vm1, %v2631_v46  ;;  %7571 = vmatmul.mubr.msk.f32.gmra.mrb[12].mxu1 %vm258_vm1, %v10296_v11  ;;  %v10379_v46 = vld [vmem:[#allocation31_spill] sm:$0xff] }
 0x189   : > { %7376 = vmatprep.mubr.msk.f32.mxu0 %vm258_vm1, %v10292_v33  ;;  %7573 = vmatprep.mubr.msk.f32.mxu1 %vm258_vm1, %v10346_v36  ;;  %v10380_v36 = vld [vmem:[#allocation21_spill] sm:$0xff] }
 0x18c   : > { %7377 = vmatmul.mubr.msk.f32.gmra.mrb[48].mxu0 %vm258_vm1, %v2633_v53  ;;  %7574 = vmatmul.mubr.msk.f32.gmra.mrb[14].mxu1 %vm258_vm1, %v10303_v26  ;;  %v10382_v53 = vld [vmem:[#allocation42_spill] sm:$0xff] }
 0x18d   : > { %7379 = vmatprep.mubr.msk.f32.mxu0 %vm258_vm1, %v10299_v16  ;;  %7576 = vmatprep.mubr.msk.f32.mxu1 %vm258_vm1, %v10348_v37  ;;  %v10383_v37 = vld [vmem:[#allocation28_spill] sm:$0xff] }
 0x190   : > { %7380 = vmatmul.mubr.msk.f32.gmra.mrb[50].mxu0 %vm258_vm1, %v2635_v60  ;;  %7577 = vmatmul.mubr.msk.f32.gmra.mrb[16].mxu1 %vm258_vm1, %v10310_v8  ;;  %v10385_v60 = vld [vmem:[#allocation52_spill] sm:$0xff] }
 0x191   : > { %7382 = vmatprep.mubr.msk.f32.mxu0 %vm258_vm1, %v10306_v19  ;;  %7579 = vmatprep.mubr.msk.f32.mxu1 %vm258_vm1, %v10350_v15  ;;  %v10386_v15 = vld [vmem:[#allocation38_spill] sm:$0xff] }
 0x194   : > { %7383 = vmatmul.mubr.msk.f32.gmra.mrb[52].mxu0 %vm258_vm1, %v2637_v23  ;;  %7580 = vmatmul.mubr.msk.f32.gmra.mrb[18].mxu1 %vm258_vm1, %v10316_v55  ;;  %v10389_v23 = vld [vmem:[#allocation49_spill] sm:$0xff] }
 0x195   : > { %7385 = vmatprep.mubr.msk.f32.mxu0 %vm258_vm1, %v10353_v0  ;;  %7582 = vmatprep.mubr.msk.f32.mxu1 %vm258_vm1, %v10354_v54  ;;  %v10391_v54 = vld [vmem:[#allocation72_spill] sm:$0xff] }
 0x198   : > { %7386 = vmatmul.mubr.msk.f32.gmra.mrb[54].mxu0 %vm258_vm1, %v2639_v49  ;;  %7583 = vmatmul.mubr.msk.f32.gmra.mrb[20].mxu1 %vm258_vm1, %v10322_v21  ;;  %v10394_v49 = vld [vmem:[#allocation81_spill] sm:$0xff] }
 0x199   : > { %7388 = vmatprep.mubr.msk.f32.mxu0 %vm258_vm1, %v10357_v18  ;;  %7585 = vmatprep.mubr.msk.f32.mxu1 %vm258_vm1, %v10358_v61  ;;  %v10395_v61 = vld [vmem:[#allocation69_spill] sm:$0xff] }
 0x19c   : > { %7389 = vmatmul.mubr.msk.f32.gmra.mrb[56].mxu0 %vm258_vm1, %v2641_v38  ;;  %7586 = vmatmul.mubr.msk.f32.gmra.mrb[22].mxu1 %vm258_vm1, %v10327_v31  ;;  %v10398_v38 = vld [vmem:[#allocation79_spill] sm:$0xff] }
 0x19d   : > { %7391 = vmatprep.mubr.msk.f32.mxu0 %vm258_vm1, %v10325_v58  ;;  %7588 = vmatprep.mubr.msk.f32.mxu1 %vm258_vm1, %v10360_v28  ;;  %v10400_v28 = vld [vmem:[#allocation99_spill] sm:$0xff] }
 0x1a0   : > { %7392 = vmatmul.mubr.msk.f32.gmra.mrb[58].mxu0 %vm258_vm1, %v2643_v7  ;;  %7589 = vmatmul.mubr.msk.f32.gmra.mrb[24].mxu1 %vm258_vm1, %v10330_v4  ;;  %v10403_v7 = vld [vmem:[#allocation108_spill] sm:$0xff] }
 0x1a1   : > { %7394 = vmatprep.mubr.msk.f32.mxu0 %vm258_vm1, %v10329_v39  ;;  %7591 = vmatprep.mubr.msk.f32.mxu1 %vm258_vm1, %v10362_v35  ;;  %v10404_v35 = vld [vmem:[#allocation97_spill] sm:$0xff] }
 0x1a4   : > { %7395 = vmatmul.mubr.msk.f32.gmra.mrb[60].mxu0 %vm258_vm1, %v2645_v2  ;;  %7592 = vmatmul.mubr.msk.f32.gmra.mrb[26].mxu1 %vm258_vm1, %v10332_v40  ;;  %v10406_v2 = vld [vmem:[#allocation115_spill] sm:$0xff] }
 0x1a5   : > { %7397 = vmatprep.mubr.msk.f32.mxu0 %vm258_vm1, %v10331_v48  ;;  %7594 = vmatprep.mubr.msk.f32.mxu1 %vm258_vm1, %v10363_v34  ;;  %v10407_v34 = vld [vmem:[#allocation106_spill] sm:$0xff] }
 0x1a8   : > { %7398 = vmatmul.mubr.msk.f32.gmra.mrb[62].mxu0 %vm258_vm1, %v2647_v22  ;;  %7595 = vmatmul.mubr.msk.f32.gmra.mrb[28].mxu1 %vm258_vm1, %v10364_v57  ;;  %v10409_v22 = vld [vmem:[#allocation120_spill] sm:$0xff] }
 0x1a9   : > { %7402 = vmatprep.mubr.msk.f32.mxu0 %vm258_vm1, %v10365_v20  ;;  %7597 = vmatprep.mubr.f32.mxu1 %v10257_v27  ;;  %v10410_v20 = vld [vmem:[#allocation113_spill] sm:$0xff] }
 0x1ac   : > { %7403 = vmatmul.mubr.msk.f32.vlgmr.msra.gmra.mrb[32].mxu0 %vm258_vm1, %v10366_v56  ;;  %7598 = vmatmul.mubr.f32.gmra.mrb[30].mxu1 %v10257_v27  ;;  %v10413_v56 = vld [vmem:[#allocation19_spill] sm:$0xff] }
 0x1ad   : > { %7405 = vmatprep.mubr.msk.f32.mxu0 %vm258_vm1, %v10367_v17  ;;  %7602 = vmatprep.mubr.msk.f32.mxu1 %vm258_vm1, %v10368_v41  ;;  %v10415_v17 = vld [vmem:[#allocation32_spill] sm:$0xff] }
 0x1b0   : > { %7406 = vmatmul.mubr.msk.f32.gmra.mrb[34].mxu0 %vm258_vm1, %v8345_v25  ;;  %7603 = vmatmul.mubr.msk.f32.vlgmr.msra.gmra.mrb[0].mxu1 %vm258_vm1, %v10369_v30  ;;  %v10374_v25 = vld [vmem:[#allocation10_spill] sm:$0xff] }
 0x1b1   : > { %7651 = vmatpush3.msk.msra.mxu1 %vm355_vm0, %v9339_v5  ;;  %7408 = vmatprep.mubr.msk.f32.mxu0 %vm258_vm1, %v10370_v42  ;;  %v10375_v5 = vld [vmem:[#allocation9_spill] sm:$0xff] }
 0x1b2   : > { %7605 = vmatprep.mubr.msk.f32.mxu1 %vm258_vm1, %v10371_v29 }
 0x1b4   : > { %7409 = vmatmul.mubr.msk.f32.gmra.mrb[36].mxu0 %vm258_vm1, %v8395_v45  ;;  %7606 = vmatmul.mubr.msk.f32.gmra.mrb[2].mxu1 %vm258_vm1, %v10372_v10  ;;  %v10378_v45 = vld [vmem:[#allocation14_spill] sm:$0xff] }
 0x1b5   : > { %7411 = vmatprep.mubr.msk.f32.mxu0 %vm258_vm1, %v10373_v59  ;;  %7608 = vmatprep.mubr.msk.f32.mxu1 %vm258_vm1, %v10374_v25 }
 0x1b8   : > { %7412 = vmatmul.mubr.msk.f32.gmra.mrb[38].mxu0 %vm258_vm1, %v8449_v13  ;;  %7609 = vmatmul.mubr.msk.f32.gmra.mrb[4].mxu1 %vm258_vm1, %v10375_v5  ;;  %v10381_v13 = vld [vmem:[#allocation20_spill] sm:$0xff] }
 0x1b9   : > { %7414 = vmatprep.mubr.msk.f32.mxu0 %vm258_vm1, %v10376_v52  ;;  %7611 = vmatprep.mubr.msk.f32.mxu1 %vm258_vm1, %v10377_v47 }
 0x1bc   : > { %7415 = vmatmul.mubr.msk.f32.gmra.mrb[40].mxu0 %vm258_vm1, %v8504_v62  ;;  %7612 = vmatmul.mubr.msk.f32.gmra.mrb[6].mxu1 %vm258_vm1, %v10378_v45  ;;  %v10384_v62 = vld [vmem:[#allocation26_spill] sm:$0xff] }
 0x1bd   : > { %7417 = vmatprep.mubr.msk.f32.mxu0 %vm258_vm1, %v10379_v46  ;;  %7614 = vmatprep.mubr.msk.f32.mxu1 %vm258_vm1, %v10380_v36 }
 0x1c0   : > { %7418 = vmatmul.mubr.msk.f32.gmra.mrb[42].mxu0 %vm258_vm1, %v10282_v14  ;;  %7615 = vmatmul.mubr.msk.f32.gmra.mrb[8].mxu1 %vm258_vm1, %v10381_v13  ;;  %v10387_v14 = vld [vmem:[#allocation33_spill] sm:$0xff] }
 0x1c1   : > { %7420 = vmatprep.mubr.msk.f32.mxu0 %vm258_vm1, %v10382_v53  ;;  %7617 = vmatprep.mubr.msk.f32.mxu1 %vm258_vm1, %v10383_v37 }
 0x1c4   : > { %7421 = vmatmul.mubr.msk.f32.gmra.mrb[44].mxu0 %vm258_vm1, %v10289_v63  ;;  %7618 = vmatmul.mubr.msk.f32.gmra.mrb[10].mxu1 %vm258_vm1, %v10384_v62  ;;  %v10390_v63 = vld [vmem:[#allocation44_spill] sm:$0xff] }
 0x1c5   : > { %7423 = vmatprep.mubr.msk.f32.mxu0 %vm258_vm1, %v10385_v60  ;;  %7620 = vmatprep.mubr.msk.f32.mxu1 %vm258_vm1, %v10386_v15 }
 0x1c8   : > { %7424 = vmatmul.mubr.msk.f32.gmra.mrb[46].mxu0 %vm258_vm1, %v10296_v11  ;;  %7621 = vmatmul.mubr.msk.f32.gmra.mrb[12].mxu1 %vm258_vm1, %v10387_v14  ;;  %v10393_v11 = vld [vmem:[#allocation54_spill] sm:$0xff] }
 0x1c9   : > { %7426 = vmatprep.mubr.msk.f32.mxu0 %vm258_vm1, %v10388_v43  ;;  %7623 = vmatprep.mubr.msk.f32.mxu1 %vm258_vm1, %v10389_v23 }
 0x1cc   : > { %7427 = vmatmul.mubr.msk.f32.gmra.mrb[48].mxu0 %vm258_vm1, %v10303_v26  ;;  %7624 = vmatmul.mubr.msk.f32.gmra.mrb[14].mxu1 %vm258_vm1, %v10390_v63  ;;  %v10396_v26 = vld [vmem:[#allocation64_spill] sm:$0xff] }
 0x1cd   : > { %7429 = vmatprep.mubr.msk.f32.mxu0 %vm258_vm1, %v10391_v54  ;;  %7626 = vmatprep.mubr.msk.f32.mxu1 %vm258_vm1, %v10392_v9 }
 0x1d0   : > { %7430 = vmatmul.mubr.msk.f32.gmra.mrb[50].mxu0 %vm258_vm1, %v10310_v8  ;;  %7627 = vmatmul.mubr.msk.f32.gmra.mrb[16].mxu1 %vm258_vm1, %v10393_v11  ;;  %v10399_v8 = vld [vmem:[#allocation74_spill] sm:$0xff] }
 0x1d1   : > { %7432 = vmatprep.mubr.msk.f32.mxu0 %vm258_vm1, %v10394_v49  ;;  %7629 = vmatprep.mubr.msk.f32.mxu1 %vm258_vm1, %v10395_v61 }
 0x1d4   : > { %7433 = vmatmul.mubr.msk.f32.gmra.mrb[52].mxu0 %vm258_vm1, %v10316_v55  ;;  %7630 = vmatmul.mubr.msk.f32.gmra.mrb[18].mxu1 %vm258_vm1, %v10396_v26  ;;  %v10402_v55 = vld [vmem:[#allocation83_spill] sm:$0xff]  ;;  %v9733_v26 = vld [vmem:[%s10034_s3] ss:$0 sm:$0xff] }
 0x1d5   : > { %7435 = vmatprep.mubr.msk.f32.mxu0 %vm258_vm1, %v10397_v6  ;;  %7632 = vmatprep.mubr.msk.f32.mxu1 %vm258_vm1, %v10398_v38 }
 0x1d8   : > { %7436 = vmatmul.mubr.msk.f32.gmra.mrb[54].mxu0 %vm258_vm1, %v10322_v21  ;;  %7633 = vmatmul.mubr.msk.f32.gmra.mrb[20].mxu1 %vm258_vm1, %v10399_v8  ;;  %v10405_v21 = vld [vmem:[#allocation92_spill] sm:$0xff]  ;;  %v9738_v8 = vld [vmem:[%s10035_s4] ss:$0 sm:$0xff] }
 0x1d9   : > { %7438 = vmatprep.mubr.msk.f32.mxu0 %vm258_vm1, %v10400_v28  ;;  %7635 = vmatprep.mubr.msk.f32.mxu1 %vm258_vm1, %v10401_v50 }
 0x1dc   : > { %7439 = vmatmul.mubr.msk.f32.gmra.mrb[56].mxu0 %vm258_vm1, %v10327_v31  ;;  %7636 = vmatmul.mubr.msk.f32.gmra.mrb[22].mxu1 %vm258_vm1, %v10402_v55  ;;  %v10408_v31 = vld [vmem:[#allocation101_spill] sm:$0xff] }
 0x1dd   : > { %7441 = vmatprep.mubr.msk.f32.mxu0 %vm258_vm1, %v10403_v7  ;;  %7638 = vmatprep.mubr.msk.f32.mxu1 %vm258_vm1, %v10404_v35 }
 0x1e0   : > { %7442 = vmatmul.mubr.msk.f32.gmra.mrb[58].mxu0 %vm258_vm1, %v10330_v4  ;;  %7639 = vmatmul.mubr.msk.f32.gmra.mrb[24].mxu1 %vm258_vm1, %v10405_v21  ;;  %v10411_v4 = vld [vmem:[#allocation110_spill] sm:$0xff] }
 0x1e1   : > { %7444 = vmatprep.mubr.msk.f32.mxu0 %vm258_vm1, %v10406_v2  ;;  %7641 = vmatprep.mubr.msk.f32.mxu1 %vm258_vm1, %v10407_v34 }
 0x1e4   : > { %7445 = vmatmul.mubr.msk.f32.gmra.mrb[60].mxu0 %vm258_vm1, %v10332_v40  ;;  %7642 = vmatmul.mubr.msk.f32.gmra.mrb[26].mxu1 %vm258_vm1, %v10408_v31  ;;  %v10412_v40 = vld [vmem:[#allocation11_spill] sm:$0xff] }
 0x1e5   : > { %7447 = vmatprep.mubr.msk.f32.mxu0 %vm258_vm1, %v10409_v22  ;;  %7644 = vmatprep.mubr.msk.f32.mxu1 %vm258_vm1, %v10410_v20 }
 0x1e8   : > { %7448 = vmatmul.mubr.msk.f32.gmra.mrb[62].mxu0 %vm258_vm1, %v10364_v57  ;;  %7645 = vmatmul.mubr.msk.f32.gmra.mrb[28].mxu1 %vm258_vm1, %v10411_v4  ;;  %v10414_v57 = vld [vmem:[#allocation25_spill] sm:$0xff] }
 0x1e9   : > { %7647 = vmatprep.mubr.f32.mxu1 %v10257_v27 }
 0x1ec   : > { %7648 = vmatmul.mubr.f32.gmra.mrb[30].mxu1 %v10257_v27 }
 0x1ed   : > { %7652 = vmatprep.mubr.msk.f32.mxu1 %vm258_vm1, %v8341_v24  ;;  %v10416_v24 = vld [vmem:[#allocation43_spill] sm:$0xff] }
 0x1f0   : > { %7653 = vmatmul.mubr.msk.f32.vlgmr.msra.gmra.mrb[0].mxu1 %vm258_vm1, %v10412_v40 }
 0x1f1   : > { %7655 = vmatprep.mubr.msk.f32.mxu1 %vm258_vm1, %v8391_v44  ;;  %v10417_v44 = vld [vmem:[#allocation53_spill] sm:$0xff] }
 0x1f4   : > { %7656 = vmatmul.mubr.msk.f32.gmra.mrb[2].mxu1 %vm258_vm1, %v10413_v56 }
 0x1f5   : > { %7658 = vmatprep.mubr.msk.f32.mxu1 %vm258_vm1, %v8445_v12  ;;  %v10418_v12 = vld [vmem:[#allocation63_spill] sm:$0xff] }
 0x1f8   : > { %7659 = vmatmul.mubr.msk.f32.gmra.mrb[4].mxu1 %vm258_vm1, %v10414_v57 }
 0x1f9   : > { %7661 = vmatprep.mubr.msk.f32.mxu1 %vm258_vm1, %v8500_v3  ;;  %v10419_v3 = vld [vmem:[#allocation73_spill] sm:$0xff] }
 0x1fc   : > { %7662 = vmatmul.mubr.msk.f32.gmra.mrb[6].mxu1 %vm258_vm1, %v10415_v17 }
 0x1fd   : > { %7664 = vmatprep.mubr.msk.f32.mxu1 %vm258_vm1, %v8553_v51  ;;  %v10420_v51 = vld [vmem:[#allocation82_spill] sm:$0xff] }
 0x200   : > { %7665 = vmatmul.mubr.msk.f32.gmra.mrb[8].mxu1 %vm258_vm1, %v10416_v24 }
 0x201   : > { %7667 = vmatprep.mubr.msk.f32.mxu1 %vm258_vm1, %v10285_v1  ;;  %v10421_v1 = vld [vmem:[#allocation91_spill] sm:$0xff] }
 0x204   : > { %7668 = vmatmul.mubr.msk.f32.gmra.mrb[10].mxu1 %vm258_vm1, %v10417_v44 }
 0x205   : > { %7670 = vmatprep.mubr.msk.f32.mxu1 %vm258_vm1, %v10292_v33  ;;  %v10422_v33 = vld [vmem:[#allocation100_spill] sm:$0xff] }
 0x208   : > { %7671 = vmatmul.mubr.msk.f32.gmra.mrb[12].mxu1 %vm258_vm1, %v10418_v12 }
 0x209   : > { %7673 = vmatprep.mubr.msk.f32.mxu1 %vm258_vm1, %v10299_v16  ;;  %v10423_v16 = vld [vmem:[#allocation109_spill] sm:$0xff] }
 0x20c   : > { %7674 = vmatmul.mubr.msk.f32.gmra.mrb[14].mxu1 %vm258_vm1, %v10419_v3 }
 0x20d   : > { %7676 = vmatprep.mubr.msk.f32.mxu1 %vm258_vm1, %v10306_v19  ;;  %v10424_v19 = vld [vmem:[#allocation116_spill] sm:$0xff] }
 0x210   : > { %7677 = vmatmul.mubr.msk.f32.gmra.mrb[16].mxu1 %vm258_vm1, %v10420_v51 }
 0x211   : > { %7679 = vmatprep.mubr.msk.f32.mxu1 %vm258_vm1, %v10353_v0  ;;  %v10425_v0 = vld [vmem:[#allocation121_spill] sm:$0xff] }
 0x214   : > { %7680 = vmatmul.mubr.msk.f32.gmra.mrb[18].mxu1 %vm258_vm1, %v10421_v1 }
 0x215   : > { %7682 = vmatprep.mubr.msk.f32.mxu1 %vm258_vm1, %v10357_v18  ;;  %v10426_v18 = vld [vmem:[#allocation122_spill] sm:$0xff] }
 0x218   : > { %7683 = vmatmul.mubr.msk.f32.gmra.mrb[20].mxu1 %vm258_vm1, %v10422_v33 }
 0x219   : > { %7685 = vmatprep.mubr.msk.f32.mxu1 %vm258_vm1, %v10325_v58 }
 0x21c   : > { %7686 = vmatmul.mubr.msk.f32.gmra.mrb[22].mxu1 %vm258_vm1, %v10423_v16 }
 0x21d   : > { %7688 = vmatprep.mubr.msk.f32.mxu1 %vm258_vm1, %v10329_v39 }
 0x220   : > { %7689 = vmatmul.mubr.msk.f32.gmra.mrb[24].mxu1 %vm258_vm1, %v10424_v19 }
 0x221   : > { %7691 = vmatprep.mubr.msk.f32.mxu1 %vm258_vm1, %v10331_v48 }
 0x224   : > { %7692 = vmatmul.mubr.msk.f32.gmra.mrb[26].mxu1 %vm258_vm1, %v10425_v0 }
 0x225   : > { %7694 = vmatprep.mubr.msk.f32.mxu1 %vm258_vm1, %v9096_v32 }
 0x228   : > { %7695 = vmatmul.mubr.msk.f32.gmra.mrb[28].mxu1 %vm258_vm1, %v10426_v18 }
 0x229   : > { %7697 = vmatprep.mubr.f32.mxu1 %v10257_v27 }
 0x22c   : > { %7698 = vmatmul.mubr.f32.gmra.mrb[30].mxu1 %v10257_v27 }
 0x27f   : > { %v7404_v58 = vpop.f32.mrb[32].mxu0 }
 0x280   : > { %v3427_v39 = vpop.f32.mrb[33].mxu0 }
 0x283   : > { %v7407_v41 = vpop.f32.mrb[34].mxu0 }
 0x284   : > { %v3437_v30 = vpop.f32.mrb[35].mxu0 }
 0x287   : > { %v7410_v42 = vpop.f32.mrb[36].mxu0 }
 0x288   : > { %v3447_v29 = vpop.f32.mrb[37].mxu0 }
 0x28b   : > { %v7413_v48 = vpop.f32.mrb[38].mxu0 }
 0x28c   : > { %v9680_v10 = vpop.f32.mrb[39].mxu0 }
 0x28f   : > { %v9682_v59 = vpop.f32.mrb[40].mxu0 }
 0x290   : > { %v9684_v25 = vpop.f32.mrb[41].mxu0 }
 0x293   : > { %v9686_v32 = vpop.f32.mrb[42].mxu0 }
 0x294   : > { %v9688_v5 = vpop.f32.mrb[43].mxu0 }
 0x297   : > { %v9690_v52 = vpop.f32.mrb[44].mxu0 }
 0x298   : > { %v9692_v27 = vpop.f32.mrb[45].mxu0 }
 0x29b   : > { %v9694_v47 = vpop.f32.mrb[46].mxu0 }
 0x29c   : > { %v9696_v45 = vpop.f32.mrb[47].mxu0 }
 0x29f   : > { %v9698_v46 = vpop.f32.mrb[48].mxu0 }
 0x2a0   : > { %v9700_v36 = vpop.f32.mrb[49].mxu0 }
 0x2a3   : > { %v9702_v13 = vpop.f32.mrb[50].mxu0 }
 0x2a4   : > { %v9704_v53 = vpop.f32.mrb[51].mxu0 }
 0x2a7   : > { %v9706_v37 = vpop.f32.mrb[52].mxu0 }
 0x2a8   : > { %v9708_v62 = vpop.f32.mrb[53].mxu0 }
 0x2ab   : > { %v9710_v60 = vpop.f32.mrb[54].mxu0 }
 0x2ac   : > { %v9712_v15 = vpop.f32.mrb[55].mxu0 }
 0x2af   : > { %v9714_v14 = vpop.f32.mrb[56].mxu0 }
 0x2b0   : > { %v9716_v43 = vpop.f32.mrb[57].mxu0 }
 0x2b3   : > { %v9718_v23 = vpop.f32.mrb[58].mxu0 }
 0x2b4   : > { %v9720_v63 = vpop.f32.mrb[59].mxu0 }
 0x2b7   : > { %v9722_v54 = vpop.f32.mrb[60].mxu0 }
 0x2b8   : > { %v9724_v9 = vpop.f32.mrb[61].mxu0 }
 0x2bb   : > { %v9726_v11 = vpop.f32.mrb[62].mxu0 }
 0x2bc   : > { %v9728_v49 = vpop.f32.mrb[63].mxu0 }
 0x2c3   : > { %v7654_v61 = vpop.f32.mrb[0].mxu1 }
 0x2c4   : > { %v7700_v6 = vadd.f32 %v7654_v61, %v7404_v58  ;;  %v5981_v38 = vpop.f32.mrb[1].mxu1 }
 0x2c5   : > { %v7701_v28 = vadd.f32 %v5981_v38, %v3427_v39 }
 0x2c6   : > { %v6180_v50 = vmul.f32 %v7700_v6, %v9733_v26 }
 0x2c7   : > { %v6179_v55 = vmul.f32 %v7701_v28, %v9733_v26  ;;  %v7657_v7 = vpop.f32.mrb[2].mxu1 }
 0x2c8   : > { %v9743_v35 = vadd.f32 %v9738_v8, %v6180_v50  ;;  %v7702_v21 = vadd.f32 %v7657_v7, %v7407_v41  ;;  %v5991_v2 = vpop.f32.mrb[3].mxu1 }
 0x2c9   : > { %v9746_v34 = vadd.f32 %v9738_v8, %v6179_v55  ;;  %v7703_v31 = vadd.f32 %v5991_v2, %v3437_v30 }
 0x2ca   : > { %v6251_v22 = vsub.f32 0.0, %v9743_v35  ;;  %v6182_v20 = vmul.f32 %v7702_v21, %v9733_v26 }
 0x2cb   : > { %v6250_v4 = vsub.f32 0.0, %v9746_v34  ;;  %v6181_v40 = vmul.f32 %v7703_v31, %v9733_v26  ;;  %v7660_v56 = vpop.f32.mrb[4].mxu1 }
 0x2cc   : > { %v6284_v57 = vmul.f32 1.442695, %v6251_v22  ;;  %v9753_v17 = vadd.f32 %v9738_v8, %v6182_v20  ;;  %v7704_v24 = vadd.f32 %v7660_v56, %v7410_v42  ;;  %v6001_v44 = vpop.f32.mrb[5].mxu1 }
 0x2cd   : > { %v6282_v12 = vmul.f32 1.442695, %v6250_v4  ;;  %v9756_v3 = vadd.f32 %v9738_v8, %v6181_v40  ;;  %v7705_v51 = vadd.f32 %v6001_v44, %v3447_v29 }
 0x2ce   : > { %7965 = vpow2.f32 %v6284_v57  ;;  %v6253_v1 = vsub.f32 0.0, %v9753_v17  ;;  %v6184_v33 = vmul.f32 %v7704_v24, %v9733_v26 }
 0x2cf   : > { %7967 = vpow2.f32 %v6282_v12  ;;  %v6252_v16 = vsub.f32 0.0, %v9756_v3  ;;  %v6183_v19 = vmul.f32 %v7705_v51, %v9733_v26  ;;  %v7663_v0 = vpop.f32.mrb[6].mxu1 }
 0x2d0   : > { %v6288_v18 = vmul.f32 1.442695, %v6253_v1  ;;  %v9763_v58 = vadd.f32 %v9738_v8, %v6184_v33  ;;  %v7706_v39 = vadd.f32 %v7663_v0, %v7413_v48  ;;  %v6011_v41 = vpop.f32.mrb[7].mxu1 }
 0x2d1   : > { %v6286_v30 = vmul.f32 1.442695, %v6252_v16  ;;  %v9766_v42 = vadd.f32 %v9738_v8, %v6183_v19  ;;  %v7707_v29 = vadd.f32 %v6011_v41, %v9680_v10 }
 0x2d2   : > { %7969 = vpow2.f32 %v6288_v18  ;;  %v6255_v61 = vsub.f32 0.0, %v9763_v58  ;;  %v6186_v6 = vmul.f32 %v7706_v39, %v9733_v26 }
 0x2d3   : > { %7971 = vpow2.f32 %v6286_v30  ;;  %v6254_v38 = vsub.f32 0.0, %v9766_v42  ;;  %v6185_v28 = vmul.f32 %v7707_v29, %v9733_v26  ;;  %v7666_v50 = vpop.f32.mrb[8].mxu1 }
 0x2d4   : > { %v6292_v55 = vmul.f32 1.442695, %v6255_v61  ;;  %v9774_v48 = vadd.f32 %v9738_v8, %v6186_v6  ;;  %v7708_v7 = vadd.f32 %v7666_v50, %v9682_v59  ;;  %v6021_v21 = vpop.f32.mrb[9].mxu1 }
 0x2d5   : > { %v6290_v2 = vmul.f32 1.442695, %v6254_v38  ;;  %v9778_v10 = vadd.f32 %v9738_v8, %v6185_v28  ;;  %v7709_v31 = vadd.f32 %v6021_v21, %v9684_v25 }
 0x2d6   : > { %7973 = vpow2.f32 %v6292_v55  ;;  %v6257_v22 = vsub.f32 0.0, %v9774_v48  ;;  %v6188_v20 = vmul.f32 %v7708_v7, %v9733_v26 }
 0x2d7   : > { %7975 = vpow2.f32 %v6290_v2  ;;  %v6256_v4 = vsub.f32 0.0, %v9778_v10  ;;  %v6187_v40 = vmul.f32 %v7709_v31, %v9733_v26  ;;  %v7669_v56 = vpop.f32.mrb[10].mxu1 }
 0x2d8   : > { %v7966_v57 = vpop.eup %7965  ;;  %v6296_v59 = vmul.f32 1.442695, %v6257_v22  ;;  %v9786_v24 = vadd.f32 %v9738_v8, %v6188_v20  ;;  %v7710_v44 = vadd.f32 %v7669_v56, %v9686_v32  ;;  %v6031_v12 = vpop.f32.mrb[11].mxu1 }
 0x2d9   : > { %v7968_v25 = vpop.eup %7967  ;;  %v6347_v51 = vadd.f32 1.0, %v7966_v57  ;;  %v6294_v1 = vmul.f32 1.442695, %v6256_v4  ;;  %v9790_v33 = vadd.f32 %v9738_v8, %v6187_v40  ;;  %v7711_v16 = vadd.f32 %v6031_v12, %v9688_v5 }
 0x2da   : > { %v6346_v19 = vadd.f32 1.0, %v7968_v25  ;;  %7977 = vpow2.f32 %v6296_v59  ;;  %v6259_v0 = vsub.f32 0.0, %v9786_v24  ;;  %v6190_v18 = vmul.f32 %v7710_v44, %v9733_v26 }
 0x2db   : > { %7979 = vrcp.f32 %v6347_v51  ;;  %v6258_v39 = vsub.f32 0.0, %v9790_v33  ;;  %v6189_v32 = vmul.f32 %v7711_v16, %v9733_v26  ;;  %v7672_v41 = vpop.f32.mrb[12].mxu1 }
 0x2dc   : > { %v7970_v30 = vpop.eup %7969  ;;  %7981 = vrcp.f32 %v6346_v19  ;;  %v6300_v29 = vmul.f32 1.442695, %v6259_v0  ;;  %v9798_v61 = vadd.f32 %v9738_v8, %v6190_v18  ;;  %v7712_v5 = vadd.f32 %v7672_v41, %v9690_v52  ;;  %v6041_v6 = vpop.f32.mrb[13].mxu1 }
 0x2dd   : > { %v7972_v38 = vpop.eup %7971  ;;  %v6349_v28 = vadd.f32 1.0, %v7970_v30  ;;  %7983 = vpow2.f32 %v6294_v1  ;;  %v6298_v50 = vmul.f32 1.442695, %v6258_v39  ;;  %v9802_v55 = vadd.f32 %v9738_v8, %v6189_v32 }
 0x2de   : > { %v6348_v7 = vadd.f32 1.0, %v7972_v38  ;;  %7985 = vpow2.f32 %v6300_v29  ;;  %v6261_v21 = vsub.f32 0.0, %v9798_v61  ;;  %v6192_v2 = vmul.f32 %v7712_v5, %v9733_v26 }
 0x2df   : > { %7987 = vrcp.f32 %v6349_v28  ;;  %v6260_v31 = vsub.f32 0.0, %v9802_v55  ;;  %v7713_v22 = vadd.f32 %v6041_v6, %v9692_v27  ;;  %v7675_v52 = vpop.f32.mrb[14].mxu1 }
 0x2e0   : > { %v7974_v20 = vpop.eup %7973  ;;  %7989 = vrcp.f32 %v6348_v7  ;;  %v6304_v4 = vmul.f32 1.442695, %v6261_v21  ;;  %v9809_v40 = vadd.f32 %v9738_v8, %v6192_v2  ;;  %v7714_v56 = vadd.f32 %v7675_v52, %v9694_v47  ;;  %v6051_v57 = vpop.f32.mrb[15].mxu1 }
 0x2e1   : > { %v7976_v59 = vpop.eup %7975  ;;  %v6351_v44 = vadd.f32 1.0, %v7974_v20  ;;  %7991 = vpow2.f32 %v6298_v50  ;;  %v6302_v12 = vmul.f32 1.442695, %v6260_v31  ;;  %v6191_v25 = vmul.f32 %v7713_v22, %v9733_v26 }
 0x2e2   : > { %v6350_v51 = vadd.f32 1.0, %v7976_v59  ;;  %7993 = vpow2.f32 %v6304_v4  ;;  %v6263_v27 = vsub.f32 0.0, %v9809_v40  ;;  %v6194_v1 = vmul.f32 %v7714_v56, %v9733_v26 }
 0x2e3   : > { %7995 = vrcp.f32 %v6351_v44  ;;  %v9816_v16 = vadd.f32 %v9738_v8, %v6191_v25  ;;  %v7715_v47 = vadd.f32 %v6051_v57, %v9696_v45  ;;  %v7678_v19 = vpop.f32.mrb[16].mxu1 }
 0x2e4   : > { %v7978_v0 = vpop.eup %7977  ;;  %7997 = vrcp.f32 %v6350_v51  ;;  %v6308_v18 = vmul.f32 1.442695, %v6263_v27  ;;  %v9820_v39 = vadd.f32 %v9738_v8, %v6194_v1  ;;  %v7716_v32 = vadd.f32 %v7678_v19, %v9698_v46  ;;  %v6061_v41 = vpop.f32.mrb[17].mxu1 }
 0x2e5   : > { %v7980_v30 = vpop.eup %7979  ;;  %v6353_v29 = vadd.f32 1.0, %v7978_v0  ;;  %7999 = vpow2.f32 %v6302_v12  ;;  %v6262_v45 = vsub.f32 0.0, %v9816_v16  ;;  %v6193_v5 = vmul.f32 %v7715_v47, %v9733_v26 }
 0x2e6   : > { %v7982_v6 = vpop.eup %7981  ;;  %v6411_v38 = vmul.f32 %v7980_v30, %v9743_v35  ;;  %8001 = vpow2.f32 %v6308_v18  ;;  %v6265_v46 = vsub.f32 0.0, %v9820_v39  ;;  %v6196_v28 = vmul.f32 %v7716_v32, %v9733_v26 }
 0x2e7   : > { %v7984_v50 = vpop.eup %7983  ;;  %v6410_v7 = vmul.f32 %v7982_v6, %v9746_v34  ;;  %8003 = vrcp.f32 %v6353_v29  ;;  %v6306_v21 = vmul.f32 1.442695, %v6262_v45  ;;  %v9837_v2 = vadd.f32 %v9738_v8, %v6193_v5  ;;  %v7681_v31 = vpop.f32.mrb[18].mxu1 }
 0x2e8   : > { %v7986_v22 = vpop.eup %7985  ;;  %6443 = vst.msk [vmem:[%s9828_s28 + $0x8] sm:$0xff] %vm258_vm1, %v6411_v38  ;;  %v6352_v52 = vadd.f32 1.0, %v7984_v50  ;;  %v6312_v35 = vmul.f32 1.442695, %v6265_v46  ;;  %v9842_v20 = vadd.f32 %v9738_v8, %v6196_v28  ;;  %v7717_v4 = vadd.f32 %v6061_v41, %v9700_v36  ;;  %v6071_v56 = vpop.f32.mrb[19].mxu1 }
 0x2e9   : > { %v7988_v57 = vpop.eup %7987  ;;  %6442 = vst.msk [vmem:[%s9828_s28] sm:$0xff] %vm258_vm1, %v6410_v7  ;;  %v6355_v34 = vadd.f32 1.0, %v7986_v22  ;;  %8005 = vpow2.f32 %v6306_v21  ;;  %v6264_v59 = vsub.f32 0.0, %v9837_v2  ;;  %v7718_v44 = vadd.f32 %v7681_v31, %v9702_v13 }
 0x2ea   : > { %v7990_v12 = vpop.eup %7989  ;;  %v6413_v25 = vmul.f32 %v7988_v57, %v9753_v17  ;;  %8007 = vrcp.f32 %v6352_v52  ;;  %v6267_v51 = vsub.f32 0.0, %v9842_v20  ;;  %v6195_v36 = vmul.f32 %v7717_v4, %v9733_v26 }
 0x2eb   : > { %v7992_v27 = vpop.eup %7991  ;;  %v6412_v1 = vmul.f32 %v7990_v12, %v9756_v3  ;;  %8009 = vrcp.f32 %v6355_v34  ;;  %v6310_v47 = vmul.f32 1.442695, %v6264_v59  ;;  %v6198_v19 = vmul.f32 %v7718_v44, %v9733_v26  ;;  %v7684_v0 = vpop.f32.mrb[20].mxu1 }
 0x2ec   : > { %v7994_v18 = vpop.eup %7993  ;;  %6445 = vst.msk [vmem:[%s9828_s28 + $0x18] sm:$0xff] %vm258_vm1, %v6413_v25  ;;  %v6354_v13 = vadd.f32 1.0, %v7992_v27  ;;  %8011 = vpow2.f32 %v6312_v35  ;;  %v6316_v17 = vmul.f32 1.442695, %v6267_v51  ;;  %v9857_v32 = vadd.f32 %v9738_v8, %v6195_v36  ;;  %v6081_v41 = vpop.f32.mrb[21].mxu1 }
 0x2ed   : > { %v7996_v30 = vpop.eup %7995  ;;  %6444 = vst.msk [vmem:[%s9828_s28 + $0x10] sm:$0xff] %vm258_vm1, %v6412_v1  ;;  %v6357_v29 = vadd.f32 1.0, %v7994_v18  ;;  %8013 = vpow2.f32 %v6310_v47  ;;  %v9862_v3 = vadd.f32 %v9738_v8, %v6198_v19  ;;  %v7719_v45 = vadd.f32 %v6071_v56, %v9704_v53 }
 0x2ee   : > { %v7998_v5 = vpop.eup %7997  ;;  %v6415_v6 = vmul.f32 %v7996_v30, %v9763_v58  ;;  %8015 = vrcp.f32 %v6354_v13  ;;  %v6266_v38 = vsub.f32 0.0, %v9857_v32  ;;  %v7720_v46 = vadd.f32 %v7684_v0, %v9706_v37 }
 0x2ef   : > { %v8000_v28 = vpop.eup %7999  ;;  %v6414_v50 = vmul.f32 %v7998_v5, %v9766_v42  ;;  %8017 = vrcp.f32 %v6357_v29  ;;  %v6269_v7 = vsub.f32 0.0, %v9862_v3  ;;  %v6197_v21 = vmul.f32 %v7719_v45, %v9733_v26  ;;  %v7687_v31 = vpop.f32.mrb[22].mxu1 }
 0x2f0   : > { %v8002_v22 = vpop.eup %8001  ;;  %6447 = vst.msk [vmem:[%s9828_s28 + $0x28] sm:$0xff] %vm258_vm1, %v6415_v6  ;;  %v6356_v53 = vadd.f32 1.0, %v8000_v28  ;;  %8019 = vpow2.f32 %v6316_v17  ;;  %v6314_v58 = vmul.f32 1.442695, %v6266_v38  ;;  %v6200_v52 = vmul.f32 %v7720_v46, %v9733_v26  ;;  %v6091_v35 = vpop.f32.mrb[23].mxu1 }
 0x2f1   : > { %v8004_v4 = vpop.eup %8003  ;;  %6446 = vst.msk [vmem:[%s9828_s28 + $0x20] sm:$0xff] %vm258_vm1, %v6414_v50  ;;  %v6359_v37 = vadd.f32 1.0, %v8002_v22  ;;  %v6320_v42 = vmul.f32 1.442695, %v6269_v7  ;;  %v9877_v56 = vadd.f32 %v9738_v8, %v6197_v21  ;;  %v7721_v57 = vadd.f32 %v6081_v41, %v9708_v62 }
 0x2f2   : > { %v6417_v34 = vmul.f32 %v8004_v4, %v9774_v48  ;;  %8021 = vrcp.f32 %v6356_v53  ;;  %v9882_v59 = vadd.f32 %v9738_v8, %v6200_v52  ;;  %v7722_v44 = vadd.f32 %v7687_v31, %v9710_v60 }
 0x2f3   : > { %v8006_v12 = vpop.eup %8005  ;;  %8023 = vrcp.f32 %v6359_v37  ;;  %v6268_v25 = vsub.f32 0.0, %v9877_v56  ;;  %v6199_v51 = vmul.f32 %v7721_v57, %v9733_v26  ;;  %v7723_v36 = vadd.f32 %v6091_v35, %v9712_v15  ;;  %v7690_v27 = vpop.f32.mrb[24].mxu1 }
 0x2f4   : > { %v8008_v1 = vpop.eup %8007  ;;  %6449 = vst.msk [vmem:[%s9828_s28 + $0x38] sm:$0xff] %vm258_vm1, %v6417_v34  ;;  %v6358_v62 = vadd.f32 1.0, %v8006_v12  ;;  %8025 = vpow2.f32 %v6314_v58  ;;  %v6271_v48 = vsub.f32 0.0, %v9882_v59  ;;  %v6202_v47 = vmul.f32 %v7722_v44, %v9733_v26  ;;  %v6101_v60 = vpop.f32.mrb[25].mxu1 }
 0x2f5   : > { %v8010_v19 = vpop.eup %8009  ;;  %v6416_v0 = vmul.f32 %v8008_v1, %v9778_v10  ;;  %8027 = vpow2.f32 %v6320_v42  ;;  %v6318_v18 = vmul.f32 1.442695, %v6268_v25  ;;  %v9894_v15 = vadd.f32 %v9738_v8, %v6199_v51 }
 0x2f6   : > { %v8012_v13 = vpop.eup %8011  ;;  %v6419_v17 = vmul.f32 %v8010_v19, %v9786_v24  ;;  %8029 = vrcp.f32 %v6358_v62  ;;  %v6324_v41 = vmul.f32 1.442695, %v6271_v48  ;;  %v9898_v30 = vadd.f32 %v9738_v8, %v6202_v47 }
 0x2f7   : > { %v8014_v29 = vpop.eup %8013  ;;  %6448 = vst.msk [vmem:[%s9828_s28 + $0x30] sm:$0xff] %vm258_vm1, %v6416_v0  ;;  %v6361_v45 = vadd.f32 1.0, %v8012_v13  ;;  %8031 = vpow2.f32 %v6318_v18  ;;  %v6270_v10 = vsub.f32 0.0, %v9894_v15  ;;  %v6201_v5 = vmul.f32 %v7723_v36, %v9733_v26  ;;  %v7693_v6 = vpop.f32.mrb[26].mxu1 }
 0x2f8   : > { %v8016_v38 = vpop.eup %8015  ;;  %6451 = vst.msk [vmem:[%s9828_s28 + $0x48] sm:$0xff] %vm258_vm1, %v6419_v17  ;;  %v6360_v24 = vadd.f32 1.0, %v8014_v29  ;;  %8033 = vpow2.f32 %v6324_v41  ;;  %v6273_v46 = vsub.f32 0.0, %v9898_v30  ;;  %v7724_v28 = vadd.f32 %v7690_v27, %v9714_v14  ;;  %v6111_v50 = vpop.f32.mrb[27].mxu1 }
 0x2f9   : > { %v8018_v7 = vpop.eup %8017  ;;  %v6418_v21 = vmul.f32 %v8016_v38, %v9790_v33  ;;  %8035 = vrcp.f32 %v6361_v45  ;;  %v6322_v31 = vmul.f32 1.442695, %v6270_v10  ;;  %v9910_v22 = vadd.f32 %v9738_v8, %v6201_v5 }
 0x2fa   : > { %v8020_v53 = vpop.eup %8019  ;;  %v6421_v58 = vmul.f32 %v8018_v7, %v9798_v61  ;;  %8037 = vrcp.f32 %v6360_v24  ;;  %v6328_v52 = vmul.f32 1.442695, %v6273_v46  ;;  %v6204_v35 = vmul.f32 %v7724_v28, %v9733_v26 }
 0x2fb   : > { %6450 = vst.msk [vmem:[%s9828_s28 + $0x40] sm:$0xff] %vm258_vm1, %v6418_v21  ;;  %v6363_v14 = vadd.f32 1.0, %v8020_v53  ;;  %8039 = vpow2.f32 %v6322_v31  ;;  %v6272_v4 = vsub.f32 0.0, %v9910_v22  ;;  %v7725_v33 = vadd.f32 %v6101_v60, %v9716_v43  ;;  %v7696_v37 = vpop.f32.mrb[28].mxu1 }
 0x2fc   : > { %v8022_v42 = vpop.eup %8021  ;;  %6453 = vst.msk [vmem:[%s9828_s28 + $0x58] sm:$0xff] %vm258_vm1, %v6421_v58  ;;  %8041 = vpow2.f32 %v6328_v52  ;;  %v9921_v61 = vadd.f32 %v9738_v8, %v6204_v35  ;;  %v7726_v57 = vadd.f32 %v7693_v6, %v9718_v23  ;;  %v7727_v34 = vadd.f32 %v6111_v50, %v9720_v63  ;;  %v6121_v44 = vpop.f32.mrb[29].mxu1 }
 0x2fd   : > { %v8024_v12 = vpop.eup %8023  ;;  %v6420_v25 = vmul.f32 %v8022_v42, %v9802_v55  ;;  %8043 = vrcp.f32 %v6363_v14  ;;  %v6326_v43 = vmul.f32 1.442695, %v6272_v4  ;;  %v6203_v51 = vmul.f32 %v7725_v33, %v9733_v26 }
 0x2fe   : > { %v8026_v36 = vpop.eup %8025  ;;  %v6423_v27 = vmul.f32 %v8024_v12, %v9809_v40  ;;  %v6275_v1 = vsub.f32 0.0, %v9921_v61  ;;  %v6206_v62 = vmul.f32 %v7726_v57, %v9733_v26  ;;  %v6205_v23 = vmul.f32 %v7727_v34, %v9733_v26 }
 0x2ff   : > { %v8028_v48 = vpop.eup %8027  ;;  %6452 = vst.msk [vmem:[%s9828_s28 + $0x50] sm:$0xff] %vm258_vm1, %v6420_v25  ;;  %v6362_v63 = vadd.f32 1.0, %v8026_v36  ;;  %8045 = vpow2.f32 %v6326_v43  ;;  %v9934_v55 = vadd.f32 %v9738_v8, %v6203_v51  ;;  %v7728_v47 = vadd.f32 %v7696_v37, %v9722_v54  ;;  %v7699_v60 = vpop.f32.mrb[30].mxu1 }
 0x300   : > { %v8030_v19 = vpop.eup %8029  ;;  %6455 = vst.msk [vmem:[%s9828_s28 + $0x68] sm:$0xff] %vm258_vm1, %v6423_v27  ;;  %v6365_v40 = vadd.f32 1.0, %v8028_v48  ;;  %v6332_v0 = vmul.f32 1.442695, %v6275_v1  ;;  %v9940_v18 = vadd.f32 %v9738_v8, %v6206_v62  ;;  %v9943_v13 = vadd.f32 %v9738_v8, %v6205_v23  ;;  %v6131_v17 = vpop.f32.mrb[31].mxu1 }
 0x301   : > { %v8032_v41 = vpop.eup %8031  ;;  %v6422_v29 = vmul.f32 %v8030_v19, %v9816_v16  ;;  %8047 = vrcp.f32 %v6362_v63  ;;  %v6274_v54 = vsub.f32 0.0, %v9934_v55  ;;  %v6208_v45 = vmul.f32 %v7728_v47, %v9733_v26 }
 0x302   : > { %v8034_v10 = vpop.eup %8033  ;;  %8049 = vrcp.f32 %v6365_v40  ;;  %v6364_v5 = vadd.f32 1.0, %v8032_v41  ;;  %v6277_v6 = vsub.f32 0.0, %v9940_v18  ;;  %v6276_v38 = vsub.f32 0.0, %v9943_v13 }
 0x303   : > { %v8036_v24 = vpop.eup %8035  ;;  %6454 = vst.msk [vmem:[%s9828_s28 + $0x60] sm:$0xff] %vm258_vm1, %v6422_v29  ;;  %v6367_v46 = vadd.f32 1.0, %v8034_v10  ;;  %8051 = vpow2.f32 %v6332_v0  ;;  %v6330_v28 = vmul.f32 1.442695, %v6274_v54  ;;  %v9953_v16 = vadd.f32 %v9738_v8, %v6208_v45 }
 0x304   : > { %v8038_v50 = vpop.eup %8037  ;;  %v6425_v7 = vmul.f32 %v8036_v24, %v9820_v39  ;;  %8053 = vrcp.f32 %v6364_v5  ;;  %v6336_v21 = vmul.f32 1.442695, %v6277_v6  ;;  %v6334_v31 = vmul.f32 1.442695, %v6276_v38 }
 0x305   : > { %v8040_v53 = vpop.eup %8039  ;;  %v6424_v58 = vmul.f32 %v8038_v50, %v9837_v2  ;;  %8055 = vrcp.f32 %v6367_v46  ;;  %v6279_v52 = vsub.f32 0.0, %v9953_v16  ;;  %v7729_v35 = vadd.f32 %v6121_v44, %v9724_v9 }
 0x306   : > { %v8042_v14 = vpop.eup %8041  ;;  %6457 = vst.msk [vmem:[%s9828_s28 + $0x78] sm:$0xff] %vm258_vm1, %v6425_v7  ;;  %v6366_v4 = vadd.f32 1.0, %v8040_v53  ;;  %8057 = vpow2.f32 %v6330_v28  ;;  %v7730_v39 = vadd.f32 %v7699_v60, %v9726_v11  ;;  %v7731_v33 = vadd.f32 %v6131_v17, %v9728_v49 }
 0x307   : > { %v8044_v37 = vpop.eup %8043  ;;  %6456 = vst.msk [vmem:[%s9828_s28 + $0x70] sm:$0xff] %vm258_vm1, %v6424_v58  ;;  %v6369_v42 = vadd.f32 1.0, %v8042_v14  ;;  %8059 = vpow2.f32 %v6336_v21  ;;  %v6340_v2 = vmul.f32 1.442695, %v6279_v52  ;;  %v6207_v57 = vmul.f32 %v7729_v35, %v9733_v26 }
 0x308   : > { %v6427_v9 = vmul.f32 %v8044_v37, %v9842_v20  ;;  %8061 = vrcp.f32 %v6366_v4  ;;  %v6210_v34 = vmul.f32 %v7730_v39, %v9733_v26  ;;  %v6209_v44 = vmul.f32 %v7731_v33, %v9733_v26 }
 0x309   : > { %v8046_v12 = vpop.eup %8045  ;;  %8063 = vrcp.f32 %v6369_v42  ;;  %v9970_v11 = vadd.f32 %v9738_v8, %v6207_v57 }
 0x30a   : > { %6459 = vst.msk [vmem:[%s9828_s28 + $0x88] sm:$0xff] %vm258_vm1, %v6427_v9  ;;  %v6368_v49 = vadd.f32 1.0, %v8046_v12  ;;  %8065 = vpow2.f32 %v6334_v31  ;;  %v9975_v25 = vadd.f32 %v9738_v8, %v6210_v34  ;;  %v9978_v20 = vadd.f32 %v9738_v8, %v6209_v44 }
 0x30b   : > { %v8048_v43 = vpop.eup %8047  ;;  %8067 = vpow2.f32 %v6340_v2  ;;  %v6278_v26 = vsub.f32 0.0, %v9970_v11 }
 0x30c   : > { %v8050_v51 = vpop.eup %8049  ;;  %v6426_v36 = vmul.f32 %v8048_v43, %v9857_v32  ;;  %8069 = vrcp.f32 %v6368_v49  ;;  %v6281_v27 = vsub.f32 0.0, %v9975_v25  ;;  %v6280_v1 = vsub.f32 0.0, %v9978_v20 }
 0x30d   : > { %v8052_v62 = vpop.eup %8051  ;;  %v6429_v23 = vmul.f32 %v8050_v51, %v9862_v3  ;;  %v6338_v48 = vmul.f32 1.442695, %v6278_v26 }
 0x30e   : > { %v8054_v8 = vpop.eup %8053  ;;  %6458 = vst.msk [vmem:[%s9828_s28 + $0x80] sm:$0xff] %vm258_vm1, %v6426_v36  ;;  %v6371_v63 = vadd.f32 1.0, %v8052_v62  ;;  %v6344_v47 = vmul.f32 1.442695, %v6281_v27  ;;  %v6342_v60 = vmul.f32 1.442695, %v6280_v1 }
 0x30f   : > { %v8056_v19 = vpop.eup %8055  ;;  %6461 = vst.msk [vmem:[%s9828_s28 + $0x98] sm:$0xff] %vm258_vm1, %v6429_v23  ;;  %v6428_v32 = vmul.f32 %v8054_v8, %v9877_v56  ;;  %8071 = vpow2.f32 %v6338_v48 }
 0x310   : > { %v8058_v40 = vpop.eup %8057  ;;  %v6431_v0 = vmul.f32 %v8056_v19, %v9882_v59  ;;  %8073 = vrcp.f32 %v6371_v63 }
 0x311   : > { %v8060_v3 = vpop.eup %8059  ;;  %6460 = vst.msk [vmem:[%s9828_s28 + $0x90] sm:$0xff] %vm258_vm1, %v6428_v32  ;;  %v6370_v17 = vadd.f32 1.0, %v8058_v40  ;;  %8075 = vpow2.f32 %v6344_v47 }
 0x312   : > { %v8062_v41 = vpop.eup %8061  ;;  %6463 = vst.msk [vmem:[%s9828_s28 + $0xa8] sm:$0xff] %vm258_vm1, %v6431_v0  ;;  %v6373_v29 = vadd.f32 1.0, %v8060_v3  ;;  %8077 = vpow2.f32 %v6342_v60 }
 0x313   : > { %v8064_v54 = vpop.eup %8063  ;;  %v6430_v56 = vmul.f32 %v8062_v41, %v9894_v15  ;;  %8079 = vrcp.f32 %v6370_v17 }
 0x314   : > { %v8066_v45 = vpop.eup %8065  ;;  %v6433_v59 = vmul.f32 %v8064_v54, %v9898_v30  ;;  %8081 = vrcp.f32 %v6373_v29 }
 0x315   : > { %v8068_v10 = vpop.eup %8067  ;;  %6462 = vst.msk [vmem:[%s9828_s28 + $0xa0] sm:$0xff] %vm258_vm1, %v6430_v56  ;;  %v6372_v5 = vadd.f32 1.0, %v8066_v45 }
 0x316   : > { %v8070_v6 = vpop.eup %8069  ;;  %6465 = vst.msk [vmem:[%s9828_s28 + $0xb8] sm:$0xff] %vm258_vm1, %v6433_v59  ;;  %v6375_v38 = vadd.f32 1.0, %v8068_v10 }
 0x317   : > { %v6432_v24 = vmul.f32 %v8070_v6, %v9910_v22  ;;  %8083 = vrcp.f32 %v6372_v5 }
 0x318   : > { %8085 = vrcp.f32 %v6375_v38 }
 0x319   : > { %v8072_v46 = vpop.eup %8071  ;;  %6464 = vst.msk [vmem:[%s9828_s28 + $0xb0] sm:$0xff] %vm258_vm1, %v6432_v24 }
 0x31a   : > { %v8074_v15 = vpop.eup %8073  ;;  %v6374_v30 = vadd.f32 1.0, %v8072_v46 }
 0x31b   : > { %v8076_v28 = vpop.eup %8075  ;;  %v6435_v50 = vmul.f32 %v8074_v15, %v9921_v61 }
 0x31c   : > { %v8078_v7 = vpop.eup %8077  ;;  %8087 = vrcp.f32 %v6374_v30  ;;  %v6377_v21 = vadd.f32 1.0, %v8076_v28 }
 0x31d   : > { %v8080_v31 = vpop.eup %8079  ;;  %6467 = vst.msk [vmem:[%s9828_s28 + $0xc8] sm:$0xff] %vm258_vm1, %v6435_v50  ;;  %v6376_v22 = vadd.f32 1.0, %v8078_v7 }
 0x31e   : > { %v8082_v53 = vpop.eup %8081  ;;  %v6434_v58 = vmul.f32 %v8080_v31, %v9934_v55  ;;  %8089 = vrcp.f32 %v6377_v21 }
 0x31f   : > { %v6437_v52 = vmul.f32 %v8082_v53, %v9940_v18  ;;  %8091 = vrcp.f32 %v6376_v22 }
 0x320   : > { %6466 = vst.msk [vmem:[%s9828_s28 + $0xc0] sm:$0xff] %vm258_vm1, %v6434_v58 }
 0x321   : > { %v8084_v61 = vpop.eup %8083  ;;  %6469 = vst.msk [vmem:[%s9828_s28 + $0xd8] sm:$0xff] %vm258_vm1, %v6437_v52 }
 0x322   : > { %v8086_v35 = vpop.eup %8085  ;;  %v6436_v14 = vmul.f32 %v8084_v61, %v9943_v13 }
 0x323   : > { %v6439_v4 = vmul.f32 %v8086_v35, %v9953_v16 }
 0x324   : > { %6468 = vst.msk [vmem:[%s9828_s28 + $0xd0] sm:$0xff] %vm258_vm1, %v6436_v14 }
 0x325   : > { %6471 = vst.msk [vmem:[%s9828_s28 + $0xe8] sm:$0xff] %vm258_vm1, %v6439_v4 }
 0x326   : > { %v8088_v55 = vpop.eup %8087 }
 0x327   : > { %v6438_v18 = vmul.f32 %v8088_v55, %v9970_v11 }
 0x328   : > { %v8090_v39 = vpop.eup %8089 }
 0x329   : > { %v8092_v33 = vpop.eup %8091  ;;  %6470 = vst.msk [vmem:[%s9828_s28 + $0xe0] sm:$0xff] %vm258_vm1, %v6438_v18  ;;  %v6441_v37 = vmul.f32 %v8090_v39, %v9975_v25 }
 0x32a   : > { %v6440_v42 = vmul.f32 %v8092_v33, %v9978_v20 }
 0x32b   : > { %6473 = vst.msk [vmem:[%s9828_s28 + $0xf8] sm:$0xff] %vm258_vm1, %v6441_v37 }
 0x32c   : > { %6472 = vst.msk [vmem:[%s9828_s28 + $0xf0] sm:$0xff] %vm258_vm1, %v6440_v42 }
 0x32d PF: > { %s15_s18 = sadd.s32 1, %s8099_s18  }
 0x32e   : > { %p12_p4 = scmp.ge.s32.totalorder %s15_s18, 4  }
 0x330   :  { %14 = sbr.rel (!%p12_p4) target bundleno = 1 (0x1), region = 78 }

</bundles_post_ra>
